<compile_context>
chip_gen: v5e
topology: v5e:2x2
jax: 0.10.0
libtpu: 0.0.40
codegen_flags: <defaults>
</compile_context>

<pallas_src>
import jax
import jax.numpy as jnp
from jax.experimental import pallas as pl
from jax.experimental.pallas import tpu as pltpu

BN_EPS = 1e-5


def make_dense_block_kernel(repeats, H, W, C0, C, G):
    """Builds the fused DenseBlock kernel (all layers, one batch element)."""

    def kernel(*refs):
        x_ref = refs[0]            # (1, H, W, C0)   f32
        w_refs = refs[1:-2]        # per-layer weights / biases
        o_ref = refs[-2]           # (1, repeats, H, W, G) f32
        pad_ref = refs[-1]         # (H+2, W+2, C)   f32 VMEM scratch

        # Zero the depthwise halo scratch once per grid step.  Only the 1-px
        # border actually needs zeros (the interior is overwritten by every
        # layer before it is read), but a full zero is cheap (~40 vreg stores)
        # and is safe regardless of which TensorCore owns this grid step.
        pad_ref[...] = jnp.zeros(pad_ref.shape, pad_ref.dtype)

        # Dense feature map: list of channel chunks, kept resident as bf16
        # values (never round-trips HBM between layers).
        chunks = [x_ref[0].reshape(H * W, C0).astype(jnp.bfloat16)]

        p = 0
        for i in range(repeats):
            n_src = i + 1
            we_refs = w_refs[p:p + n_src]                       # expand chunks
            be_ref, wd_ref, bd_ref, ws_ref, bs_ref = w_refs[p + n_src:
                                                            p + n_src + 5]
            p += n_src + 5

            # ---- 1x1 expand (+ folded BN shift) + ReLU6:
            #      sum of per-chunk MXU matmuls over the dense feature map ----
            t = jnp.dot(chunks[0], we_refs[0][...],
                        preferred_element_type=jnp.float32)
            for ck, we_ref in zip(chunks[1:], we_refs[1:]):
                t = t + jnp.dot(ck, we_ref[...],
                                preferred_element_type=jnp.float32)
            t = jnp.clip(t + be_ref[...], 0.0, 6.0)             # (H*W, C) f32

            # ---- 3x3 depthwise conv, padding=1 (+ folded BN shift) + ReLU6 --
            pad_ref[1:H + 1, 1:W + 1, :] = t.reshape(H, W, C)
            wd = wd_ref[...]                                    # (3, 3, C) f32
            acc = jnp.zeros((H, W, C), jnp.float32)
            for kh in range(3):
                for kw in range(3):
                    acc = acc + (pad_ref[kh:kh + H, kw:kw + W, :] *
                                 wd[kh:kh + 1, kw:kw + 1, :])
            a = jnp.clip(acc.reshape(H * W, C) + bd_ref[...], 0.0, 6.0)

            # ---- 1x1 shrink (+ folded BN shift) + ReLU6 ---------------------
            nf = jnp.dot(a.astype(jnp.bfloat16), ws_ref[...],
                         preferred_element_type=jnp.float32)
            nf = jnp.clip(nf + bs_ref[...], 0.0, 6.0)           # (H*W, G) f32

            # Store this layer's new features (full block, lane offset 0).
            o_ref[0, i] = nf.reshape(H, W, G)
            # Keep them resident for the next layers' expand matmuls.
            chunks.append(nf.astype(jnp.bfloat16))

    return kernel


def dense_block_pallas(x_nhwc, params):
    """Runs the whole DenseBlock; returns new features (N, repeats, H, W, G)."""
    N, H, W, C0 = x_nhwc.shape
    repeats = len(params)
    ws0 = params[0][4]
    C, G = ws0.shape[0], ws0.shape[1]

    flat = []
    for (we_chunks, be, wd, bd, ws, bs) in params:
        flat.extend(we_chunks)
        flat.extend([be, wd, bd, ws, bs])

    def const_spec(a):
        nd = a.ndim

        def imap(n):
            return (0,) * nd

        return pl.BlockSpec(a.shape, imap)

    in_specs = [pl.BlockSpec((1, H, W, C0), lambda n: (n, 0, 0, 0))]
    in_specs += [const_spec(a) for a in flat]

    flops = sum(2 * N * H * W * ((C0 + i * G) * C + 9 * C + C * G)
                for i in range(repeats))
    bytes_accessed = int(x_nhwc.size * 4
                         + sum(a.size * a.dtype.itemsize for a in flat)
                         + N * repeats * H * W * G * 4)

    kernel = make_dense_block_kernel(repeats, H, W, C0, C, G)

    new_feats = pl.pallas_call(
        kernel,
        out_shape=jax.ShapeDtypeStruct((N, repeats, H, W, G), jnp.float32),
        grid_spec=pltpu.PrefetchScalarGridSpec(
            num_scalar_prefetch=0,
            grid=(N,),
            in_specs=in_specs,
            out_specs=pl.BlockSpec((1, repeats, H, W, G),
                                   lambda n: (n, 0, 0, 0, 0)),
            scratch_shapes=[pltpu.VMEM((H + 2, W + 2, C), jnp.float32)],
        ),
        compiler_params=pltpu.CompilerParams(
            dimension_semantics=("parallel",)),
        cost_estimate=pl.CostEstimate(flops=flops, transcendentals=0,
                                      bytes_accessed=bytes_accessed),
    )(x_nhwc, *flat)
    return new_feats


def dense_block(x_nchw, params):
    """DenseBlock forward: NCHW in, NCHW out (= torch.cat([x, nf0, nf1, ...]))."""
    x_nchw = x_nchw.astype(jnp.float32)
    N, C0, H, W = x_nchw.shape
    x_nhwc = jnp.transpose(x_nchw, (0, 2, 3, 1))
    new5 = dense_block_pallas(x_nhwc, params)          # (N, R, H, W, G)
    R, G = new5.shape[1], new5.shape[4]
    new_nchw = jnp.transpose(new5, (0, 1, 4, 2, 3)).reshape(N, R * G, H, W)
    # Single final concat (the per-layer host-side concats are gone).
    return jnp.concatenate([x_nchw, new_nchw], axis=1)


def _kaiming_uniform(key, shape, fan_in):
    # kaiming_uniform_(mode='fan_in', nonlinearity='relu'):
    #   bound = sqrt(2) * sqrt(3 / fan_in) = sqrt(6 / fan_in)
    bound = (2.0 ** 0.5) * (3.0 / fan_in) ** 0.5
    return jax.random.uniform(key, shape, jnp.float32, -bound, bound)


def _fold_bn(conv_bias, channels):
    # gamma=1, beta=0, running_mean=0, running_var=1 (fresh init), eps=1e-5
    gamma = jnp.ones((channels,), jnp.float32)
    beta = jnp.zeros((channels,), jnp.float32)
    mean = jnp.zeros((channels,), jnp.float32)
    var = jnp.ones((channels,), jnp.float32)
    scale = gamma / jnp.sqrt(var + BN_EPS)
    shift = beta + (conv_bias - mean) * scale
    return scale, shift


def init_dense_block_params(key, in_channels, repeats, growth_rate=32,
                            expansion=4):
    channels = expansion * growth_rate
    params = []
    for i in range(repeats):
        cin = in_channels + i * growth_rate
        k_e, k_d, k_s, key = jax.random.split(key, 4)

        # conv_expand: torch weight (C, cin, 1, 1), fan_in=cin -> stored (cin, C)
        we = _kaiming_uniform(k_e, (cin, channels), cin)
        s_e, b_e = _fold_bn(jnp.zeros((channels,), jnp.float32), channels)
        we = (we * s_e[None, :]).astype(jnp.bfloat16)   # fold BN scale, bf16 MXU
        # Split by dense-concat source chunk (x, nf_0, ..., nf_{i-1}) so the
        # kernel computes the expand as a sum of per-chunk matmuls.
        sizes = [in_channels] + [growth_rate] * i
        we_chunks, start = [], 0
        for sz in sizes:
            we_chunks.append(we[start:start + sz])
            start += sz
        be = b_e.reshape(1, channels)

        # conv_dwise: torch weight (C, 1, 3, 3), fan_in=9 -> stored (3, 3, C)
        wd = _kaiming_uniform(k_d, (3, 3, channels), 9)
        s_d, b_d = _fold_bn(jnp.zeros((channels,), jnp.float32), channels)
        wd = wd * s_d[None, None, :]                    # keep f32 (VPU path)
        bd = b_d.reshape(1, channels)

        # conv_shrink: torch weight (G, C, 1, 1), fan_in=C -> stored (C, G)
        ws = _kaiming_uniform(k_s, (channels, growth_rate), channels)
        s_s, b_s = _fold_bn(jnp.zeros((growth_rate,), jnp.float32), growth_rate)
        ws = (ws * s_s[None, :]).astype(jnp.bfloat16)
        bs = b_s.reshape(1, growth_rate)

        params.append((tuple(we_chunks), be, wd, bd, ws, bs))
    return params


if __name__ == "__main__":
    N, C0, H, W = 2, 4, 16, 16
    repeats, growth_rate, expansion = 2, 32, 4

    key = jax.random.PRNGKey(0)
    k_x, k_p = jax.random.split(key)
    x = jax.random.normal(k_x, (N, C0, H, W), jnp.float32)

    params = init_dense_block_params(k_p, C0, repeats, growth_rate, expansion)
    out = jax.jit(dense_block)(x, params)
    jax.block_until_ready(out)

    expected_c = C0 + repeats * growth_rate
    assert out.shape == (N, expected_c, H, W), out.shape
    assert bool(jnp.all(jnp.isfinite(out)))
    print("KERNEL_OK")
</pallas_src>

<mosaic_0001>
module attributes {stable_mosaic.version = 11 : i64} {
  func.func @kernel(%arg0: i32, %arg1: memref<1x16x16x4xf32, #tpu.memory_space<vmem>>, %arg2: memref<4x128xbf16, #tpu.memory_space<vmem>>, %arg3: memref<1x128xf32, #tpu.memory_space<vmem>>, %arg4: memref<3x3x128xf32, #tpu.memory_space<vmem>>, %arg5: memref<1x128xf32, #tpu.memory_space<vmem>>, %arg6: memref<128x32xbf16, #tpu.memory_space<vmem>>, %arg7: memref<1x32xf32, #tpu.memory_space<vmem>>, %arg8: memref<4x128xbf16, #tpu.memory_space<vmem>>, %arg9: memref<32x128xbf16, #tpu.memory_space<vmem>>, %arg10: memref<1x128xf32, #tpu.memory_space<vmem>>, %arg11: memref<3x3x128xf32, #tpu.memory_space<vmem>>, %arg12: memref<1x128xf32, #tpu.memory_space<vmem>>, %arg13: memref<128x32xbf16, #tpu.memory_space<vmem>>, %arg14: memref<1x32xf32, #tpu.memory_space<vmem>>, %arg15: memref<1x2x16x16x32xf32, #tpu.memory_space<vmem>>, %arg16: memref<18x18x128xf32, #tpu.memory_space<vmem>>) attributes {dimension_semantics = [#tpu.dimension_semantics<parallel>], iteration_bounds = array<i64: 2>, scalar_prefetch = 0 : i64, scratch_operands = 1 : i64, tpu.core_type = #tpu.core_type<tc>, window_params = [{transform_indices = @transform_0, window_bounds = array<i64: 1, 16, 16, 4>}, {pipeline_mode = #tpu.pipeline_mode<synchronous>, transform_indices = @transform_1, window_bounds = array<i64: 4, 128>}, {pipeline_mode = #tpu.pipeline_mode<synchronous>, transform_indices = @transform_2, window_bounds = array<i64: 1, 128>}, {pipeline_mode = #tpu.pipeline_mode<synchronous>, transform_indices = @transform_3, window_bounds = array<i64: 3, 3, 128>}, {pipeline_mode = #tpu.pipeline_mode<synchronous>, transform_indices = @transform_4, window_bounds = array<i64: 1, 128>}, {pipeline_mode = #tpu.pipeline_mode<synchronous>, transform_indices = @transform_5, window_bounds = array<i64: 128, 32>}, {pipeline_mode = #tpu.pipeline_mode<synchronous>, transform_indices = @transform_6, window_bounds = array<i64: 1, 32>}, {pipeline_mode = #tpu.pipeline_mode<synchronous>, transform_indices = @transform_7, window_bounds = array<i64: 4, 128>}, {pipeline_mode = #tpu.pipeline_mode<synchronous>, transform_indices = @transform_8, window_bounds = array<i64: 32, 128>}, {pipeline_mode = #tpu.pipeline_mode<synchronous>, transform_indices = @transform_9, window_bounds = array<i64: 1, 128>}, {pipeline_mode = #tpu.pipeline_mode<synchronous>, transform_indices = @transform_10, window_bounds = array<i64: 3, 3, 128>}, {pipeline_mode = #tpu.pipeline_mode<synchronous>, transform_indices = @transform_11, window_bounds = array<i64: 1, 128>}, {pipeline_mode = #tpu.pipeline_mode<synchronous>, transform_indices = @transform_12, window_bounds = array<i64: 128, 32>}, {pipeline_mode = #tpu.pipeline_mode<synchronous>, transform_indices = @transform_13, window_bounds = array<i64: 1, 32>}, {transform_indices = @transform_14, window_bounds = array<i64: 1, 2, 16, 16, 32>}]} {
    %cst = arith.constant 0.000000e+00 : f32
    %0 = vector.broadcast %cst : f32 to vector<18x18x128xf32>
    %c0 = arith.constant 0 : index
    %c0_0 = arith.constant 0 : index
    %c0_1 = arith.constant 0 : index
    %1 = vector.load %arg16[%c0, %c0_0, %c0_1] : memref<18x18x128xf32, #tpu.memory_space<vmem>>, vector<18x18x128xf32>
    tpu.vector_store %arg16[%c0, %c0_0, %c0_1], %0 {strides = array<i32>} : memref<18x18x128xf32, #tpu.memory_space<vmem>>, vector<18x18x128xf32>,
    %c0_2 = arith.constant 0 : index
    %c0_3 = arith.constant 0 : index
    %c0_4 = arith.constant 0 : index
    %c0_5 = arith.constant 0 : index
    %2 = vector.load %arg1[%c0_2, %c0_3, %c0_4, %c0_5] : memref<1x16x16x4xf32, #tpu.memory_space<vmem>>, vector<1x16x16x4xf32>
    %3 = vector.shape_cast %2 : vector<1x16x16x4xf32> to vector<16x16x4xf32>
    %4 = vector.shape_cast %3 : vector<16x16x4xf32> to vector<256x4xf32>
    %5 = arith.truncf %4 : vector<256x4xf32> to vector<256x4xbf16>
    %c0_6 = arith.constant 0 : index
    %c0_7 = arith.constant 0 : index
    %6 = vector.load %arg2[%c0_6, %c0_7] : memref<4x128xbf16, #tpu.memory_space<vmem>>, vector<4x128xbf16>
    %cst_8 = arith.constant dense<0.000000e+00> : vector<256x128xf32>
    %7 = tpu.matmul %5, %6, %cst_8 {dimension_numbers = #tpu.dot_dimension_numbers<[1], [0], [0], [1], [0, 0, 1, 1], [], []>} : vector<256x4xbf16>, vector<4x128xbf16>, vector<256x128xf32> -> vector<256x128xf32>
    %c0_9 = arith.constant 0 : index
    %c0_10 = arith.constant 0 : index
    %8 = vector.load %arg3[%c0_9, %c0_10] : memref<1x128xf32, #tpu.memory_space<vmem>>, vector<1x128xf32>
    %9 = vector.broadcast %8 : vector<1x128xf32> to vector<256x128xf32>
    %10 = arith.addf %7, %9 : vector<256x128xf32>
    %cst_11 = arith.constant 0.000000e+00 : f32
    %cst_12 = arith.constant 6.000000e+00 : f32
    %11 = vector.broadcast %cst_11 : f32 to vector<256x128xf32>
    %12 = arith.maximumf %11, %10 : vector<256x128xf32>
    %13 = vector.broadcast %cst_12 : f32 to vector<256x128xf32>
    %14 = arith.minimumf %13, %12 : vector<256x128xf32>
    %15 = vector.shape_cast %14 : vector<256x128xf32> to vector<16x16x128xf32>
    %c1 = arith.constant 1 : index
    %c1_13 = arith.constant 1 : index
    %c0_14 = arith.constant 0 : index
    %16 = vector.load %arg16[%c1, %c1_13, %c0_14] : memref<18x18x128xf32, #tpu.memory_space<vmem>>, vector<16x16x128xf32>
    tpu.vector_store %arg16[%c1, %c1_13, %c0_14], %15 {strides = array<i32>} : memref<18x18x128xf32, #tpu.memory_space<vmem>>, vector<16x16x128xf32>,
    %c0_15 = arith.constant 0 : index
    %c0_16 = arith.constant 0 : index
    %c0_17 = arith.constant 0 : index
    %17 = vector.load %arg4[%c0_15, %c0_16, %c0_17] : memref<3x3x128xf32, #tpu.memory_space<vmem>>, vector<3x3x128xf32>
    %cst_18 = arith.constant 0.000000e+00 : f32
    %18 = vector.broadcast %cst_18 : f32 to vector<16x16x128xf32>
    %c0_19 = arith.constant 0 : index
    %c0_20 = arith.constant 0 : index
    %c0_21 = arith.constant 0 : index
    %19 = vector.load %arg16[%c0_19, %c0_20, %c0_21] : memref<18x18x128xf32, #tpu.memory_space<vmem>>, vector<16x16x128xf32>
    %20 = vector.extract_strided_slice %17 {offsets = [0, 0, 0], sizes = [1, 1, 128], strides = [1, 1, 1]} : vector<3x3x128xf32> to vector<1x1x128xf32>
    %21 = vector.broadcast %20 : vector<1x1x128xf32> to vector<16x16x128xf32>
    %22 = arith.mulf %19, %21 : vector<16x16x128xf32>
    %23 = arith.addf %18, %22 : vector<16x16x128xf32>
    %c0_22 = arith.constant 0 : index
    %c1_23 = arith.constant 1 : index
    %c0_24 = arith.constant 0 : index
    %24 = vector.load %arg16[%c0_22, %c1_23, %c0_24] : memref<18x18x128xf32, #tpu.memory_space<vmem>>, vector<16x16x128xf32>
    %25 = vector.extract_strided_slice %17 {offsets = [0, 1, 0], sizes = [1, 1, 128], strides = [1, 1, 1]} : vector<3x3x128xf32> to vector<1x1x128xf32>
    %26 = vector.broadcast %25 : vector<1x1x128xf32> to vector<16x16x128xf32>
    %27 = arith.mulf %24, %26 : vector<16x16x128xf32>
    %28 = arith.addf %23, %27 : vector<16x16x128xf32>
    %c0_25 = arith.constant 0 : index
    %c2 = arith.constant 2 : index
    %c0_26 = arith.constant 0 : index
    %29 = vector.load %arg16[%c0_25, %c2, %c0_26] : memref<18x18x128xf32, #tpu.memory_space<vmem>>, vector<16x16x128xf32>
    %30 = vector.extract_strided_slice %17 {offsets = [0, 2, 0], sizes = [1, 1, 128], strides = [1, 1, 1]} : vector<3x3x128xf32> to vector<1x1x128xf32>
    %31 = vector.broadcast %30 : vector<1x1x128xf32> to vector<16x16x128xf32>
    %32 = arith.mulf %29, %31 : vector<16x16x128xf32>
    %33 = arith.addf %28, %32 : vector<16x16x128xf32>
    %c1_27 = arith.constant 1 : index
    %c0_28 = arith.constant 0 : index
    %c0_29 = arith.constant 0 : index
    %34 = vector.load %arg16[%c1_27, %c0_28, %c0_29] : memref<18x18x128xf32, #tpu.memory_space<vmem>>, vector<16x16x128xf32>
    %35 = vector.extract_strided_slice %17 {offsets = [1, 0, 0], sizes = [1, 1, 128], strides = [1, 1, 1]} : vector<3x3x128xf32> to vector<1x1x128xf32>
    %36 = vector.broadcast %35 : vector<1x1x128xf32> to vector<16x16x128xf32>
    %37 = arith.mulf %34, %36 : vector<16x16x128xf32>
    %38 = arith.addf %33, %37 : vector<16x16x128xf32>
    %c1_30 = arith.constant 1 : index
    %c1_31 = arith.constant 1 : index
    %c0_32 = arith.constant 0 : index
    %39 = vector.load %arg16[%c1_30, %c1_31, %c0_32] : memref<18x18x128xf32, #tpu.memory_space<vmem>>, vector<16x16x128xf32>
    %40 = vector.extract_strided_slice %17 {offsets = [1, 1, 0], sizes = [1, 1, 128], strides = [1, 1, 1]} : vector<3x3x128xf32> to vector<1x1x128xf32>
    %41 = vector.broadcast %40 : vector<1x1x128xf32> to vector<16x16x128xf32>
    %42 = arith.mulf %39, %41 : vector<16x16x128xf32>
    %43 = arith.addf %38, %42 : vector<16x16x128xf32>
    %c1_33 = arith.constant 1 : index
    %c2_34 = arith.constant 2 : index
    %c0_35 = arith.constant 0 : index
    %44 = vector.load %arg16[%c1_33, %c2_34, %c0_35] : memref<18x18x128xf32, #tpu.memory_space<vmem>>, vector<16x16x128xf32>
    %45 = vector.extract_strided_slice %17 {offsets = [1, 2, 0], sizes = [1, 1, 128], strides = [1, 1, 1]} : vector<3x3x128xf32> to vector<1x1x128xf32>
    %46 = vector.broadcast %45 : vector<1x1x128xf32> to vector<16x16x128xf32>
    %47 = arith.mulf %44, %46 : vector<16x16x128xf32>
    %48 = arith.addf %43, %47 : vector<16x16x128xf32>
    %c2_36 = arith.constant 2 : index
    %c0_37 = arith.constant 0 : index
    %c0_38 = arith.constant 0 : index
    %49 = vector.load %arg16[%c2_36, %c0_37, %c0_38] : memref<18x18x128xf32, #tpu.memory_space<vmem>>, vector<16x16x128xf32>
    %50 = vector.extract_strided_slice %17 {offsets = [2, 0, 0], sizes = [1, 1, 128], strides = [1, 1, 1]} : vector<3x3x128xf32> to vector<1x1x128xf32>
    %51 = vector.broadcast %50 : vector<1x1x128xf32> to vector<16x16x128xf32>
    %52 = arith.mulf %49, %51 : vector<16x16x128xf32>
    %53 = arith.addf %48, %52 : vector<16x16x128xf32>
    %c2_39 = arith.constant 2 : index
    %c1_40 = arith.constant 1 : index
    %c0_41 = arith.constant 0 : index
    %54 = vector.load %arg16[%c2_39, %c1_40, %c0_41] : memref<18x18x128xf32, #tpu.memory_space<vmem>>, vector<16x16x128xf32>
    %55 = vector.extract_strided_slice %17 {offsets = [2, 1, 0], sizes = [1, 1, 128], strides = [1, 1, 1]} : vector<3x3x128xf32> to vector<1x1x128xf32>
    %56 = vector.broadcast %55 : vector<1x1x128xf32> to vector<16x16x128xf32>
    %57 = arith.mulf %54, %56 : vector<16x16x128xf32>
    %58 = arith.addf %53, %57 : vector<16x16x128xf32>
    %c2_42 = arith.constant 2 : index
    %c2_43 = arith.constant 2 : index
    %c0_44 = arith.constant 0 : index
    %59 = vector.load %arg16[%c2_42, %c2_43, %c0_44] : memref<18x18x128xf32, #tpu.memory_space<vmem>>, vector<16x16x128xf32>
    %60 = vector.extract_strided_slice %17 {offsets = [2, 2, 0], sizes = [1, 1, 128], strides = [1, 1, 1]} : vector<3x3x128xf32> to vector<1x1x128xf32>
    %61 = vector.broadcast %60 : vector<1x1x128xf32> to vector<16x16x128xf32>
    %62 = arith.mulf %59, %61 : vector<16x16x128xf32>
    %63 = arith.addf %58, %62 : vector<16x16x128xf32>
    %64 = vector.shape_cast %63 : vector<16x16x128xf32> to vector<256x128xf32>
    %c0_45 = arith.constant 0 : index
    %c0_46 = arith.constant 0 : index
    %65 = vector.load %arg5[%c0_45, %c0_46] : memref<1x128xf32, #tpu.memory_space<vmem>>, vector<1x128xf32>
    %66 = vector.broadcast %65 : vector<1x128xf32> to vector<256x128xf32>
    %67 = arith.addf %64, %66 : vector<256x128xf32>
    %cst_47 = arith.constant 0.000000e+00 : f32
    %cst_48 = arith.constant 6.000000e+00 : f32
    %68 = vector.broadcast %cst_47 : f32 to vector<256x128xf32>
    %69 = arith.maximumf %68, %67 : vector<256x128xf32>
    %70 = vector.broadcast %cst_48 : f32 to vector<256x128xf32>
    %71 = arith.minimumf %70, %69 : vector<256x128xf32>
    %72 = arith.truncf %71 : vector<256x128xf32> to vector<256x128xbf16>
    %c0_49 = arith.constant 0 : index
    %c0_50 = arith.constant 0 : index
    %73 = vector.load %arg6[%c0_49, %c0_50] : memref<128x32xbf16, #tpu.memory_space<vmem>>, vector<128x32xbf16>
    %cst_51 = arith.constant dense<0.000000e+00> : vector<256x32xf32>
    %74 = tpu.matmul %72, %73, %cst_51 {dimension_numbers = #tpu.dot_dimension_numbers<[1], [0], [0], [1], [0, 0, 1, 1], [], []>} : vector<256x128xbf16>, vector<128x32xbf16>, vector<256x32xf32> -> vector<256x32xf32>
    %c0_52 = arith.constant 0 : index
    %c0_53 = arith.constant 0 : index
    %75 = vector.load %arg7[%c0_52, %c0_53] : memref<1x32xf32, #tpu.memory_space<vmem>>, vector<1x32xf32>
    %76 = vector.broadcast %75 : vector<1x32xf32> to vector<256x32xf32>
    %77 = arith.addf %74, %76 : vector<256x32xf32>
    %cst_54 = arith.constant 0.000000e+00 : f32
    %cst_55 = arith.constant 6.000000e+00 : f32
    %78 = vector.broadcast %cst_54 : f32 to vector<256x32xf32>
    %79 = arith.maximumf %78, %77 : vector<256x32xf32>
    %80 = vector.broadcast %cst_55 : f32 to vector<256x32xf32>
    %81 = arith.minimumf %80, %79 : vector<256x32xf32>
    %82 = vector.shape_cast %81 : vector<256x32xf32> to vector<16x16x32xf32>
    %c0_56 = arith.constant 0 : index
    %c0_57 = arith.constant 0 : index
    %c0_58 = arith.constant 0 : index
    %c0_59 = arith.constant 0 : index
    %c0_60 = arith.constant 0 : index
    %83 = vector.load %arg15[%c0_56, %c0_57, %c0_58, %c0_59, %c0_60] : memref<1x2x16x16x32xf32, #tpu.memory_space<vmem>>, vector<1x1x16x16x32xf32>
    %84 = vector.shape_cast %83 : vector<1x1x16x16x32xf32> to vector<16x16x32xf32>
    %85 = vector.shape_cast %82 : vector<16x16x32xf32> to vector<1x1x16x16x32xf32>
    tpu.vector_store %arg15[%c0_56, %c0_57, %c0_58, %c0_59, %c0_60], %85 {strides = array<i32>} : memref<1x2x16x16x32xf32, #tpu.memory_space<vmem>>, vector<1x1x16x16x32xf32>,
    %86 = arith.truncf %81 : vector<256x32xf32> to vector<256x32xbf16>
    %c0_61 = arith.constant 0 : index
    %c0_62 = arith.constant 0 : index
    %87 = vector.load %arg8[%c0_61, %c0_62] : memref<4x128xbf16, #tpu.memory_space<vmem>>, vector<4x128xbf16>
    %cst_63 = arith.constant dense<0.000000e+00> : vector<256x128xf32>
    %88 = tpu.matmul %5, %87, %cst_63 {dimension_numbers = #tpu.dot_dimension_numbers<[1], [0], [0], [1], [0, 0, 1, 1], [], []>} : vector<256x4xbf16>, vector<4x128xbf16>, vector<256x128xf32> -> vector<256x128xf32>
    %c0_64 = arith.constant 0 : index
    %c0_65 = arith.constant 0 : index
    %89 = vector.load %arg9[%c0_64, %c0_65] : memref<32x128xbf16, #tpu.memory_space<vmem>>, vector<32x128xbf16>
    %cst_66 = arith.constant dense<0.000000e+00> : vector<256x128xf32>
    %90 = tpu.matmul %86, %89, %cst_66 {dimension_numbers = #tpu.dot_dimension_numbers<[1], [0], [0], [1], [0, 0, 1, 1], [], []>} : vector<256x32xbf16>, vector<32x128xbf16>, vector<256x128xf32> -> vector<256x128xf32>
    %91 = arith.addf %88, %90 : vector<256x128xf32>
    %c0_67 = arith.constant 0 : index
    %c0_68 = arith.constant 0 : index
    %92 = vector.load %arg10[%c0_67, %c0_68] : memref<1x128xf32, #tpu.memory_space<vmem>>, vector<1x128xf32>
    %93 = vector.broadcast %92 : vector<1x128xf32> to vector<256x128xf32>
    %94 = arith.addf %91, %93 : vector<256x128xf32>
    %cst_69 = arith.constant 0.000000e+00 : f32
    %cst_70 = arith.constant 6.000000e+00 : f32
    %95 = vector.broadcast %cst_69 : f32 to vector<256x128xf32>
    %96 = arith.maximumf %95, %94 : vector<256x128xf32>
    %97 = vector.broadcast %cst_70 : f32 to vector<256x128xf32>
    %98 = arith.minimumf %97, %96 : vector<256x128xf32>
    %99 = vector.shape_cast %98 : vector<256x128xf32> to vector<16x16x128xf32>
    %c1_71 = arith.constant 1 : index
    %c1_72 = arith.constant 1 : index
    %c0_73 = arith.constant 0 : index
    %100 = vector.load %arg16[%c1_71, %c1_72, %c0_73] : memref<18x18x128xf32, #tpu.memory_space<vmem>>, vector<16x16x128xf32>
    tpu.vector_store %arg16[%c1_71, %c1_72, %c0_73], %99 {strides = array<i32>} : memref<18x18x128xf32, #tpu.memory_space<vmem>>, vector<16x16x128xf32>,
    %c0_74 = arith.constant 0 : index
    %c0_75 = arith.constant 0 : index
    %c0_76 = arith.constant 0 : index
    %101 = vector.load %arg11[%c0_74, %c0_75, %c0_76] : memref<3x3x128xf32, #tpu.memory_space<vmem>>, vector<3x3x128xf32>
    %cst_77 = arith.constant 0.000000e+00 : f32
    %102 = vector.broadcast %cst_77 : f32 to vector<16x16x128xf32>
    %c0_78 = arith.constant 0 : index
    %c0_79 = arith.constant 0 : index
    %c0_80 = arith.constant 0 : index
    %103 = vector.load %arg16[%c0_78, %c0_79, %c0_80] : memref<18x18x128xf32, #tpu.memory_space<vmem>>, vector<16x16x128xf32>
    %104 = vector.extract_strided_slice %101 {offsets = [0, 0, 0], sizes = [1, 1, 128], strides = [1, 1, 1]} : vector<3x3x128xf32> to vector<1x1x128xf32>
    %105 = vector.broadcast %104 : vector<1x1x128xf32> to vector<16x16x128xf32>
    %106 = arith.mulf %103, %105 : vector<16x16x128xf32>
    %107 = arith.addf %102, %106 : vector<16x16x128xf32>
    %c0_81 = arith.constant 0 : index
    %c1_82 = arith.constant 1 : index
    %c0_83 = arith.constant 0 : index
    %108 = vector.load %arg16[%c0_81, %c1_82, %c0_83] : memref<18x18x128xf32, #tpu.memory_space<vmem>>, vector<16x16x128xf32>
    %109 = vector.extract_strided_slice %101 {offsets = [0, 1, 0], sizes = [1, 1, 128], strides = [1, 1, 1]} : vector<3x3x128xf32> to vector<1x1x128xf32>
    %110 = vector.broadcast %109 : vector<1x1x128xf32> to vector<16x16x128xf32>
    %111 = arith.mulf %108, %110 : vector<16x16x128xf32>
    %112 = arith.addf %107, %111 : vector<16x16x128xf32>
    %c0_84 = arith.constant 0 : index
    %c2_85 = arith.constant 2 : index
    %c0_86 = arith.constant 0 : index
    %113 = vector.load %arg16[%c0_84, %c2_85, %c0_86] : memref<18x18x128xf32, #tpu.memory_space<vmem>>, vector<16x16x128xf32>
    %114 = vector.extract_strided_slice %101 {offsets = [0, 2, 0], sizes = [1, 1, 128], strides = [1, 1, 1]} : vector<3x3x128xf32> to vector<1x1x128xf32>
    %115 = vector.broadcast %114 : vector<1x1x128xf32> to vector<16x16x128xf32>
    %116 = arith.mulf %113, %115 : vector<16x16x128xf32>
    %117 = arith.addf %112, %116 : vector<16x16x128xf32>
    %c1_87 = arith.constant 1 : index
    %c0_88 = arith.constant 0 : index
    %c0_89 = arith.constant 0 : index
    %118 = vector.load %arg16[%c1_87, %c0_88, %c0_89] : memref<18x18x128xf32, #tpu.memory_space<vmem>>, vector<16x16x128xf32>
    %119 = vector.extract_strided_slice %101 {offsets = [1, 0, 0], sizes = [1, 1, 128], strides = [1, 1, 1]} : vector<3x3x128xf32> to vector<1x1x128xf32>
    %120 = vector.broadcast %119 : vector<1x1x128xf32> to vector<16x16x128xf32>
    %121 = arith.mulf %118, %120 : vector<16x16x128xf32>
    %122 = arith.addf %117, %121 : vector<16x16x128xf32>
    %c1_90 = arith.constant 1 : index
    %c1_91 = arith.constant 1 : index
    %c0_92 = arith.constant 0 : index
    %123 = vector.load %arg16[%c1_90, %c1_91, %c0_92] : memref<18x18x128xf32, #tpu.memory_space<vmem>>, vector<16x16x128xf32>
    %124 = vector.extract_strided_slice %101 {offsets = [1, 1, 0], sizes = [1, 1, 128], strides = [1, 1, 1]} : vector<3x3x128xf32> to vector<1x1x128xf32>
    %125 = vector.broadcast %124 : vector<1x1x128xf32> to vector<16x16x128xf32>
    %126 = arith.mulf %123, %125 : vector<16x16x128xf32>
    %127 = arith.addf %122, %126 : vector<16x16x128xf32>
    %c1_93 = arith.constant 1 : index
    %c2_94 = arith.constant 2 : index
    %c0_95 = arith.constant 0 : index
    %128 = vector.load %arg16[%c1_93, %c2_94, %c0_95] : memref<18x18x128xf32, #tpu.memory_space<vmem>>, vector<16x16x128xf32>
    %129 = vector.extract_strided_slice %101 {offsets = [1, 2, 0], sizes = [1, 1, 128], strides = [1, 1, 1]} : vector<3x3x128xf32> to vector<1x1x128xf32>
    %130 = vector.broadcast %129 : vector<1x1x128xf32> to vector<16x16x128xf32>
    %131 = arith.mulf %128, %130 : vector<16x16x128xf32>
    %132 = arith.addf %127, %131 : vector<16x16x128xf32>
    %c2_96 = arith.constant 2 : index
    %c0_97 = arith.constant 0 : index
    %c0_98 = arith.constant 0 : index
    %133 = vector.load %arg16[%c2_96, %c0_97, %c0_98] : memref<18x18x128xf32, #tpu.memory_space<vmem>>, vector<16x16x128xf32>
    %134 = vector.extract_strided_slice %101 {offsets = [2, 0, 0], sizes = [1, 1, 128], strides = [1, 1, 1]} : vector<3x3x128xf32> to vector<1x1x128xf32>
    %135 = vector.broadcast %134 : vector<1x1x128xf32> to vector<16x16x128xf32>
    %136 = arith.mulf %133, %135 : vector<16x16x128xf32>
    %137 = arith.addf %132, %136 : vector<16x16x128xf32>
    %c2_99 = arith.constant 2 : index
    %c1_100 = arith.constant 1 : index
    %c0_101 = arith.constant 0 : index
    %138 = vector.load %arg16[%c2_99, %c1_100, %c0_101] : memref<18x18x128xf32, #tpu.memory_space<vmem>>, vector<16x16x128xf32>
    %139 = vector.extract_strided_slice %101 {offsets = [2, 1, 0], sizes = [1, 1, 128], strides = [1, 1, 1]} : vector<3x3x128xf32> to vector<1x1x128xf32>
    %140 = vector.broadcast %139 : vector<1x1x128xf32> to vector<16x16x128xf32>
    %141 = arith.mulf %138, %140 : vector<16x16x128xf32>
    %142 = arith.addf %137, %141 : vector<16x16x128xf32>
    %c2_102 = arith.constant 2 : index
    %c2_103 = arith.constant 2 : index
    %c0_104 = arith.constant 0 : index
    %143 = vector.load %arg16[%c2_102, %c2_103, %c0_104] : memref<18x18x128xf32, #tpu.memory_space<vmem>>, vector<16x16x128xf32>
    %144 = vector.extract_strided_slice %101 {offsets = [2, 2, 0], sizes = [1, 1, 128], strides = [1, 1, 1]} : vector<3x3x128xf32> to vector<1x1x128xf32>
    %145 = vector.broadcast %144 : vector<1x1x128xf32> to vector<16x16x128xf32>
    %146 = arith.mulf %143, %145 : vector<16x16x128xf32>
    %147 = arith.addf %142, %146 : vector<16x16x128xf32>
    %148 = vector.shape_cast %147 : vector<16x16x128xf32> to vector<256x128xf32>
    %c0_105 = arith.constant 0 : index
    %c0_106 = arith.constant 0 : index
    %149 = vector.load %arg12[%c0_105, %c0_106] : memref<1x128xf32, #tpu.memory_space<vmem>>, vector<1x128xf32>
    %150 = vector.broadcast %149 : vector<1x128xf32> to vector<256x128xf32>
    %151 = arith.addf %148, %150 : vector<256x128xf32>
    %cst_107 = arith.constant 0.000000e+00 : f32
    %cst_108 = arith.constant 6.000000e+00 : f32
    %152 = vector.broadcast %cst_107 : f32 to vector<256x128xf32>
    %153 = arith.maximumf %152, %151 : vector<256x128xf32>
    %154 = vector.broadcast %cst_108 : f32 to vector<256x128xf32>
    %155 = arith.minimumf %154, %153 : vector<256x128xf32>
    %156 = arith.truncf %155 : vector<256x128xf32> to vector<256x128xbf16>
    %c0_109 = arith.constant 0 : index
    %c0_110 = arith.constant 0 : index
    %157 = vector.load %arg13[%c0_109, %c0_110] : memref<128x32xbf16, #tpu.memory_space<vmem>>, vector<128x32xbf16>
    %cst_111 = arith.constant dense<0.000000e+00> : vector<256x32xf32>
    %158 = tpu.matmul %156, %157, %cst_111 {dimension_numbers = #tpu.dot_dimension_numbers<[1], [0], [0], [1], [0, 0, 1, 1], [], []>} : vector<256x128xbf16>, vector<128x32xbf16>, vector<256x32xf32> -> vector<256x32xf32>
    %c0_112 = arith.constant 0 : index
    %c0_113 = arith.constant 0 : index
    %159 = vector.load %arg14[%c0_112, %c0_113] : memref<1x32xf32, #tpu.memory_space<vmem>>, vector<1x32xf32>
    %160 = vector.broadcast %159 : vector<1x32xf32> to vector<256x32xf32>
    %161 = arith.addf %158, %160 : vector<256x32xf32>
    %cst_114 = arith.constant 0.000000e+00 : f32
    %cst_115 = arith.constant 6.000000e+00 : f32
    %162 = vector.broadcast %cst_114 : f32 to vector<256x32xf32>
    %163 = arith.maximumf %162, %161 : vector<256x32xf32>
    %164 = vector.broadcast %cst_115 : f32 to vector<256x32xf32>
    %165 = arith.minimumf %164, %163 : vector<256x32xf32>
    %166 = vector.shape_cast %165 : vector<256x32xf32> to vector<16x16x32xf32>
    %c0_116 = arith.constant 0 : index
    %c1_117 = arith.constant 1 : index
    %c0_118 = arith.constant 0 : index
    %c0_119 = arith.constant 0 : index
    %c0_120 = arith.constant 0 : index
    %167 = vector.load %arg15[%c0_116, %c1_117, %c0_118, %c0_119, %c0_120] : memref<1x2x16x16x32xf32, #tpu.memory_space<vmem>>, vector<1x1x16x16x32xf32>
    %168 = vector.shape_cast %167 : vector<1x1x16x16x32xf32> to vector<16x16x32xf32>
    %169 = vector.shape_cast %166 : vector<16x16x32xf32> to vector<1x1x16x16x32xf32>
    tpu.vector_store %arg15[%c0_116, %c1_117, %c0_118, %c0_119, %c0_120], %169 {strides = array<i32>} : memref<1x2x16x16x32xf32, #tpu.memory_space<vmem>>, vector<1x1x16x16x32xf32>,
    return
  }
  func.func @transform_0(%arg0: i32) -> (i32, i32, i32, i32) {
    %c0_i32 = arith.constant 0 : i32
    %c0_i32_0 = arith.constant 0 : i32
    %c0_i32_1 = arith.constant 0 : i32
    %c0_i32_2 = arith.constant 0 : i32
    return %arg0, %c0_i32, %c0_i32_0, %c0_i32_1 : i32, i32, i32, i32
  }
  func.func @transform_1(%arg0: i32) -> (i32, i32) {
    %c0_i32 = arith.constant 0 : i32
    %c0_i32_0 = arith.constant 0 : i32
    %c0_i32_1 = arith.constant 0 : i32
    return %c0_i32, %c0_i32_0 : i32, i32
  }
  func.func @transform_2(%arg0: i32) -> (i32, i32) {
    %c0_i32 = arith.constant 0 : i32
    %c0_i32_0 = arith.constant 0 : i32
    %c0_i32_1 = arith.constant 0 : i32
    return %c0_i32, %c0_i32_0 : i32, i32
  }
  func.func @transform_3(%arg0: i32) -> (i32, i32, i32) {
    %c0_i32 = arith.constant 0 : i32
    %c0_i32_0 = arith.constant 0 : i32
    %c0_i32_1 = arith.constant 0 : i32
    %c0_i32_2 = arith.constant 0 : i32
    return %c0_i32, %c0_i32_0, %c0_i32_1 : i32, i32, i32
  }
  func.func @transform_4(%arg0: i32) -> (i32, i32) {
    %c0_i32 = arith.constant 0 : i32
    %c0_i32_0 = arith.constant 0 : i32
    %c0_i32_1 = arith.constant 0 : i32
    return %c0_i32, %c0_i32_0 : i32, i32
  }
  func.func @transform_5(%arg0: i32) -> (i32, i32) {
    %c0_i32 = arith.constant 0 : i32
    %c0_i32_0 = arith.constant 0 : i32
    %c0_i32_1 = arith.constant 0 : i32
    return %c0_i32, %c0_i32_0 : i32, i32
  }
  func.func @transform_6(%arg0: i32) -> (i32, i32) {
    %c0_i32 = arith.constant 0 : i32
    %c0_i32_0 = arith.constant 0 : i32
    %c0_i32_1 = arith.constant 0 : i32
    return %c0_i32, %c0_i32_0 : i32, i32
  }
  func.func @transform_7(%arg0: i32) -> (i32, i32) {
    %c0_i32 = arith.constant 0 : i32
    %c0_i32_0 = arith.constant 0 : i32
    %c0_i32_1 = arith.constant 0 : i32
    return %c0_i32, %c0_i32_0 : i32, i32
  }
  func.func @transform_8(%arg0: i32) -> (i32, i32) {
    %c0_i32 = arith.constant 0 : i32
    %c0_i32_0 = arith.constant 0 : i32
    %c0_i32_1 = arith.constant 0 : i32
    return %c0_i32, %c0_i32_0 : i32, i32
  }
  func.func @transform_9(%arg0: i32) -> (i32, i32) {
    %c0_i32 = arith.constant 0 : i32
    %c0_i32_0 = arith.constant 0 : i32
    %c0_i32_1 = arith.constant 0 : i32
    return %c0_i32, %c0_i32_0 : i32, i32
  }
  func.func @transform_10(%arg0: i32) -> (i32, i32, i32) {
    %c0_i32 = arith.constant 0 : i32
    %c0_i32_0 = arith.constant 0 : i32
    %c0_i32_1 = arith.constant 0 : i32
    %c0_i32_2 = arith.constant 0 : i32
    return %c0_i32, %c0_i32_0, %c0_i32_1 : i32, i32, i32
  }
  func.func @transform_11(%arg0: i32) -> (i32, i32) {
    %c0_i32 = arith.constant 0 : i32
    %c0_i32_0 = arith.constant 0 : i32
    %c0_i32_1 = arith.constant 0 : i32
    return %c0_i32, %c0_i32_0 : i32, i32
  }
  func.func @transform_12(%arg0: i32) -> (i32, i32) {
    %c0_i32 = arith.constant 0 : i32
    %c0_i32_0 = arith.constant 0 : i32
    %c0_i32_1 = arith.constant 0 : i32
    return %c0_i32, %c0_i32_0 : i32, i32
  }
  func.func @transform_13(%arg0: i32) -> (i32, i32) {
    %c0_i32 = arith.constant 0 : i32
    %c0_i32_0 = arith.constant 0 : i32
    %c0_i32_1 = arith.constant 0 : i32
    return %c0_i32, %c0_i32_0 : i32, i32
  }
  func.func @transform_14(%arg0: i32) -> (i32, i32, i32, i32, i32) {
    %c0_i32 = arith.constant 0 : i32
    %c0_i32_0 = arith.constant 0 : i32
    %c0_i32_1 = arith.constant 0 : i32
    %c0_i32_2 = arith.constant 0 : i32
    %c0_i32_3 = arith.constant 0 : i32
    return %arg0, %c0_i32, %c0_i32_0, %c0_i32_1, %c0_i32_2 : i32, i32, i32, i32, i32
  }
}

</mosaic_0001>

<bundles_post_ra>
// kernel: dense_block.1
= control target key start
LH: loop header
LB: loop body
LE: loop exit
PB: predicated region body
PF: predicated region fallthrough
CT: control target
= control target key end

     0   :  { %s4058_s29 = smov 0   ;;  %s6268_s0 = inlined_call_operand.vmem [shape: f32[2,16,16,4], index: 0, kind: input, shape index: {}]   ;;  %s6269_s1 = inlined_call_operand.vmem [shape: bf16[4,128], index: 1, kind: input, shape index: {}]   ;;  %s6270_s2 = inlined_call_operand.vmem [shape: f32[1,128], index: 2, kind: input, shape index: {}]   ;;  %s6271_s3 = inlined_call_operand.vmem [shape: f32[3,3,128], index: 3, kind: input, shape index: {}]   ;;  %s6272_s4 = inlined_call_operand.vmem [shape: f32[1,128], index: 4, kind: input, shape index: {}]   ;;  %s6273_s5 = inlined_call_operand.vmem [shape: bf16[128,32], index: 5, kind: input, shape index: {}]   ;;  %s6274_s6 = inlined_call_operand.vmem [shape: f32[1,32], index: 6, kind: input, shape index: {}]   ;;  %s6275_s7 = inlined_call_operand.vmem [shape: bf16[4,128], index: 7, kind: input, shape index: {}]   ;;  %s6276_s8 = inlined_call_operand.vmem [shape: bf16[32,128], index: 8, kind: input, shape index: {}]   ;;  %s6277_s9 = inlined_call_operand.vmem [shape: f32[1,128], index: 9, kind: input, shape index: {}]   ;;  %s6278_s10 = inlined_call_operand.vmem [shape: f32[3,3,128], index: 10, kind: input, shape index: {}]   ;;  %s6279_s11 = inlined_call_operand.vmem [shape: f32[1,128], index: 11, kind: input, shape index: {}]   ;;  %s6280_s12 = inlined_call_operand.vmem [shape: bf16[128,32], index: 12, kind: input, shape index: {}]   ;;  %s6281_s13 = inlined_call_operand.vmem [shape: f32[1,32], index: 13, kind: input, shape index: {}]   ;;  %s6282_s14 = inlined_call_operand.vmem [shape: f32[2,2,16,16,32], index: 14, kind: output, shape index: {}]  }
   0x1 LB: > { %s3757_s30 = sadd.s32 4294967295, %s3980_s29   ;;  %p3761_p0 = scmp.ge.s32.totalorder %s3980_s29, 1  ;;  %s3980_s29 = sphi %s4058_s29, %s24_s29  }
   0x2   : > { %p412_p1 = scmp.lt.s32.totalorder %s3980_s29, 3 }
   0x4   : > { %p413_p2 = pnand %p3761_p0, %p412_p1 }
   0x6   : > { %416 = sbr.rel (%p413_p2) target bundleno = 900 (0x384), region = 76 }
   0xb   : > { %v571_v0 = vld [vmem:[%s6269_s1] sm:$0x3]  ;;  %vm625_vm0 = vcmask 1041408   ;;  %p458_p3 = scmp.lt.s32.totalorder %s3757_s30, 1  ;;  %vm576_vm1 = vcmask 31744   ;;  %v3982_v26 = vmov 0.0  }
   0xc   : > { %v627_v1 = vsel %vm625_vm0, %v571_v0, 0  ;;  %472 = vst [vmem:[#allocation2 + $0x18] sm:$0xff] %v3982_v26  ;;  %v3929_v42 = vld [vmem:[%s6273_s5 + $0x38] sm:$0xff]  ;;  %v3928_v43 = vld [vmem:[%s6273_s5 + $0x30] sm:$0xff]  ;;  %v4219_v44 = vld [vmem:[%s6270_s2] ss:$0 sm:$0xff] }
   0xd   : > { %636 = vmatpush.bf16.msra.mxu0 %v627_v1  ;;  %s6390_s30 = smov (!%p458_p3, %s3757_s30), 1  ;;  %3940 = vmatpush.bf16.msra.mxu1 %v627_v1  ;;  %473 = vst [vmem:[#allocation2 + $0x20] sm:$0xff] %v3982_v26  ;;  %v3927_v45 = vld [vmem:[%s6273_s5 + $0x28] sm:$0xff]  ;;  %v3926_v48 = vld [vmem:[%s6273_s5 + $0x20] sm:$0xff]  ;;  %v3925_v54 = vld [vmem:[%s6273_s5 + $0x18] sm:$0xff]  ;;  %vm2029_vm2 = vcmask 261120  }
   0xe   : > { %3941 = vmatpush.bf16.msra.mxu2 %v627_v1  ;;  %3942 = vmatpush.bf16.msra.mxu3 %v627_v1  ;;  %s3920_s17 = sshll.u32 %s6390_s30, 8  ;;  %469 = vst [vmem:[#allocation2] sm:$0xff] %v3982_v26  ;;  %v3924_v57 = vld [vmem:[%s6273_s5 + $0x10] sm:$0xff]  ;;  %v815_v58 = vld [vmem:[%s6271_s3] sm:$0x7]  ;;  %v3923_v0 = vld [vmem:[%s6273_s5 + $0x8] sm:$0xff] }
   0xf   : > { %s4076_s20 = scalar_lea.vmem %s6268_s0, %s3920_s17  ;;  %470 = vst [vmem:[#allocation2 + $0x8] sm:$0xff] %v3982_v26  ;;  %v4247_v60 = vperm.slane %v815_v58, 0  ;;  %v4249_v63 = vperm.slane %v815_v58, 1 }
  0x10   : > { %v523_v2 = vld [vmem:[%s4076_s20] sm:$0xff]  ;;  %v524_v3 = vld [vmem:[%s4076_s20 + $0x8] sm:$0xff]  ;;  %v525_v5 = vld [vmem:[%s4076_s20 + $0x10] sm:$0xff]  ;;  %471 = vst [vmem:[#allocation2 + $0x10] sm:$0x3] %v3982_v26 }
  0x11   : > { %v4080_v4 = vpack.c.bf16 %v524_v3, %v523_v2  ;;  %v526_v6 = vld [vmem:[%s4076_s20 + $0x18] sm:$0xff]  ;;  %v533_v8 = vld [vmem:[%s4076_s20 + $0x50] sm:$0xff]  ;;  %v527_v11 = vld [vmem:[%s4076_s20 + $0x20] sm:$0xff]  ;;  %474 = vst [vmem:[#allocation2 + $0x28] sm:$0x3] %v3982_v26  ;;  %1876 = vmatpush.bf16.msrb.mxu1 %v3929_v42  ;;  %v851_v1 = vmul.f32 0.0, %v4247_v60 }
  0x12   : > { %v4086_v7 = vpack.c.bf16 %v526_v6, %v525_v5  ;;  %v534_v9 = vld [vmem:[%s4076_s20 + $0x58] sm:$0xff]  ;;  %v528_v12 = vld [vmem:[%s4076_s20 + $0x28] sm:$0xff]  ;;  %v535_v14 = vld [vmem:[%s4076_s20 + $0x60] sm:$0xff]  ;;  %475 = vst [vmem:[#allocation2 + $0x30] sm:$0xff] %v3982_v26  ;;  %v4256_v5 = vperm.slane %v815_v58, 2 }
  0x13   : > { %3766 = vmatmul.msk.bf16.vlgmr.msra.gmra.mxu0 %vm576_vm1, %v4080_v4  ;;  %v4092_v10 = vpack.c.bf16 %v534_v9, %v533_v8  ;;  %v4098_v13 = vpack.c.bf16 %v528_v12, %v527_v11  ;;  %v536_v15 = vld [vmem:[%s4076_s20 + $0x68] sm:$0xff]  ;;  %v537_v16 = vld [vmem:[%s4076_s20 + $0x70] sm:$0xff]  ;;  %v538_v18 = vld [vmem:[%s4076_s20 + $0x78] sm:$0xff]  ;;  %476 = vst [vmem:[#allocation2 + $0x38] sm:$0xff] %v3982_v26 }
  0x14   : > { %v4105_v17 = vpack.c.bf16 %v536_v15, %v535_v14  ;;  %v4108_v19 = vpack.c.bf16 %v538_v18, %v537_v16  ;;  %v529_v20 = vld [vmem:[%s4076_s20 + $0x30] sm:$0xff]  ;;  %v530_v21 = vld [vmem:[%s4076_s20 + $0x38] sm:$0xff]  ;;  %v539_v23 = vld [vmem:[%s4076_s20 + $0x80] sm:$0xff]  ;;  %477 = vst [vmem:[#allocation2 + $0x40] sm:$0x3] %v3982_v26 }
  0x15   : > { %6327 = vst [vmem:[#allocation3_spill] sm:$0xff] %v4092_v10  ;;  %3771 = vmatmul.msk.bf16.vlgmr.msra.gmra.mxu1 %vm576_vm1, %v4092_v10  ;;  %v4116_v22 = vpack.c.bf16 %v530_v21, %v529_v20  ;;  %v540_v24 = vld [vmem:[%s4076_s20 + $0x88] sm:$0xff]  ;;  %v531_v27 = vld [vmem:[%s4076_s20 + $0x40] sm:$0xff]  ;;  %v541_v30 = vld [vmem:[%s4076_s20 + $0x90] sm:$0xff] }
  0x16   : > { %6328 = vst [vmem:[#allocation4_spill] sm:$0xff] %v4098_v13  ;;  %3773 = vmatmul.msk.bf16.vlgmr.msra.gmra.mxu2 %vm576_vm1, %v4108_v19  ;;  %v4122_v25 = vpack.c.bf16 %v540_v24, %v539_v23  ;;  %v532_v28 = vld [vmem:[%s4076_s20 + $0x48] sm:$0xff]  ;;  %v542_v31 = vld [vmem:[%s4076_s20 + $0x98] sm:$0xff]  ;;  %v543_v33 = vld [vmem:[%s4076_s20 + $0xa0] sm:$0xff]  ;;  %1877 = vmatpush.bf16.msrb.mxu1 %v3928_v43 }
  0x17   : > { %6329 = vst [vmem:[#allocation5_spill] sm:$0xff] %v4105_v17  ;;  %v4135_v29 = vpack.c.bf16 %v532_v28, %v531_v27  ;;  %v4145_v32 = vpack.c.bf16 %v542_v31, %v541_v30  ;;  %v544_v34 = vld [vmem:[%s4076_s20 + $0xa8] sm:$0xff]  ;;  %v545_v36 = vld [vmem:[%s4076_s20 + $0xb0] sm:$0xff]  ;;  %v546_v37 = vld [vmem:[%s4076_s20 + $0xb8] sm:$0xff] }
  0x18   : > { %6330 = vst [vmem:[#allocation6_spill] sm:$0xff] %v4108_v19  ;;  %v4167_v35 = vpack.c.bf16 %v544_v34, %v543_v33  ;;  %v4192_v38 = vpack.c.bf16 %v546_v37, %v545_v36  ;;  %v547_v39 = vld [vmem:[%s4076_s20 + $0xc0] sm:$0xff]  ;;  %v548_v40 = vld [vmem:[%s4076_s20 + $0xc8] sm:$0xff]  ;;  %v549_v50 = vld [vmem:[%s4076_s20 + $0xd0] sm:$0xff] }
  0x19   : > { %6331 = vst [vmem:[#allocation7_spill] sm:$0xff] %v4116_v22  ;;  %v4206_v41 = vpack.c.bf16 %v548_v40, %v547_v39  ;;  %v550_v51 = vld [vmem:[%s4076_s20 + $0xd8] sm:$0xff]  ;;  %v915_v61 = vld [vmem:[#allocation2 + $0x1] sm:$0xff]  ;;  %v916_v2 = vld [vmem:[#allocation2 + $0x9] sm:$0xff] }
  0x1a   : > { %6332 = vst [vmem:[#allocation8_spill] sm:$0xff] %v4122_v25  ;;  %3777 = vmatmul.msk.bf16.vlgmr.msra.gmra.mxu3 %vm576_vm1, %v4192_v38  ;;  %1878 = vmatpush.bf16.msrb.mxu1 %v3927_v45  ;;  %v4232_v53 = vpack.c.bf16 %v550_v51, %v549_v50  ;;  %v948_v3 = vmul.f32 %v4249_v63, %v915_v61  ;;  %v1012_v8 = vld [vmem:[#allocation2 + $0x2] sm:$0xff]  ;;  %v1013_v18 = vld [vmem:[#allocation2 + $0xa] sm:$0xff] }
  0x1b   : > { %6333 = vst [vmem:[#allocation9_spill] sm:$0xff] %v4135_v29  ;;  %v3922_v11 = vld [vmem:[%s6273_s5] sm:$0xff]  ;;  %v949_v14 = vmul.f32 %v4249_v63, %v916_v2  ;;  %v1045_v20 = vmul.f32 %v4256_v5, %v1012_v8  ;;  %v552_v27 = vld [vmem:[%s4076_s20 + $0xe8] sm:$0xff]  ;;  %v1046_v33 = vmul.f32 %v4256_v5, %v1013_v18 }
  0x1c   : > { %478 = vst [vmem:[#allocation2 + $0x48] sm:$0xff] %v3982_v26  ;;  %v816_v12 = vld [vmem:[%s6271_s3 + $0x4] sm:$0x7]  ;;  %v980_v16 = vadd.f32 %v948_v3, %v851_v1  ;;  %v817_v45 = vld [vmem:[%s6271_s3 + $0x8] sm:$0x7] }
  0x1d   : > { %479 = vst [vmem:[#allocation2 + $0x50] sm:$0xff] %v3982_v26  ;;  %v4267_v21 = vperm.slane %v816_v12, 0  ;;  %v981_v31 = vadd.f32 %v949_v14, %v851_v1  ;;  %v4278_v42 = vperm.slane %v816_v12, 1  ;;  %v4280_v43 = vperm.slane %v816_v12, 2 }
  0x1e   : > { %6334 = vst [vmem:[#allocation10_spill] sm:$0xff] %v4145_v32  ;;  %1879 = vmatpush.bf16.msrb.mxu1 %v3926_v48  ;;  %v1077_v34 = vadd.f32 %v1045_v20, %v980_v16  ;;  %v4286_v51 = vperm.slane %v817_v45, 0 }
  0x1f   : > { %480 = vst [vmem:[#allocation2 + $0x58] sm:$0x3] %v3982_v26 }
  0x20   : > { %481 = vst [vmem:[#allocation2 + $0x60] sm:$0xff] %v3982_v26 }
  0x21   : > { %482 = vst [vmem:[#allocation2 + $0x68] sm:$0xff] %v3982_v26 }
  0x22   : > { %483 = vst [vmem:[#allocation2 + $0x70] sm:$0x3] %v3982_v26  ;;  %1880 = vmatpush.bf16.msrb.mxu1 %v3925_v54 }
  0x23   : > { %3767 = vmatmul.msk.bf16.gmra.mxu0 %vm576_vm1, %v4086_v7  ;;  %484 = vst [vmem:[#allocation2 + $0x78] sm:$0xff] %v3982_v26 }
  0x24   : > { %485 = vst [vmem:[#allocation2 + $0x80] sm:$0xff] %v3982_v26 }
  0x25   : > { %3772 = vmatmul.msk.bf16.gmra.mxu1 %vm576_vm1, %v4105_v17  ;;  %486 = vst [vmem:[#allocation2 + $0x88] sm:$0x3] %v3982_v26 }
  0x26   : > { %3774 = vmatmul.msk.bf16.gmra.mxu2 %vm576_vm1, %v4122_v25  ;;  %487 = vst [vmem:[#allocation2 + $0x90] sm:$0xff] %v3982_v26  ;;  %1881 = vmatpush.bf16.msrb.mxu1 %v3924_v57 }
  0x27   : > { %488 = vst [vmem:[#allocation2 + $0x98] sm:$0xff] %v3982_v26 }
  0x28   : > { %489 = vst [vmem:[#allocation2 + $0xa0] sm:$0x3] %v3982_v26 }
  0x29   : > { %490 = vst [vmem:[#allocation2 + $0xa8] sm:$0xff] %v3982_v26 }
  0x2a   : > { %491 = vst [vmem:[#allocation2 + $0xb0] sm:$0xff] %v3982_v26  ;;  %3778 = vmatmul.msk.bf16.gmra.mxu3 %vm576_vm1, %v4206_v41  ;;  %1882 = vmatpush.bf16.msrb.mxu1 %v3923_v0 }
  0x2b   : > { %492 = vst [vmem:[#allocation2 + $0xb8] sm:$0x3] %v3982_v26 }
  0x2c   : > { %493 = vst [vmem:[#allocation2 + $0xc0] sm:$0xff] %v3982_v26 }
  0x2d   : > { %494 = vst [vmem:[#allocation2 + $0xc8] sm:$0xff] %v3982_v26 }
  0x2e   : > { %495 = vst [vmem:[#allocation2 + $0xd0] sm:$0x3] %v3982_v26  ;;  %1883 = vmatpush.bf16.msrb.mxu1 %v3922_v11 }
  0x2f   : > { %6335 = vst [vmem:[#allocation11_spill] sm:$0xff] %v4167_v35 }
  0x30   : > { %496 = vst [vmem:[#allocation2 + $0xd8] sm:$0xff] %v3982_v26 }
  0x31   : > { %497 = vst [vmem:[#allocation2 + $0xe0] sm:$0xff] %v3982_v26 }
  0x32   : > { %498 = vst [vmem:[#allocation2 + $0xe8] sm:$0x3] %v3982_v26 }
  0x33   : > { %3768 = vmatmul.msk.bf16.gmra.mxu0 %vm576_vm1, %v4098_v13  ;;  %499 = vst [vmem:[#allocation2 + $0xf0] sm:$0xff] %v3982_v26 }
  0x34   : > { %500 = vst [vmem:[#allocation2 + $0xf8] sm:$0xff] %v3982_v26 }
  0x35   : > { %501 = vst [vmem:[#allocation2 + $0x100] sm:$0x3] %v3982_v26 }
  0x36   : > { %3775 = vmatmul.msk.bf16.gmra.mxu2 %vm576_vm1, %v4145_v32  ;;  %502 = vst [vmem:[#allocation2 + $0x108] sm:$0xff] %v3982_v26 }
  0x37   : > { %503 = vst [vmem:[#allocation2 + $0x110] sm:$0xff] %v3982_v26 }
  0x38   : > { %504 = vst [vmem:[#allocation2 + $0x118] sm:$0x3] %v3982_v26 }
  0x39   : > { %505 = vst [vmem:[#allocation2 + $0x120] sm:$0xff] %v3982_v26 }
  0x3a   : > { %506 = vst [vmem:[#allocation2 + $0x128] sm:$0xff] %v3982_v26  ;;  %3779 = vmatmul.msk.bf16.gmra.mxu3 %vm576_vm1, %v4232_v53 }
  0x3b   : > { %507 = vst [vmem:[#allocation2 + $0x130] sm:$0x3] %v3982_v26 }
  0x3c   : > { %508 = vst [vmem:[#allocation2 + $0x138] sm:$0xff] %v3982_v26 }
  0x3d   : > { %509 = vst [vmem:[#allocation2 + $0x140] sm:$0xff] %v3982_v26 }
  0x3e   : > { %510 = vst [vmem:[#allocation2 + $0x148] sm:$0x3] %v3982_v26 }
  0x3f   : > { %511 = vst [vmem:[#allocation2 + $0x150] sm:$0xff] %v3982_v26 }
  0x40   : > { %512 = vst [vmem:[#allocation2 + $0x158] sm:$0xff] %v3982_v26 }
  0x41   : > { %513 = vst [vmem:[#allocation2 + $0x160] sm:$0x3] %v3982_v26 }
  0x42   : > { %514 = vst [vmem:[#allocation2 + $0x168] sm:$0xff] %v3982_v26 }
  0x43   : > { %3769 = vmatmul.msk.bf16.gmra.mxu0 %vm576_vm1, %v4116_v22  ;;  %6336 = vst [vmem:[#allocation12_spill] sm:$0xff] %v4192_v38 }
  0x44   : > { %515 = vst [vmem:[#allocation2 + $0x170] sm:$0xff] %v3982_v26 }
  0x45   : > { %516 = vst [vmem:[#allocation2 + $0x178] sm:$0x3] %v3982_v26 }
  0x46   : > { %3776 = vmatmul.msk.bf16.gmra.mxu2 %vm576_vm1, %v4167_v35  ;;  %517 = vst [vmem:[#allocation2 + $0x180] sm:$0xff] %v3982_v26 }
  0x47   : > { %518 = vst [vmem:[#allocation2 + $0x188] sm:$0xff] %v3982_v26 }
  0x48   : > { %519 = vst [vmem:[#allocation2 + $0x190] sm:$0x3] %v3982_v26 }
  0x49   : > { %520 = vst [vmem:[#allocation2 + $0x198] sm:$0xff] %v3982_v26 }
  0x4a   : > { %521 = vst [vmem:[#allocation2 + $0x1a0] sm:$0xff] %v3982_v26 }
  0x4b   : > { %522 = vst [vmem:[#allocation2 + $0x1a8] sm:$0x3] %v3982_v26  ;;  %v551_v26 = vld [vmem:[%s4076_s20 + $0xe0] sm:$0xff] }
  0x4c   : > { %6337 = vst [vmem:[#allocation13_spill] sm:$0xff] %v4206_v41  ;;  %v4271_v30 = vpack.c.bf16 %v552_v27, %v551_v26 }
  0x4d   : > { %6338 = vst [vmem:[#allocation14_spill] sm:$0xff] %v4232_v53 }
  0x4e   : > { %6339 = vst [vmem:[#allocation15_spill] sm:$0xff] %v4271_v30  ;;  %3780 = vmatmul.msk.bf16.gmra.mxu3 %vm576_vm1, %v4271_v30 }
  0x4f   : > { %6340 = vst [vmem:[#allocation16_spill] sm:$0xff] %v4278_v42 }
  0x50   : > { %6341 = vst [vmem:[#allocation17_spill] sm:$0xff] %v4280_v43 }
  0x51   : > { %6342 = vst [vmem:[#allocation18_spill] sm:$0xff] %v4286_v51 }
  0x53   : > { %3770 = vmatmul.msk.bf16.gmra.mxu0 %vm576_vm1, %v4135_v29 }
  0x90   : > { %v638_v46 = vpop.f32.mrf.mxu0 }
  0x91   : > { %v639_v47 = vadd.f32 %v4219_v44, %v638_v46  ;;  %v1078_v46 = vadd.f32 %v1046_v33, %v981_v31 }
  0x92   : > { %v663_v24 = vpop.f32.mrf.mxu1 }
  0x93   : > { %v718_v49 = vmax.f32 %v639_v47, 0.0  ;;  %v664_v2 = vadd.f32 %v4219_v44, %v663_v24 }
  0x95   : > { %v4230_v52 = vmin.f32 %v718_v49, 6.0  ;;  %v728_v18 = vmax.f32 %v664_v2, 0.0 }
  0x97   : > { %783 = vst [vmem:[#allocation2 + $0x19] sm:$0xff] %v4230_v52  ;;  %v950_v11 = vmul.f32 %v4249_v63, %v4230_v52  ;;  %v4308_v33 = vmin.f32 %v728_v18, 6.0 }
  0x98   : > { %v640_v55 = vpop.f32.mrf.mxu0 }
  0x99   : > { %v641_v56 = vadd.f32 %v4219_v44, %v640_v55  ;;  %793 = vst [vmem:[#allocation2 + $0x91] sm:$0xff] %v4308_v33 }
  0x9a   : > { %v665_v54 = vpop.f32.mrf.mxu1 }
  0x9b   : > { %v719_v59 = vmax.f32 %v641_v56, 0.0  ;;  %v1239_v56 = vmul.f32 %v4278_v42, %v4230_v52 }
  0x9d   : > { %v751_v62 = vmin.f32 %v719_v59, 6.0 }
  0x9e   : > { %v1109_v23 = vld [vmem:[#allocation2 + $0x18] sm:$0xff] }
  0x9f   : > { %784 = vst [vmem:[#allocation2 + $0x21] sm:$0xff] %v751_v62  ;;  %v1142_v37 = vmul.f32 %v4267_v21, %v1109_v23  ;;  %v853_v3 = vmul.f32 %v1109_v23, %v4247_v60  ;;  %v1240_v8 = vmul.f32 %v4278_v42, %v751_v62  ;;  %v951_v12 = vmul.f32 %v4249_v63, %v751_v62 }
  0xa0   : > { %v643_v6 = vpop.f32.mrf.mxu0  ;;  %v4306_v23 = vperm.slane %v817_v45, 2 }
  0xa1   : > { %v644_v9 = vadd.f32 %v4219_v44, %v643_v6  ;;  %v1174_v50 = vadd.f32 %v1142_v37, %v1077_v34  ;;  %v982_v52 = vadd.f32 %v950_v11, %v853_v3 }
  0xa2   : > { %6344 = vst [vmem:[#allocation20_spill] sm:$0xff] %v4306_v23 }
  0xa3   : > { %v720_v15 = vmax.f32 %v644_v9, 0.0  ;;  %v1271_v0 = vadd.f32 %v1239_v56, %v1174_v50  ;;  %v4299_v9 = vperm.slane %v817_v45, 1 }
  0xa5   : > { %v752_v28 = vmin.f32 %v720_v15, 6.0  ;;  %6343 = vst [vmem:[#allocation19_spill] sm:$0xff] %v4299_v9 }
  0xa6   : > { %v1110_v36 = vld [vmem:[#allocation2 + $0x20] sm:$0xff] }
  0xa7   : > { %785 = vst [vmem:[#allocation2 + $0x31] sm:$0xff] %v752_v28  ;;  %v1143_v47 = vmul.f32 %v4267_v21, %v1110_v36  ;;  %v1303_v48 = vld [vmem:[#allocation2 + $0x1a] sm:$0xff]  ;;  %v854_v61 = vmul.f32 %v1110_v36, %v4247_v60  ;;  %v1304_v15 = vld [vmem:[#allocation2 + $0x22] sm:$0xff]  ;;  %v1531_v34 = vmul.f32 %v4299_v9, %v752_v28  ;;  %v1241_v45 = vmul.f32 %v4278_v42, %v752_v28 }
  0xa8   : > { %v645_v39 = vpop.f32.mrf.mxu0  ;;  %v1336_v57 = vmul.f32 %v4280_v43, %v1303_v48  ;;  %v1047_v20 = vmul.f32 %v1303_v48, %v4256_v5  ;;  %v1337_v62 = vmul.f32 %v4280_v43, %v1304_v15  ;;  %v1048_v36 = vmul.f32 %v1304_v15, %v4256_v5  ;;  %v554_v48 = vld [vmem:[%s4076_s20 + $0xf8] sm:$0xff] }
  0xa9   : > { %v646_v40 = vadd.f32 %v4219_v44, %v645_v39  ;;  %v1175_v58 = vadd.f32 %v1143_v47, %v1078_v46  ;;  %v983_v26 = vadd.f32 %v951_v12, %v854_v61  ;;  %v668_v46 = vpop.f32.mrf.mxu1  ;;  %v553_v47 = vld [vmem:[%s4076_s20 + $0xf0] sm:$0xff]  ;;  %s3921_s20 = sshll.u32 %s6390_s30, 9 }
  0xaa   : > { %v1368_v16 = vadd.f32 %v1336_v57, %v1271_v0  ;;  %v4323_v0 = vpack.c.bf16 %v554_v48, %v553_v47  ;;  %s5044_s19 = scalar_lea.vmem %s6282_s14, %s3921_s20 }
  0xab   : > { %v721_v49 = vmax.f32 %v646_v40, 0.0  ;;  %v1272_v24 = vadd.f32 %v1240_v8, %v1175_v58  ;;  %v1079_v40 = vadd.f32 %v1047_v20, %v982_v52  ;;  %v1080_v61 = vadd.f32 %v1048_v36, %v983_v26 }
  0xac   : > { %6345 = vst [vmem:[#allocation21_spill] sm:$0xff] %v4323_v0  ;;  %v666_v8 = vadd.f32 %v4219_v44, %v665_v54  ;;  %3781 = vmatmul.msk.bf16.gmra.mxu3 %vm576_vm1, %v4323_v0 }
  0xad   : > { %v4288_v55 = vmin.f32 %v721_v49, 6.0  ;;  %v952_v49 = vmul.f32 %v4249_v63, %v752_v28  ;;  %v1369_v50 = vadd.f32 %v1337_v62, %v1272_v24  ;;  %v4331_v28 = vld [vmem:[%s6272_s4] ss:$0 sm:$0xff] }
  0xae   : > { %v1401_v59 = vld [vmem:[#allocation2 + $0x30] sm:$0xff]  ;;  %v729_v26 = vmax.f32 %v666_v8, 0.0 }
  0xaf   : > { %786 = vst [vmem:[#allocation2 + $0x39] sm:$0xff] %v4288_v55  ;;  %v1434_v1 = vmul.f32 %v4286_v51, %v1401_v59  ;;  %v1144_v37 = vmul.f32 %v1401_v59, %v4267_v21  ;;  %v1532_v57 = vmul.f32 %v4299_v9, %v4288_v55  ;;  %v1242_v15 = vmul.f32 %v4278_v42, %v4288_v55 }
  0xb0   : > { %v648_v6 = vpop.f32.mrf.mxu0  ;;  %v953_v47 = vmul.f32 %v4249_v63, %v4288_v55 }
  0xb1   : > { %v649_v14 = vadd.f32 %v4219_v44, %v648_v6  ;;  %v1466_v31 = vadd.f32 %v1434_v1, %v1368_v16  ;;  %v855_v16 = vmul.f32 %v1401_v59, %v4247_v60 }
  0xb3   : > { %v722_v27 = vmax.f32 %v649_v14, 0.0  ;;  %v1563_v2 = vadd.f32 %v1531_v34, %v1466_v31  ;;  %v1176_v14 = vadd.f32 %v1144_v37, %v1079_v40  ;;  %v4345_v37 = vmin.f32 %v729_v26, 6.0 }
  0xb4   : > { %v984_v48 = vadd.f32 %v952_v49, %v855_v16 }
  0xb5   : > { %v4314_v39 = vmin.f32 %v722_v27, 6.0  ;;  %v1273_v40 = vadd.f32 %v1241_v45, %v1176_v14  ;;  %794 = vst [vmem:[#allocation2 + $0x99] sm:$0xff] %v4345_v37 }
  0xb6   : > { %v1402_v56 = vld [vmem:[#allocation2 + $0x38] sm:$0xff] }
  0xb7   : > { %v1595_v58 = vld [vmem:[#allocation2 + $0x32] sm:$0xff]  ;;  %787 = vst [vmem:[#allocation2 + $0x49] sm:$0xff] %v4314_v39  ;;  %v1435_v1 = vmul.f32 %v4286_v51, %v1402_v56  ;;  %v1596_v3 = vld [vmem:[#allocation2 + $0x3a] sm:$0xff]  ;;  %v1145_v12 = vmul.f32 %v1402_v56, %v4267_v21 }
  0xb8   : > { %v1628_v6 = vmul.f32 %v4306_v23, %v1595_v58  ;;  %v650_v11 = vpop.f32.mrf.mxu0  ;;  %v1629_v27 = vmul.f32 %v4306_v23, %v1596_v3  ;;  %v1338_v31 = vmul.f32 %v1595_v58, %v4280_v43  ;;  %v1049_v52 = vmul.f32 %v1595_v58, %v4256_v5 }
  0xb9   : > { %v651_v18 = vadd.f32 %v4219_v44, %v650_v11  ;;  %v1467_v20 = vadd.f32 %v1435_v1, %v1369_v50  ;;  %v1177_v54 = vadd.f32 %v1145_v12, %v1080_v61  ;;  %v1339_v59 = vmul.f32 %v1596_v3, %v4280_v43  ;;  %v673_v61 = vpop.f32.mrf.mxu2 }
  0xba   : > { %v1660_v24 = vadd.f32 %v1628_v6, %v1563_v2  ;;  %v1533_v58 = vmul.f32 %v4299_v9, %v4314_v39  ;;  %v856_v2 = vmul.f32 %v1402_v56, %v4247_v60  ;;  %v1370_v8 = vadd.f32 %v1338_v31, %v1273_v40 }
  0xbb   : > { %v723_v62 = vmax.f32 %v651_v18, 0.0  ;;  %v1564_v34 = vadd.f32 %v1532_v57, %v1467_v20  ;;  %v670_v57 = vpop.f32.mrf.mxu1  ;;  %v1274_v6 = vadd.f32 %v1242_v15, %v1177_v54  ;;  %v669_v11 = vadd.f32 %v4219_v44, %v668_v46 }
  0xbc   : > { %v1696_v36 = vadd.f32 %v4331_v28, %v1660_v24  ;;  %v671_v12 = vadd.f32 %v4219_v44, %v670_v57  ;;  %v1081_v16 = vadd.f32 %v1049_v52, %v984_v48  ;;  %v674_v24 = vadd.f32 %v4219_v44, %v673_v61 }
  0xbd   : > { %v755_v50 = vmin.f32 %v723_v62, 6.0  ;;  %v1661_v1 = vadd.f32 %v1629_v27, %v1564_v34  ;;  %v730_v20 = vmax.f32 %v669_v11, 0.0  ;;  %v985_v54 = vadd.f32 %v953_v47, %v856_v2 }
  0xbe   : > { %v1403_v45 = vld [vmem:[#allocation2 + $0x48] sm:$0xff]  ;;  %v1728_v49 = vmax.f32 %v1696_v36, 0.0  ;;  %v731_v26 = vmax.f32 %v671_v12, 0.0  ;;  %v732_v62 = vmax.f32 %v674_v24, 0.0  ;;  %v1371_v61 = vadd.f32 %v1339_v59, %v1274_v6 }
  0xbf   : > { %788 = vst [vmem:[#allocation2 + $0x51] sm:$0xff] %v755_v50  ;;  %v1697_v55 = vadd.f32 %v4331_v28, %v1661_v1  ;;  %v1436_v14 = vmul.f32 %v4286_v51, %v1403_v45  ;;  %v1146_v56 = vmul.f32 %v1403_v45, %v4267_v21  ;;  %v4361_v31 = vmin.f32 %v730_v20, 6.0 }
  0xc0   : > { %v653_v18 = vpop.f32.mrf.mxu0  ;;  %v4363_v34 = vmin.f32 %v731_v26, 6.0  ;;  %v1760_v52 = vmin.f32 %v1728_v49, 6.0  ;;  %v1050_v1 = vmul.f32 %v1596_v3, %v4256_v5  ;;  %v4367_v57 = vmin.f32 %v732_v62, 6.0 }
  0xc1   : > { %v654_v15 = vadd.f32 %v4219_v44, %v653_v18  ;;  %v1729_v27 = vmax.f32 %v1697_v55, 0.0  ;;  %v1468_v46 = vadd.f32 %v1436_v14, %v1370_v8  ;;  %6346 = vst [vmem:[#allocation22_spill] sm:$0xff] %v4361_v31  ;;  %v1178_v36 = vadd.f32 %v1146_v56, %v1081_v16  ;;  %v675_v24 = vpop.f32.mrf.mxu2 }
  0xc2   : > { %6347 = vst [vmem:[#allocation23_spill] sm:$0xff] %v4363_v34  ;;  %v1243_v8 = vmul.f32 %v4278_v42, %v4314_v39  ;;  %v857_v47 = vmul.f32 %v1403_v45, %v4247_v60  ;;  %v1534_v12 = vmul.f32 %v4299_v9, %v755_v50  ;;  %v1082_v55 = vadd.f32 %v1050_v1, %v985_v54 }
  0xc3   : > { %v724_v40 = vmax.f32 %v654_v15, 0.0  ;;  %v1761_v48 = vmin.f32 %v1729_v27, 6.0  ;;  %795 = vst [vmem:[#allocation2 + $0xa9] sm:$0xff] %v4361_v31  ;;  %v1565_v14 = vadd.f32 %v1533_v58, %v1468_v46  ;;  %v1244_v6 = vmul.f32 %v4278_v42, %v755_v50 }
  0xc4   : > { %6348 = vst [vmem:[#allocation24_spill] sm:$0xff] %v4367_v57  ;;  %v1275_v16 = vadd.f32 %v1243_v8, %v1178_v36  ;;  %v954_v18 = vmul.f32 %v4249_v63, %v4314_v39  ;;  %v955_v26 = vmul.f32 %v4249_v63, %v755_v50  ;;  %v676_v36 = vadd.f32 %v4219_v44, %v675_v24 }
  0xc5   : > { %v756_v2 = vmin.f32 %v724_v40, 6.0  ;;  %v1792_v11 = vpack.c.bf16 %v1761_v48, %v1760_v52  ;;  %796 = vst [vmem:[#allocation2 + $0xb1] sm:$0xff] %v4363_v34 }
  0xc6   : > { %v1404_v49 = vld [vmem:[#allocation2 + $0x50] sm:$0xff]  ;;  %797 = vst [vmem:[#allocation2 + $0xc1] sm:$0xff] %v4367_v57  ;;  %v986_v46 = vadd.f32 %v954_v18, %v857_v47  ;;  %v733_v0 = vmax.f32 %v676_v36, 0.0 }
  0xc7   : > { %v1597_v3 = vld [vmem:[#allocation2 + $0x4a] sm:$0xff]  ;;  %v1598_v59 = vld [vmem:[#allocation2 + $0x52] sm:$0xff]  ;;  %789 = vst [vmem:[#allocation2 + $0x61] sm:$0xff] %v756_v2  ;;  %1884 = vmatmul.bf16.vlgmr.msrb.gmra.mxu1 %v1792_v11  ;;  %v1437_v45 = vmul.f32 %v4286_v51, %v1404_v49  ;;  %v1147_v15 = vmul.f32 %v1404_v49, %v4267_v21  ;;  %v858_v48 = vmul.f32 %v1404_v49, %v4247_v60 }
  0xc8   : > { %v1630_v20 = vmul.f32 %v4306_v23, %v1597_v3  ;;  %v655_v58 = vpop.f32.mrf.mxu0  ;;  %v1631_v56 = vmul.f32 %v4306_v23, %v1598_v59  ;;  %v1340_v27 = vmul.f32 %v1597_v3, %v4280_v43  ;;  %v1341_v52 = vmul.f32 %v1598_v59, %v4280_v43 }
  0xc9   : > { %v656_v54 = vadd.f32 %v4219_v44, %v655_v58  ;;  %v1469_v39 = vadd.f32 %v1437_v45, %v1371_v61  ;;  %v1179_v40 = vadd.f32 %v1147_v15, %v1082_v55  ;;  %v1051_v50 = vmul.f32 %v1597_v3, %v4256_v5 }
  0xca   : > { %v1662_v62 = vadd.f32 %v1630_v20, %v1565_v14  ;;  %v1535_v47 = vmul.f32 %v4299_v9, %v756_v2  ;;  %v987_v18 = vadd.f32 %v955_v26, %v858_v48  ;;  %v1052_v61 = vmul.f32 %v1598_v59, %v4256_v5 }
  0xcb   : > { %v725_v1 = vmax.f32 %v656_v54, 0.0  ;;  %v1566_v8 = vadd.f32 %v1534_v12, %v1469_v39  ;;  %v1276_v30 = vadd.f32 %v1244_v6, %v1179_v40  ;;  %v4392_v20 = vmin.f32 %v733_v0, 6.0  ;;  %v678_v54 = vpop.f32.mrf.mxu2 }
  0xcc   : > { %v1698_v11 = vadd.f32 %v4331_v28, %v1662_v62  ;;  %v1372_v24 = vadd.f32 %v1340_v27, %v1275_v16  ;;  %v1083_v3 = vadd.f32 %v1051_v50, %v986_v46  ;;  %v1084_v15 = vadd.f32 %v1052_v61, %v987_v18  ;;  %v1409_v18 = vld [vmem:[#allocation2 + $0x90] sm:$0xff]  ;;  %v4406_v61 = vld [vmem:[#allocation2 + $0x98] sm:$0xff] }
  0xcd   : > { %v757_v14 = vmin.f32 %v725_v1, 6.0  ;;  %v1663_v45 = vadd.f32 %v1631_v56, %v1566_v8  ;;  %6349 = vst [vmem:[#allocation25_spill] sm:$0xff] %v4392_v20  ;;  %v1373_v49 = vadd.f32 %v1341_v52, %v1276_v30  ;;  %v1245_v26 = vmul.f32 %v4278_v42, %v756_v2 }
  0xce   : > { %v1730_v55 = vmax.f32 %v1698_v11, 0.0  ;;  %v1405_v58 = vld [vmem:[#allocation2 + $0x60] sm:$0xff]  ;;  %v956_v59 = vmul.f32 %v4249_v63, %v756_v2  ;;  %798 = vst [vmem:[#allocation2 + $0xc9] sm:$0xff] %v4392_v20  ;;  %v679_v0 = vadd.f32 %v4219_v44, %v678_v54 }
  0xcf   : > { %790 = vst [vmem:[#allocation2 + $0x69] sm:$0xff] %v757_v14  ;;  %v1699_v12 = vadd.f32 %v4331_v28, %v1663_v45  ;;  %v1438_v6 = vmul.f32 %v4286_v51, %v1405_v58  ;;  %v1148_v30 = vmul.f32 %v1405_v58, %v4267_v21  ;;  %v859_v16 = vmul.f32 %v1405_v58, %v4247_v60 }
  0xd0   : > { %v658_v39 = vpop.f32.mrf.mxu0  ;;  %v1762_v56 = vmin.f32 %v1730_v55, 6.0  ;;  %v1536_v36 = vmul.f32 %v4299_v9, %v757_v14  ;;  %v734_v40 = vmax.f32 %v679_v0, 0.0  ;;  %v1246_v2 = vmul.f32 %v4278_v42, %v757_v14 }
  0xd1   : > { %v659_v27 = vadd.f32 %v4219_v44, %v658_v39  ;;  %v1731_v46 = vmax.f32 %v1699_v12, 0.0  ;;  %v1470_v62 = vadd.f32 %v1438_v6, %v1372_v24  ;;  %v1180_v52 = vadd.f32 %v1148_v30, %v1083_v3 }
  0xd2   : > { %v957_v48 = vmul.f32 %v4249_v63, %v757_v14  ;;  %v988_v11 = vadd.f32 %v956_v59, %v859_v16  ;;  %v4408_v45 = vmin.f32 %v734_v40, 6.0  ;;  %v4412_v24 = vmul.f32 %v4299_v9, %v4308_v33 }
  0xd3   : > { %v726_v50 = vmax.f32 %v659_v27, 0.0  ;;  %v1763_v1 = vmin.f32 %v1731_v46, 6.0  ;;  %v1567_v8 = vadd.f32 %v1535_v47, %v1470_v62  ;;  %v1277_v55 = vadd.f32 %v1245_v26, %v1180_v52  ;;  %v680_v46 = vpop.f32.mrf.mxu2  ;;  %v2078_v62 = vld [vmem:[%s6275_s7] sm:$0x3] }
  0xd4   : > { %6350 = vst [vmem:[#allocation26_spill] sm:$0xff] %v4408_v45  ;;  %v4416_v58 = vmul.f32 %v4299_v9, %v4345_v37  ;;  %v4422_v47 = vmul.f32 %v4278_v42, %v4308_v33  ;;  %v4426_v12 = vmul.f32 %v4278_v42, %v4345_v37  ;;  %v4430_v59 = vmul.f32 %v4286_v51, %v1409_v18 }
  0xd5   : > { %v4418_v3 = vmin.f32 %v726_v50, 6.0  ;;  %v1793_v14 = vpack.c.bf16 %v1763_v1, %v1762_v56  ;;  %799 = vst [vmem:[#allocation2 + $0xd9] sm:$0xff] %v4408_v45  ;;  %v4433_v39 = vmul.f32 %v1409_v18, %v4267_v21  ;;  %v4436_v56 = vmul.f32 %v1409_v18, %v4247_v60 }
  0xd6   : > { %v1406_v6 = vld [vmem:[#allocation2 + $0x68] sm:$0xff]  ;;  %v4440_v0 = vmul.f32 %v4406_v61, %v4247_v60  ;;  %v681_v38 = vadd.f32 %v4219_v44, %v680_v46  ;;  %v2233_v25 = vsel %vm625_vm0, %v2078_v62, 0 }
  0xd7   : > { %v1599_v54 = vld [vmem:[#allocation2 + $0x62] sm:$0xff]  ;;  %v1600_v26 = vld [vmem:[#allocation2 + $0x6a] sm:$0xff]  ;;  %791 = vst [vmem:[#allocation2 + $0x79] sm:$0xff] %v4418_v3  ;;  %1889 = vmatmul.bf16.gmra.mxu1 %v1793_v14  ;;  %v1439_v30 = vmul.f32 %v4286_v51, %v1406_v6  ;;  %v1149_v52 = vmul.f32 %v1406_v6, %v4267_v21  ;;  %v1537_v18 = vmul.f32 %v4299_v9, %v4418_v3 }
  0xd8   : > { %v1632_v16 = vmul.f32 %v4306_v23, %v1599_v54  ;;  %v1633_v27 = vmul.f32 %v4306_v23, %v1600_v26  ;;  %v660_v40 = vpop.f32.mrf.mxu0  ;;  %v1342_v50 = vmul.f32 %v1599_v54, %v4280_v43  ;;  %v1343_v1 = vmul.f32 %v1600_v26, %v4280_v43  ;;  %2242 = vmatpush.bf16.msrb.mxu3 %v2233_v25 }
  0xd9   : > { %v661_v14 = vadd.f32 %v4219_v44, %v660_v40  ;;  %v1471_v53 = vadd.f32 %v1439_v30, %v1373_v49  ;;  %v1181_v35 = vadd.f32 %v1149_v52, %v1084_v15  ;;  %v860_v19 = vmul.f32 %v1406_v6, %v4247_v60 }
  0xda   : > { %v1664_v41 = vadd.f32 %v1632_v16, %v1567_v8  ;;  %v1374_v32 = vadd.f32 %v1342_v50, %v1277_v55  ;;  %v735_v22 = vmax.f32 %v681_v38, 0.0  ;;  %v1053_v40 = vmul.f32 %v1599_v54, %v4256_v5  ;;  %v4478_v38 = vld [vmem:[#allocation2 + $0x92] sm:$0xff] }
  0xdb   : > { %v727_v17 = vmax.f32 %v661_v14, 0.0  ;;  %v1568_v10 = vadd.f32 %v1536_v36, %v1471_v53  ;;  %v1278_v45 = vadd.f32 %v1246_v2, %v1181_v35  ;;  %v989_v13 = vadd.f32 %v957_v48, %v860_v19  ;;  %3838 = vmatmul.msk.bf16.vlgmr.msrb.gmra.mxu3 %vm576_vm1, %v4080_v4  ;;  %v4480_v53 = vld [vmem:[#allocation2 + $0x9a] sm:$0xff] }
  0xdc   : > { %v1700_v29 = vadd.f32 %v4331_v28, %v1664_v41  ;;  %v1054_v49 = vmul.f32 %v1600_v26, %v4256_v5  ;;  %v4461_v55 = vmin.f32 %v735_v22, 6.0  ;;  %v1085_v6 = vadd.f32 %v1053_v40, %v988_v11  ;;  %v683_v22 = vpop.f32.mrf.mxu2 }
  0xdd   : > { %v759_v8 = vmin.f32 %v727_v17, 6.0  ;;  %v1665_v30 = vadd.f32 %v1633_v27, %v1568_v10  ;;  %v1375_v16 = vadd.f32 %v1343_v1, %v1278_v45  ;;  %v1247_v41 = vmul.f32 %v4278_v42, %v4418_v3 }
  0xde   : > { %v1732_v15 = vmax.f32 %v1700_v29, 0.0  ;;  %6351 = vst [vmem:[#allocation27_spill] sm:$0xff] %v4461_v55  ;;  %v1407_v46 = vld [vmem:[#allocation2 + $0x78] sm:$0xff]  ;;  %v1086_v62 = vadd.f32 %v1054_v49, %v989_v13  ;;  %v684_v29 = vadd.f32 %v4219_v44, %v683_v22  ;;  %v4476_v4 = vmul.f32 %v4286_v51, %v4406_v61 }
  0xdf   : > { %792 = vst [vmem:[#allocation2 + $0x81] sm:$0xff] %v759_v8  ;;  %v1701_v19 = vadd.f32 %v4331_v28, %v1665_v30  ;;  %v1440_v17 = vmul.f32 %v4286_v51, %v1407_v46  ;;  %v1538_v10 = vmul.f32 %v4299_v9, %v759_v8  ;;  %v1150_v13 = vmul.f32 %v1407_v46, %v4267_v21 }
  0xe0   : > { %v1764_v25 = vmin.f32 %v1732_v15, 6.0  ;;  %800 = vst [vmem:[#allocation2 + $0xe1] sm:$0xff] %v4461_v55  ;;  %v1248_v35 = vmul.f32 %v4278_v42, %v759_v8  ;;  %v4484_v48 = vmul.f32 %v4306_v23, %v4478_v38  ;;  %v4488_v11 = vmul.f32 %v4306_v23, %v4480_v53  ;;  %v4502_v15 = vld [vmem:[#allocation2 + $0xa8] sm:$0xff] }
  0xe1   : > { %v1733_v36 = vmax.f32 %v1701_v19, 0.0  ;;  %v1472_v2 = vadd.f32 %v1440_v17, %v1374_v32  ;;  %v736_v45 = vmax.f32 %v684_v29, 0.0  ;;  %v1182_v54 = vadd.f32 %v1150_v13, %v1085_v6  ;;  %v4518_v6 = vld [vmem:[#allocation2 + $0xaa] sm:$0xff] }
  0xe2   : > { %v861_v26 = vmul.f32 %v1407_v46, %v4247_v60  ;;  %v958_v27 = vmul.f32 %v4249_v63, %v4418_v3  ;;  %v959_v1 = vmul.f32 %v4249_v63, %v759_v8  ;;  %v1153_v32 = vmul.f32 %v4406_v61, %v4267_v21  ;;  %v4504_v46 = vld [vmem:[#allocation2 + $0xb0] sm:$0xff]  ;;  %6354 = vst [vmem:[#allocation30_spill] sm:$0xff] %v4518_v6 }
  0xe3   : > { %v1765_v52 = vmin.f32 %v1733_v36, 6.0  ;;  %v1569_v50 = vadd.f32 %v1537_v18, %v1472_v2  ;;  %v4496_v14 = vmin.f32 %v736_v45, 6.0  ;;  %v1279_v40 = vadd.f32 %v1247_v41, %v1182_v54  ;;  %6353 = vst [vmem:[#allocation29_spill] sm:$0xff] %v4504_v46  ;;  %v4520_v41 = vld [vmem:[#allocation2 + $0xb2] sm:$0xff] }
  0xe4   : > { %v990_v49 = vadd.f32 %v958_v27, %v861_v26  ;;  %v4500_v30 = vmul.f32 %v4478_v38, %v4280_v43  ;;  %v4508_v18 = vmul.f32 %v4480_v53, %v4280_v43  ;;  %v4512_v61 = vmul.f32 %v4286_v51, %v4502_v15  ;;  %6355 = vst [vmem:[#allocation31_spill] sm:$0xff] %v4520_v41  ;;  %v685_v27 = vpop.f32.mrf.mxu2 }
  0xe5   : > { %6352 = vst [vmem:[#allocation28_spill] sm:$0xff] %v4496_v14  ;;  %v1794_v3 = vpack.c.bf16 %v1765_v52, %v1764_v25  ;;  %v4516_v8 = vmul.f32 %v4286_v51, %v4504_v46  ;;  %v4525_v25 = vmul.f32 %v4299_v9, %v4361_v31  ;;  %v4529_v29 = vmul.f32 %v4299_v9, %v4363_v34  ;;  %v3931_v52 = vld [vmem:[%s6276_s8 + $0x8] sm:$0xff] }
  0xe6   : > { %v1408_v19 = vld [vmem:[#allocation2 + $0x80] sm:$0xff]  ;;  %801 = vst [vmem:[#allocation2 + $0xf1] sm:$0xff] %v4496_v14  ;;  %v4533_v13 = vmul.f32 %v4306_v23, %v4518_v6  ;;  %v4537_v36 = vmul.f32 %v4306_v23, %v4520_v41  ;;  %v686_v20 = vadd.f32 %v4219_v44, %v685_v27  ;;  %2149 = vmatpush.bf16.msrb.mxu2 %v3931_v52 }
  0xe7   : > { %v1601_v17 = vld [vmem:[#allocation2 + $0x7a] sm:$0xff]  ;;  %v1602_v22 = vld [vmem:[#allocation2 + $0x82] sm:$0xff]  ;;  %1894 = vmatmul.bf16.gmra.mxu1 %v1794_v3  ;;  %v1441_v2 = vmul.f32 %v4286_v51, %v1408_v19  ;;  %v1151_v26 = vmul.f32 %v1408_v19, %v4267_v21  ;;  %v862_v3 = vmul.f32 %v1408_v19, %v4247_v60 }
  0xe8   : > { %6356 = vst [vmem:[#allocation32_spill] sm:$0xff] %v4533_v13  ;;  %v1634_v45 = vmul.f32 %v4306_v23, %v1601_v17  ;;  %v1635_v54 = vmul.f32 %v4306_v23, %v1602_v22  ;;  %v1344_v14 = vmul.f32 %v1601_v17, %v4280_v43  ;;  %v1345_v55 = vmul.f32 %v1602_v22, %v4280_v43 }
  0xe9   : > { %6357 = vst [vmem:[#allocation33_spill] sm:$0xff] %v4537_v36  ;;  %v1473_v9 = vadd.f32 %v1441_v2, %v1375_v16  ;;  %v1183_v51 = vadd.f32 %v1151_v26, %v1086_v62  ;;  %v1055_v23 = vmul.f32 %v1601_v17, %v4256_v5  ;;  %v737_v6 = vmax.f32 %v686_v20, 0.0  ;;  %v6362_v26 = vld [vmem:[#allocation23_spill] sm:$0xff] }
  0xea   : > { %v1666_v57 = vadd.f32 %v1634_v45, %v1569_v50  ;;  %v1376_v41 = vadd.f32 %v1344_v14, %v1279_v40  ;;  %v991_v36 = vadd.f32 %v959_v1, %v862_v3  ;;  %v1056_v34 = vmul.f32 %v1602_v22, %v4256_v5  ;;  %v6359_v22 = vld [vmem:[#allocation22_spill] sm:$0xff]  ;;  %v4601_v3 = vld [vmem:[#allocation2 + $0xc0] sm:$0xff] }
  0xeb   : > { %v1570_v13 = vadd.f32 %v1538_v10, %v1473_v9  ;;  %v1280_v31 = vadd.f32 %v1248_v35, %v1183_v51  ;;  %v1087_v43 = vadd.f32 %v1055_v23, %v990_v49  ;;  %v4554_v46 = vmin.f32 %v737_v6, 6.0  ;;  %3839 = vmatmul.msk.bf16.gmra.mxu3 %vm576_vm1, %v4086_v7 }
  0xec   : > { %v1702_v42 = vadd.f32 %v4331_v28, %v1666_v57  ;;  %v1474_v27 = vadd.f32 %v4430_v59, %v1376_v41  ;;  %v1088_v16 = vadd.f32 %v1056_v34, %v991_v36  ;;  %v960_v62 = vmul.f32 %v4249_v63, %v4308_v33  ;;  %v688_v59 = vpop.f32.mrf.mxu2 }
  0xed   : > { %v1667_v50 = vadd.f32 %v1635_v54, %v1570_v13  ;;  %v1377_v14 = vadd.f32 %v1345_v55, %v1280_v31  ;;  %v1184_v20 = vadd.f32 %v4433_v39, %v1087_v43  ;;  %802 = vst [vmem:[#allocation2 + $0xf9] sm:$0xff] %v4554_v46  ;;  %v961_v51 = vmul.f32 %v4249_v63, %v4345_v37 }
  0xee   : > { %v1734_v19 = vmax.f32 %v1702_v42, 0.0  ;;  %v1571_v1 = vadd.f32 %v4412_v24, %v1474_v27  ;;  %v1185_v9 = vadd.f32 %v1153_v32, %v1088_v16  ;;  %v992_v23 = vadd.f32 %v960_v62, %v4436_v56 }
  0xef   : > { %v1703_v34 = vadd.f32 %v4331_v28, %v1667_v50  ;;  %v1475_v33 = vadd.f32 %v4476_v4, %v1377_v14  ;;  %v1281_v42 = vadd.f32 %v4422_v47, %v1184_v20  ;;  %v689_v31 = vadd.f32 %v4219_v44, %v688_v59  ;;  %v6361_v2 = vld [vmem:[#allocation32_spill] sm:$0xff]  ;;  %v6364_v50 = vld [vmem:[#allocation17_spill] sm:$0xff]  ;;  %v693_v59 = vpop.f32.mrf.mxu3 }
  0xf0   : > { %v1766_v57 = vmin.f32 %v1734_v19, 6.0  ;;  %v1668_v43 = vadd.f32 %v4484_v48, %v1571_v1  ;;  %v1282_v24 = vadd.f32 %v4426_v12, %v1185_v9  ;;  %v993_v37 = vadd.f32 %v961_v51, %v4440_v0  ;;  %v6363_v27 = vld [vmem:[#allocation33_spill] sm:$0xff]  ;;  %v6365_v19 = vld [vmem:[#allocation30_spill] sm:$0xff]  ;;  %v6366_v51 = vld [vmem:[#allocation31_spill] sm:$0xff] }
  0xf1   : > { %v1735_v39 = vmax.f32 %v1703_v34, 0.0  ;;  %v1572_v56 = vadd.f32 %v4416_v58, %v1475_v33  ;;  %v1378_v55 = vadd.f32 %v4500_v30, %v1281_v42  ;;  %v1057_v10 = vmul.f32 %v4478_v38, %v4256_v5  ;;  %v4612_v34 = vld [vmem:[#allocation2 + $0xc8] sm:$0xff] }
  0xf2   : > { %v1704_v47 = vadd.f32 %v4331_v28, %v1668_v43  ;;  %v738_v35 = vmax.f32 %v689_v31, 0.0  ;;  %v1379_v7 = vadd.f32 %v4508_v18, %v1282_v24  ;;  %v1058_v4 = vmul.f32 %v4480_v53, %v4256_v5  ;;  %v6367_v43 = vld [vmem:[#allocation18_spill] sm:$0xff] }
  0xf3   : > { %v1767_v48 = vmin.f32 %v1735_v39, 6.0  ;;  %v1669_v12 = vadd.f32 %v4488_v11, %v1572_v56  ;;  %v1476_v0 = vadd.f32 %v4512_v61, %v1378_v55  ;;  %v1089_v32 = vadd.f32 %v1057_v10, %v992_v23  ;;  %v6358_v61 = vld [vmem:[#allocation29_spill] sm:$0xff] }
  0xf4   : > { %v1736_v58 = vmax.f32 %v1704_v47, 0.0  ;;  %v4583_v40 = vmin.f32 %v738_v35, 6.0  ;;  %v1477_v49 = vadd.f32 %v4516_v8, %v1379_v7  ;;  %v1090_v38 = vadd.f32 %v1058_v4, %v993_v37  ;;  %v6360_v8 = vld [vmem:[#allocation16_spill] sm:$0xff]  ;;  %v4620_v55 = vld [vmem:[#allocation2 + $0xc2] sm:$0xff]  ;;  %v4626_v4 = vld [vmem:[#allocation2 + $0xca] sm:$0xff] }
  0xf5   : > { %v1795_v30 = vpack.c.bf16 %v1767_v48, %v1766_v57  ;;  %v1705_v6 = vadd.f32 %v4331_v28, %v1669_v12  ;;  %v1573_v18 = vadd.f32 %v4525_v25, %v1476_v0  ;;  %v1154_v53 = vmul.f32 %v4502_v15, %v4267_v21  ;;  %v690_v25 = vpop.f32.mrf.mxu2 }
  0xf6   : > { %v4590_v41 = vmin.f32 %v1736_v58, 6.0  ;;  %803 = vst [vmem:[#allocation2 + $0x109] sm:$0xff] %v4583_v40  ;;  %v1574_v11 = vadd.f32 %v4529_v29, %v1477_v49  ;;  %v1155_v17 = vmul.f32 %v6358_v61, %v4267_v21  ;;  %v1251_v13 = vmul.f32 %v6360_v8, %v6359_v22  ;;  %v6369_v58 = vld [vmem:[#allocation19_spill] sm:$0xff] }
  0xf7   : > { %1899 = vmatmul.bf16.gmra.mxu1 %v1795_v30  ;;  %v1737_v36 = vmax.f32 %v1705_v6, 0.0  ;;  %v1670_v45 = vadd.f32 %v6361_v2, %v1573_v18  ;;  %v1186_v54 = vadd.f32 %v1154_v53, %v1089_v32  ;;  %v1252_v52 = vmul.f32 %v6360_v8, %v6362_v26  ;;  %v6368_v32 = vld [vmem:[#allocation24_spill] sm:$0xff]  ;;  %v6370_v30 = vld [vmem:[#allocation25_spill] sm:$0xff] }
  0xf8   : > { %v1671_v16 = vadd.f32 %v6363_v27, %v1574_v11  ;;  %v691_v29 = vadd.f32 %v4219_v44, %v690_v25  ;;  %v1187_v62 = vadd.f32 %v1155_v17, %v1090_v38  ;;  %v1348_v14 = vmul.f32 %v6365_v19, %v6364_v50  ;;  %v6371_v18 = vld [vmem:[#allocation20_spill] sm:$0xff] }
  0xf9   : > { %v4607_v20 = vmin.f32 %v1737_v36, 6.0  ;;  %v1706_v1 = vadd.f32 %v4331_v28, %v1670_v45  ;;  %v1283_v9 = vadd.f32 %v1251_v13, %v1186_v54  ;;  %v1349_v23 = vmul.f32 %v6366_v51, %v6364_v50  ;;  %v6372_v36 = vld [vmem:[#allocation4_spill] sm:$0xff] }
  0xfa   : > { %v1707_v57 = vadd.f32 %v4331_v28, %v1671_v16  ;;  %v739_v33 = vmax.f32 %v691_v29, 0.0  ;;  %v1284_v42 = vadd.f32 %v1252_v52, %v1187_v62  ;;  %v1446_v31 = vmul.f32 %v6367_v43, %v4601_v3 }
  0xfb   : > { %v1796_v24 = vpack.c.bf16 %v4607_v20, %v4590_v41  ;;  %v1738_v37 = vmax.f32 %v1706_v1, 0.0  ;;  %v694_v39 = vadd.f32 %v4219_v44, %v693_v59  ;;  %v1380_v56 = vadd.f32 %v1348_v14, %v1283_v9  ;;  %3840 = vmatmul.msk.bf16.gmra.mxu3 %vm576_vm1, %v6372_v36  ;;  %v4664_v14 = vld [vmem:[#allocation2 + $0xd8] sm:$0xff]  ;;  %v4666_v20 = vld [vmem:[#allocation2 + $0xe0] sm:$0xff] }
  0xfc   : > { %v1739_v10 = vmax.f32 %v1707_v57, 0.0  ;;  %v4622_v47 = vmin.f32 %v739_v33, 6.0  ;;  %v1381_v35 = vadd.f32 %v1349_v23, %v1284_v42  ;;  %v1447_v7 = vmul.f32 %v6367_v43, %v4612_v34  ;;  %v4678_v59 = vld [vmem:[#allocation2 + $0xda] sm:$0xff]  ;;  %v4680_v42 = vld [vmem:[#allocation2 + $0xe2] sm:$0xff] }
  0xfd   : > { %v4628_v48 = vmin.f32 %v1738_v37, 6.0  ;;  %v740_v12 = vmax.f32 %v694_v39, 0.0  ;;  %v1478_v0 = vadd.f32 %v1446_v31, %v1380_v56  ;;  %v1543_v49 = vmul.f32 %v6369_v58, %v6368_v32 }
  0xfe   : > { %v4632_v44 = vmin.f32 %v1739_v10, 6.0  ;;  %804 = vst [vmem:[#allocation2 + $0x111] sm:$0xff] %v4622_v47  ;;  %v1479_v38 = vadd.f32 %v1447_v7, %v1381_v35  ;;  %v1544_v6 = vmul.f32 %v6369_v58, %v6370_v30  ;;  %v1640_v53 = vmul.f32 %v6371_v18, %v4620_v55  ;;  %v6373_v7 = vld [vmem:[#allocation26_spill] sm:$0xff] }
  0xff   : > { %v4639_v41 = vmin.f32 %v740_v12, 6.0  ;;  %v1575_v11 = vadd.f32 %v1543_v49, %v1478_v0  ;;  %v1641_v17 = vmul.f32 %v6371_v18, %v4626_v4  ;;  %v865_v13 = vmul.f32 %v4502_v15, %v4247_v60  ;;  %v6374_v0 = vld [vmem:[#allocation27_spill] sm:$0xff] }
 0x100   : > { %v1797_v2 = vpack.c.bf16 %v4632_v44, %v4628_v48  ;;  %v1576_v45 = vadd.f32 %v1544_v6, %v1479_v38  ;;  %v866_v25 = vmul.f32 %v6358_v61, %v4247_v60  ;;  %v962_v54 = vmul.f32 %v4249_v63, %v6359_v22  ;;  %v695_v6 = vpop.f32.mrf.mxu3 }
 0x101   : > { %805 = vst [vmem:[#allocation2 + $0x121] sm:$0xff] %v4639_v41  ;;  %v1672_v52 = vadd.f32 %v1640_v53, %v1575_v11  ;;  %v963_v27 = vmul.f32 %v4249_v63, %v6362_v26  ;;  %v1059_v15 = vmul.f32 %v6365_v19, %v4256_v5  ;;  %v1060_v16 = vmul.f32 %v6366_v51, %v4256_v5  ;;  %v3930_v53 = vld [vmem:[%s6276_s8] sm:$0xff] }
 0x102   : > { %v1673_v29 = vadd.f32 %v1641_v17, %v1576_v45  ;;  %v994_v62 = vadd.f32 %v962_v54, %v865_v13  ;;  %v1156_v61 = vmul.f32 %v4601_v3, %v4267_v21  ;;  %v1157_v22 = vmul.f32 %v4612_v34, %v4267_v21  ;;  %2150 = vmatpush.bf16.msrb.mxu2 %v3930_v53 }
 0x103   : > { %v1708_v26 = vadd.f32 %v4331_v28, %v1672_v52  ;;  %v995_v1 = vadd.f32 %v963_v27, %v866_v25  ;;  %v1253_v19 = vmul.f32 %v6360_v8, %v6368_v32  ;;  %v1254_v9 = vmul.f32 %v6360_v8, %v6370_v30 }
 0x104   : > { %v1709_v51 = vadd.f32 %v4331_v28, %v1673_v29  ;;  %v1091_v23 = vadd.f32 %v1059_v15, %v994_v62  ;;  %v1350_v57 = vmul.f32 %v4620_v55, %v6364_v50  ;;  %v1351_v33 = vmul.f32 %v4626_v4, %v6364_v50 }
 0x105   : > { %v1740_v31 = vmax.f32 %v1708_v26, 0.0  ;;  %v1092_v37 = vadd.f32 %v1060_v16, %v995_v1  ;;  %v1448_v39 = vmul.f32 %v6367_v43, %v4664_v14  ;;  %v1449_v56 = vmul.f32 %v6367_v43, %v4666_v20 }
 0x106   : > { %v1741_v10 = vmax.f32 %v1709_v51, 0.0  ;;  %v1188_v35 = vadd.f32 %v1156_v61, %v1091_v23  ;;  %v1545_v12 = vmul.f32 %v6369_v58, %v6373_v7  ;;  %v1546_v49 = vmul.f32 %v6369_v58, %v6374_v0  ;;  %v4727_v51 = vld [vmem:[#allocation2 + $0xf0] sm:$0xff] }
 0x107   : > { %1904 = vmatmul.bf16.gmra.mxu1 %v1796_v24  ;;  %v4690_v38 = vmin.f32 %v1740_v31, 6.0  ;;  %v1189_v11 = vadd.f32 %v1157_v22, %v1092_v37  ;;  %v1642_v17 = vmul.f32 %v6371_v18, %v4678_v59  ;;  %v1643_v13 = vmul.f32 %v6371_v18, %v4680_v42  ;;  %v4704_v24 = vld [vmem:[%s6270_s2] ss:$0 sm:$0xff]  ;;  %v4731_v31 = vld [vmem:[#allocation2 + $0xf8] sm:$0xff] }
 0x108   : > { %v4699_v36 = vmin.f32 %v1741_v10, 6.0  ;;  %v696_v45 = vadd.f32 %v4704_v24, %v695_v6  ;;  %v1285_v25 = vadd.f32 %v1253_v19, %v1188_v35  ;;  %v867_v54 = vmul.f32 %v4601_v3, %v4247_v60 }
 0x109   : > { %v1286_v52 = vadd.f32 %v1254_v9, %v1189_v11  ;;  %v868_v27 = vmul.f32 %v4612_v34, %v4247_v60  ;;  %v964_v15 = vmul.f32 %v4249_v63, %v6368_v32  ;;  %v965_v16 = vmul.f32 %v4249_v63, %v6370_v30 }
 0x10a   : > { %v1798_v29 = vpack.c.bf16 %v4699_v36, %v4690_v38  ;;  %v741_v62 = vmax.f32 %v696_v45, 0.0  ;;  %v1382_v61 = vadd.f32 %v1350_v57, %v1285_v25  ;;  %v1061_v22 = vmul.f32 %v4620_v55, %v4256_v5  ;;  %v4742_v45 = vld [vmem:[#allocation2 + $0xf2] sm:$0xff]  ;;  %v4744_v25 = vld [vmem:[#allocation2 + $0xfa] sm:$0xff] }
 0x10b   : > { %v1383_v3 = vadd.f32 %v1351_v33, %v1286_v52  ;;  %v996_v26 = vadd.f32 %v964_v15, %v867_v54  ;;  %v997_v1 = vadd.f32 %v965_v16, %v868_v27  ;;  %v1062_v34 = vmul.f32 %v4626_v4, %v4256_v5  ;;  %v6376_v15 = vld [vmem:[#allocation28_spill] sm:$0xff] }
 0x10c   : > { %v4721_v19 = vmin.f32 %v741_v62, 6.0  ;;  %v1480_v32 = vadd.f32 %v1448_v39, %v1382_v61  ;;  %v1158_v30 = vmul.f32 %v4664_v14, %v4267_v21  ;;  %v1159_v9 = vmul.f32 %v4666_v20, %v4267_v21 }
 0x10d   : > { %v1481_v23 = vadd.f32 %v1449_v56, %v1383_v3  ;;  %v1093_v57 = vadd.f32 %v1061_v22, %v996_v26  ;;  %v1094_v55 = vadd.f32 %v1062_v34, %v997_v1  ;;  %v1255_v33 = vmul.f32 %v6360_v8, %v6373_v7  ;;  %v698_v56 = vpop.f32.mrf.mxu3 }
 0x10e   : > { %806 = vst [vmem:[#allocation2 + $0x129] sm:$0xff] %v4721_v19  ;;  %v1577_v4 = vadd.f32 %v1545_v12, %v1480_v32  ;;  %v1256_v37 = vmul.f32 %v6360_v8, %v6374_v0  ;;  %v1352_v39 = vmul.f32 %v4678_v59, %v6364_v50  ;;  %v1353_v10 = vmul.f32 %v4680_v42, %v6364_v50  ;;  %v6375_v12 = vld [vmem:[#allocation7_spill] sm:$0xff] }
 0x10f   : > { %v1578_v35 = vadd.f32 %v1546_v49, %v1481_v23  ;;  %v1190_v6 = vadd.f32 %v1158_v30, %v1093_v57  ;;  %v1191_v53 = vadd.f32 %v1159_v9, %v1094_v55  ;;  %v1450_v11 = vmul.f32 %v6367_v43, %v4727_v51  ;;  %3841 = vmatmul.msk.bf16.gmra.mxu3 %vm576_vm1, %v6375_v12 }
 0x110   : > { %v699_v54 = vadd.f32 %v4704_v24, %v698_v56  ;;  %v1674_v52 = vadd.f32 %v1642_v17, %v1577_v4  ;;  %v1451_v27 = vmul.f32 %v6367_v43, %v4731_v31  ;;  %v1547_v49 = vmul.f32 %v6369_v58, %v6376_v15 }
 0x111   : > { %v1675_v16 = vadd.f32 %v1643_v13, %v1578_v35  ;;  %v1287_v62 = vadd.f32 %v1255_v33, %v1190_v6  ;;  %v1288_v61 = vadd.f32 %v1256_v37, %v1191_v53  ;;  %v1548_v22 = vmul.f32 %v6369_v58, %v4554_v46 }
 0x112   : > { %v742_v3 = vmax.f32 %v699_v54, 0.0  ;;  %v1710_v26 = vadd.f32 %v4331_v28, %v1674_v52  ;;  %v1644_v1 = vmul.f32 %v6371_v18, %v4742_v45  ;;  %v1645_v17 = vmul.f32 %v6371_v18, %v4744_v25  ;;  %v4790_v52 = vld [vmem:[#allocation2 + $0x108] sm:$0xff] }
 0x113   : > { %v1711_v34 = vadd.f32 %v4331_v28, %v1675_v16  ;;  %v1384_v32 = vadd.f32 %v1352_v39, %v1287_v62  ;;  %v1385_v30 = vadd.f32 %v1353_v10, %v1288_v61  ;;  %v869_v13 = vmul.f32 %v4664_v14, %v4247_v60  ;;  %v4796_v61 = vld [vmem:[#allocation2 + $0x110] sm:$0xff] }
 0x114   : > { %v4763_v9 = vmin.f32 %v742_v3, 6.0  ;;  %v1742_v23 = vmax.f32 %v1710_v26, 0.0  ;;  %v870_v57 = vmul.f32 %v4666_v20, %v4247_v60  ;;  %v966_v55 = vmul.f32 %v4249_v63, %v6373_v7 }
 0x115   : > { %v1743_v33 = vmax.f32 %v1711_v34, 0.0  ;;  %v1482_v4 = vadd.f32 %v1450_v11, %v1384_v32  ;;  %v1483_v37 = vadd.f32 %v1451_v27, %v1385_v30  ;;  %v967_v56 = vmul.f32 %v4249_v63, %v6374_v0  ;;  %v700_v35 = vpop.f32.mrf.mxu3 }
 0x116   : > { %807 = vst [vmem:[#allocation2 + $0x139] sm:$0xff] %v4763_v9  ;;  %v4772_v39 = vmin.f32 %v1742_v23, 6.0  ;;  %v998_v14 = vadd.f32 %v966_v55, %v869_v13  ;;  %v1063_v10 = vmul.f32 %v4678_v59, %v4256_v5  ;;  %v1064_v20 = vmul.f32 %v4680_v42, %v4256_v5  ;;  %v4810_v23 = vld [vmem:[#allocation2 + $0x112] sm:$0xff] }
 0x117   : > { %1909 = vmatmul.bf16.gmra.mxu1 %v1797_v2  ;;  %v4781_v7 = vmin.f32 %v1743_v33, 6.0  ;;  %v1579_v6 = vadd.f32 %v1547_v49, %v1482_v4  ;;  %v1580_v0 = vadd.f32 %v1548_v22, %v1483_v37  ;;  %v999_v53 = vadd.f32 %v967_v56, %v870_v57 }
 0x118   : > { %v701_v11 = vadd.f32 %v4704_v24, %v700_v35  ;;  %v1095_v12 = vadd.f32 %v1063_v10, %v998_v14  ;;  %v1160_v54 = vmul.f32 %v4727_v51, %v4267_v21  ;;  %v1161_v59 = vmul.f32 %v4731_v31, %v4267_v21 }
 0x119   : > { %v1799_v42 = vpack.c.bf16 %v4781_v7, %v4772_v39  ;;  %v1676_v48 = vadd.f32 %v1644_v1, %v1579_v6  ;;  %v1677_v44 = vadd.f32 %v1645_v17, %v1580_v0  ;;  %v1096_v2 = vadd.f32 %v1064_v20, %v999_v53  ;;  %v4802_v17 = vld [vmem:[#allocation2 + $0x10a] sm:$0xff]  ;;  %v6377_v53 = vld [vmem:[#allocation9_spill] sm:$0xff] }
 0x11a   : > { %v743_v27 = vmax.f32 %v701_v11, 0.0  ;;  %v1192_v49 = vadd.f32 %v1160_v54, %v1095_v12  ;;  %v1257_v16 = vmul.f32 %v6360_v8, %v6376_v15  ;;  %v1258_v62 = vmul.f32 %v6360_v8, %v4554_v46 }
 0x11b   : > { %v1712_v22 = vadd.f32 %v4331_v28, %v1676_v48  ;;  %v1713_v3 = vadd.f32 %v4331_v28, %v1677_v44  ;;  %v1193_v26 = vadd.f32 %v1161_v59, %v1096_v2  ;;  %v1354_v1 = vmul.f32 %v4742_v45, %v6364_v50 }
 0x11c   : > { %v4804_v34 = vmin.f32 %v743_v27, 6.0  ;;  %v1289_v32 = vadd.f32 %v1257_v16, %v1192_v49  ;;  %v1355_v30 = vmul.f32 %v4744_v25, %v6364_v50  ;;  %v1452_v13 = vmul.f32 %v6367_v43, %v4790_v52 }
 0x11d   : > { %v1744_v57 = vmax.f32 %v1712_v22, 0.0  ;;  %v1745_v55 = vmax.f32 %v1713_v3, 0.0  ;;  %v1290_v28 = vadd.f32 %v1258_v62, %v1193_v26  ;;  %v1453_v33 = vmul.f32 %v6367_v43, %v4796_v61  ;;  %v703_v10 = vpop.f32.mrf.mxu3 }
 0x11e   : > { %808 = vst [vmem:[#allocation2 + $0x141] sm:$0xff] %v4804_v34  ;;  %v1386_v4 = vadd.f32 %v1354_v1, %v1289_v32  ;;  %v1549_v37 = vmul.f32 %v6369_v58, %v4583_v40  ;;  %v1550_v56 = vmul.f32 %v6369_v58, %v4622_v47  ;;  %v1646_v14 = vmul.f32 %v6371_v18, %v4802_v17 }
 0x11f   : > { %v4821_v20 = vmin.f32 %v1744_v57, 6.0  ;;  %v4823_v35 = vmin.f32 %v1745_v55, 6.0  ;;  %v1387_v6 = vadd.f32 %v1355_v30, %v1290_v28  ;;  %v1647_v0 = vmul.f32 %v6371_v18, %v4810_v23  ;;  %3842 = vmatmul.msk.bf16.gmra.mxu3 %vm576_vm1, %v6377_v53  ;;  %v4852_v30 = vld [vmem:[#allocation2 + $0x120] sm:$0xff]  ;;  %v4856_v55 = vld [vmem:[#allocation2 + $0x128] sm:$0xff] }
 0x120   : > { %v704_v11 = vadd.f32 %v4704_v24, %v703_v10  ;;  %v1484_v12 = vadd.f32 %v1452_v13, %v1386_v4  ;;  %v871_v54 = vmul.f32 %v4727_v51, %v4247_v60  ;;  %v872_v59 = vmul.f32 %v4731_v31, %v4247_v60  ;;  %v4862_v28 = vld [vmem:[%s6272_s4] ss:$0 sm:$0xff]  ;;  %v4877_v53 = vld [vmem:[#allocation2 + $0x12a] sm:$0xff] }
 0x121   : > { %v1800_v48 = vpack.c.bf16 %v4823_v35, %v4821_v20  ;;  %v1485_v44 = vadd.f32 %v1453_v33, %v1387_v6  ;;  %v968_v2 = vmul.f32 %v4249_v63, %v6376_v15  ;;  %v969_v27 = vmul.f32 %v4249_v63, %v4554_v46 }
 0x122   : > { %v744_v49 = vmax.f32 %v704_v11, 0.0  ;;  %v1581_v16 = vadd.f32 %v1549_v37, %v1484_v12  ;;  %v1065_v62 = vmul.f32 %v4742_v45, %v4256_v5  ;;  %v1066_v51 = vmul.f32 %v4744_v25, %v4256_v5 }
 0x123   : > { %v1582_v22 = vadd.f32 %v1550_v56, %v1485_v44  ;;  %v1000_v31 = vadd.f32 %v968_v2, %v871_v54  ;;  %v1001_v3 = vadd.f32 %v969_v27, %v872_v59  ;;  %v1162_v26 = vmul.f32 %v4790_v52, %v4267_v21  ;;  %v4869_v56 = vld [vmem:[#allocation2 + $0x122] sm:$0xff] }
 0x124   : > { %v4846_v1 = vmin.f32 %v744_v49, 6.0  ;;  %v1678_v15 = vadd.f32 %v1646_v14, %v1581_v16  ;;  %v1163_v46 = vmul.f32 %v4796_v61, %v4267_v21  ;;  %v1259_v32 = vmul.f32 %v6360_v8, %v4583_v40 }
 0x125   : > { %v1679_v45 = vadd.f32 %v1647_v0, %v1582_v22  ;;  %v1097_v13 = vadd.f32 %v1065_v62, %v1000_v31  ;;  %v1098_v25 = vadd.f32 %v1066_v51, %v1001_v3  ;;  %v1260_v57 = vmul.f32 %v6360_v8, %v4622_v47  ;;  %v705_v62 = vpop.f32.mrf.mxu3 }
 0x126   : > { %809 = vst [vmem:[#allocation2 + $0x151] sm:$0xff] %v4846_v1  ;;  %v1714_v33 = vadd.f32 %v4862_v28, %v1678_v15  ;;  %v1356_v4 = vmul.f32 %v4802_v17, %v6364_v50  ;;  %v1357_v37 = vmul.f32 %v4810_v23, %v6364_v50  ;;  %v1454_v0 = vmul.f32 %v6367_v43, %v4852_v30 }
 0x127   : > { %1914 = vmatmul.bf16.gmra.mxu1 %v1798_v29  ;;  %v1715_v14 = vadd.f32 %v4862_v28, %v1679_v45  ;;  %v1194_v10 = vadd.f32 %v1162_v26, %v1097_v13  ;;  %v1195_v6 = vadd.f32 %v1163_v46, %v1098_v25  ;;  %v1455_v12 = vmul.f32 %v6367_v43, %v4856_v55 }
 0x128   : > { %v1746_v11 = vmax.f32 %v1714_v33, 0.0  ;;  %v1551_v54 = vmul.f32 %v6369_v58, %v4639_v41  ;;  %v1552_v38 = vmul.f32 %v6369_v58, %v4721_v19  ;;  %v1648_v44 = vmul.f32 %v6371_v18, %v4869_v56 }
 0x129   : > { %v1747_v36 = vmax.f32 %v1715_v14, 0.0  ;;  %v1291_v29 = vadd.f32 %v1259_v32, %v1194_v10  ;;  %v1292_v59 = vadd.f32 %v1260_v57, %v1195_v6  ;;  %v1649_v27 = vmul.f32 %v6371_v18, %v4877_v53  ;;  %v4916_v14 = vld [vmem:[#allocation2 + $0x140] sm:$0xff]  ;;  %v6378_v10 = vld [vmem:[#allocation3_spill] sm:$0xff] }
 0x12a   : > { %v4887_v2 = vmin.f32 %v1746_v11, 6.0  ;;  %v873_v49 = vmul.f32 %v4790_v52, %v4247_v60  ;;  %v874_v16 = vmul.f32 %v4796_v61, %v4247_v60  ;;  %v970_v3 = vmul.f32 %v4249_v63, %v4583_v40 }
 0x12b   : > { %v4895_v51 = vmin.f32 %v1747_v36, 6.0  ;;  %v1388_v22 = vadd.f32 %v1356_v4, %v1291_v29  ;;  %v1389_v31 = vadd.f32 %v1357_v37, %v1292_v59  ;;  %v706_v26 = vadd.f32 %v4704_v24, %v705_v62  ;;  %v4914_v37 = vld [vmem:[#allocation2 + $0x138] sm:$0xff] }
 0x12c   : > { %v971_v15 = vmul.f32 %v4249_v63, %v4622_v47  ;;  %v1067_v46 = vmul.f32 %v4802_v17, %v4256_v5  ;;  %v1068_v52 = vmul.f32 %v4810_v23, %v4256_v5  ;;  %v1002_v13 = vadd.f32 %v970_v3, %v873_v49  ;;  %v4928_v59 = vld [vmem:[#allocation2 + $0x13a] sm:$0xff]  ;;  %v4930_v49 = vld [vmem:[#allocation2 + $0x142] sm:$0xff] }
 0x12d   : > { %v1801_v61 = vpack.c.bf16 %v4895_v51, %v4887_v2  ;;  %v1486_v32 = vadd.f32 %v1454_v0, %v1388_v22  ;;  %v1487_v45 = vadd.f32 %v1455_v12, %v1389_v31  ;;  %v745_v25 = vmax.f32 %v706_v26, 0.0 }
 0x12e   : > { %v1003_v57 = vadd.f32 %v971_v15, %v874_v16  ;;  %v1164_v40 = vmul.f32 %v4852_v30, %v4267_v21  ;;  %v1165_v47 = vmul.f32 %v4856_v55, %v4267_v21  ;;  %v1099_v17 = vadd.f32 %v1067_v46, %v1002_v13 }
 0x12f   : > { %v1583_v33 = vadd.f32 %v1551_v54, %v1486_v32  ;;  %v1584_v4 = vadd.f32 %v1552_v38, %v1487_v45  ;;  %v1261_v23 = vmul.f32 %v6360_v8, %v4639_v41  ;;  %3843 = vmatmul.msk.bf16.gmra.mxu3 %vm576_vm1, %v6378_v10  ;;  %v4920_v6 = vmin.f32 %v745_v25, 6.0 }
 0x130   : > { %v1100_v0 = vadd.f32 %v1068_v52, %v1003_v57  ;;  %v1262_v11 = vmul.f32 %v6360_v8, %v4721_v19  ;;  %v1358_v12 = vmul.f32 %v4869_v56, %v6364_v50  ;;  %v1196_v36 = vadd.f32 %v1164_v40, %v1099_v17 }
 0x131   : > { %v1680_v54 = vadd.f32 %v1648_v44, %v1583_v33  ;;  %v1681_v38 = vadd.f32 %v1649_v27, %v1584_v4  ;;  %v1359_v29 = vmul.f32 %v4877_v53, %v6364_v50  ;;  %810 = vst [vmem:[#allocation2 + $0x159] sm:$0xff] %v4920_v6  ;;  %v1456_v62 = vmul.f32 %v6367_v43, %v4914_v37  ;;  %v708_v27 = vpop.f32.mrf.mxu3 }
 0x132   : > { %v1197_v16 = vadd.f32 %v1165_v47, %v1100_v0  ;;  %v1457_v22 = vmul.f32 %v6367_v43, %v4916_v14  ;;  %v1553_v44 = vmul.f32 %v6369_v58, %v4763_v9  ;;  %v1293_v26 = vadd.f32 %v1261_v23, %v1196_v36 }
 0x133   : > { %v1716_v31 = vadd.f32 %v4862_v28, %v1680_v54  ;;  %v1717_v3 = vadd.f32 %v4862_v28, %v1681_v38  ;;  %v1554_v15 = vmul.f32 %v6369_v58, %v4804_v34  ;;  %v709_v46 = vadd.f32 %v4704_v24, %v708_v27 }
 0x134   : > { %v1294_v52 = vadd.f32 %v1262_v11, %v1197_v16  ;;  %v1650_v32 = vmul.f32 %v6371_v18, %v4928_v59  ;;  %v1651_v45 = vmul.f32 %v6371_v18, %v4930_v49  ;;  %v1390_v57 = vadd.f32 %v1358_v12, %v1293_v26 }
 0x135   : > { %v1748_v13 = vmax.f32 %v1716_v31, 0.0  ;;  %v1749_v25 = vmax.f32 %v1717_v3, 0.0  ;;  %v875_v40 = vmul.f32 %v4852_v30, %v4247_v60  ;;  %v746_v47 = vmax.f32 %v709_v46, 0.0 }
 0x136   : > { %v1391_v33 = vadd.f32 %v1359_v29, %v1294_v52  ;;  %v876_v4 = vmul.f32 %v4856_v55, %v4247_v60  ;;  %v972_v17 = vmul.f32 %v4249_v63, %v4639_v41  ;;  %v1488_v0 = vadd.f32 %v1456_v62, %v1390_v57  ;;  %v4986_v52 = vld [vmem:[#allocation2 + $0x150] sm:$0xff] }
 0x137   : > { %1919 = vmatmul.bf16.gmra.mxu1 %v1799_v42  ;;  %v4957_v23 = vmin.f32 %v1748_v13, 6.0  ;;  %v4959_v10 = vmin.f32 %v1749_v25, 6.0  ;;  %v973_v30 = vmul.f32 %v4249_v63, %v4721_v19  ;;  %v4963_v11 = vmin.f32 %v746_v47, 6.0 }
 0x138   : > { %v1489_v12 = vadd.f32 %v1457_v22, %v1391_v33  ;;  %v1004_v54 = vadd.f32 %v972_v17, %v875_v40  ;;  %v1069_v55 = vmul.f32 %v4869_v56, %v4256_v5  ;;  %v1585_v39 = vadd.f32 %v1553_v44, %v1488_v0 }
 0x139   : > { %v1802_v41 = vpack.c.bf16 %v4959_v10, %v4957_v23  ;;  %v1005_v7 = vadd.f32 %v973_v30, %v876_v4  ;;  %v1070_v42 = vmul.f32 %v4877_v53, %v4256_v5  ;;  %811 = vst [vmem:[#allocation2 + $0x169] sm:$0xff] %v4963_v11  ;;  %v1166_v19 = vmul.f32 %v4914_v37, %v4267_v21  ;;  %v710_v16 = vpop.f32.mrf.mxu3  ;;  %v6379_v4 = vld [vmem:[#allocation5_spill] sm:$0xff] }
 0x13a   : > { %v1586_v38 = vadd.f32 %v1554_v15, %v1489_v12  ;;  %v1101_v36 = vadd.f32 %v1069_v55, %v1004_v54  ;;  %v1167_v29 = vmul.f32 %v4916_v14, %v4267_v21  ;;  %v1682_v56 = vadd.f32 %v1650_v32, %v1585_v39  ;;  %v4988_v32 = vld [vmem:[#allocation2 + $0x158] sm:$0xff]  ;;  %v5004_v54 = vld [vmem:[%s6274_s6] ss:$0 sm:$0xff] }
 0x13b   : > { %v1102_v62 = vadd.f32 %v1070_v42, %v1005_v7  ;;  %v1263_v22 = vmul.f32 %v6360_v8, %v4763_v9  ;;  %v1264_v44 = vmul.f32 %v6360_v8, %v4804_v34  ;;  %v711_v53 = vadd.f32 %v4704_v24, %v710_v16  ;;  %v5010_v42 = vld [vmem:[#allocation2 + $0x152] sm:$0xff] }
 0x13c   : > { %v1683_v27 = vadd.f32 %v1651_v45, %v1586_v38  ;;  %v1198_v31 = vadd.f32 %v1166_v19, %v1101_v36  ;;  %v1360_v3 = vmul.f32 %v4928_v59, %v6364_v50  ;;  %v1718_v26 = vadd.f32 %v4862_v28, %v1682_v56  ;;  %v5012_v38 = vld [vmem:[#allocation2 + $0x15a] sm:$0xff] }
 0x13d   : > { %v1199_v15 = vadd.f32 %v1167_v29, %v1102_v62  ;;  %v1361_v46 = vmul.f32 %v4930_v49, %v6364_v50  ;;  %v747_v13 = vmax.f32 %v711_v53, 0.0  ;;  %v1458_v45 = vmul.f32 %v6367_v43, %v4986_v52 }
 0x13e   : > { %v1719_v25 = vadd.f32 %v4862_v28, %v1683_v27  ;;  %v1295_v57 = vadd.f32 %v1263_v22, %v1198_v31  ;;  %v1750_v40 = vmax.f32 %v1718_v26, 0.0  ;;  %v1459_v33 = vmul.f32 %v6367_v43, %v4988_v32 }
 0x13f   : > { %v1296_v47 = vadd.f32 %v1264_v44, %v1199_v15  ;;  %3844 = vmatmul.msk.bf16.gmra.mxu3 %vm576_vm1, %v6379_v4  ;;  %v4997_v17 = vmin.f32 %v747_v13, 6.0  ;;  %v1555_v12 = vmul.f32 %v6369_v58, %v4846_v1  ;;  %v1556_v7 = vmul.f32 %v6369_v58, %v4920_v6 }
 0x140   : > { %v1751_v0 = vmax.f32 %v1719_v25, 0.0  ;;  %v1392_v30 = vadd.f32 %v1360_v3, %v1295_v57  ;;  %v5006_v55 = vmin.f32 %v1750_v40, 6.0  ;;  %v1652_v29 = vmul.f32 %v6371_v18, %v5010_v42 }
 0x141   : > { %v1393_v39 = vadd.f32 %v1361_v46, %v1296_v47  ;;  %812 = vst [vmem:[#allocation2 + $0x171] sm:$0xff] %v4997_v17  ;;  %v713_v16 = vpop.f32.mrf.mxu3  ;;  %v1653_v62 = vmul.f32 %v6371_v18, %v5012_v38  ;;  %v877_v31 = vmul.f32 %v4914_v37, %v4247_v60  ;;  %v878_v15 = vmul.f32 %v4916_v14, %v4247_v60 }
 0x142   : > { %v5015_v36 = vmin.f32 %v1751_v0, 6.0  ;;  %v1490_v19 = vadd.f32 %v1458_v45, %v1392_v30  ;;  %v714_v44 = vadd.f32 %v4704_v24, %v713_v16  ;;  %v974_v46 = vmul.f32 %v4249_v63, %v4763_v9 }
 0x143   : > { %v1491_v56 = vadd.f32 %v1459_v33, %v1393_v39  ;;  %v975_v57 = vmul.f32 %v4249_v63, %v4804_v34  ;;  %v1071_v45 = vmul.f32 %v4928_v59, %v4256_v5  ;;  %v1072_v14 = vmul.f32 %v4930_v49, %v4256_v5 }
 0x144   : > { %v1885_v22 = vpop.f32.mrf.mxu1  ;;  %v1803_v53 = vpack.c.bf16 %v5015_v36, %v5006_v55  ;;  %v1587_v27 = vadd.f32 %v1555_v12, %v1490_v19  ;;  %v748_v13 = vmax.f32 %v714_v44, 0.0  ;;  %v1006_v47 = vadd.f32 %v974_v46, %v877_v31 }
 0x145   : > { %v1886_v3 = vadd.f32 %v5004_v54, %v1885_v22  ;;  %v1588_v26 = vadd.f32 %v1556_v7, %v1491_v56  ;;  %v1007_v59 = vadd.f32 %v975_v57, %v878_v15  ;;  %v1168_v20 = vmul.f32 %v4986_v52, %v4267_v21 }
 0x146   : > { %v1684_v25 = vadd.f32 %v1652_v29, %v1587_v27  ;;  %v5046_v9 = vmin.f32 %v748_v13, 6.0  ;;  %v1103_v33 = vadd.f32 %v1071_v45, %v1006_v47  ;;  %v1169_v49 = vmul.f32 %v4988_v32, %v4267_v21 }
 0x147   : > { %v1965_v40 = vmax.f32 %v1886_v3, 0.0  ;;  %1924 = vmatmul.bf16.gmra.mxu1 %v1800_v48  ;;  %v1685_v37 = vadd.f32 %v1653_v62, %v1588_v26  ;;  %v1104_v0 = vadd.f32 %v1072_v14, %v1007_v59  ;;  %v1265_v30 = vmul.f32 %v6360_v8, %v4846_v1  ;;  %v5071_v26 = vld [vmem:[#allocation2 + $0x168] sm:$0xff] }
 0x148   : > { %v1720_v34 = vadd.f32 %v4862_v28, %v1684_v25  ;;  %813 = vst [vmem:[#allocation2 + $0x181] sm:$0xff] %v5046_v9  ;;  %v1266_v12 = vmul.f32 %v6360_v8, %v4920_v6  ;;  %v1200_v19 = vadd.f32 %v1168_v20, %v1103_v33  ;;  %v1362_v22 = vmul.f32 %v5010_v42, %v6364_v50  ;;  %v5073_v15 = vld [vmem:[#allocation2 + $0x170] sm:$0xff] }
 0x149   : > { %v1997_v35 = vmin.f32 %v1965_v40, 6.0  ;;  %v1721_v48 = vadd.f32 %v4862_v28, %v1685_v37  ;;  %v715_v39 = vpop.f32.mrf.mxu3  ;;  %v1201_v62 = vadd.f32 %v1169_v49, %v1104_v0  ;;  %v1363_v3 = vmul.f32 %v5012_v38, %v6364_v50  ;;  %v6380_v37 = vld [vmem:[#allocation6_spill] sm:$0xff]  ;;  %v5091_v49 = vld [vmem:[#allocation2 + $0x172] sm:$0xff] }
 0x14a   : > { %v1752_v4 = vmax.f32 %v1720_v34, 0.0  ;;  %v716_v16 = vadd.f32 %v4704_v24, %v715_v39  ;;  %v1297_v31 = vadd.f32 %v1265_v30, %v1200_v19  ;;  %v1460_v13 = vmul.f32 %v6367_v43, %v5071_v26  ;;  %v5089_v33 = vld [vmem:[#allocation2 + $0x16a] sm:$0xff] }
 0x14b   : > { %2030 = vst.msk [vmem:[%s5044_s19] sm:$0xff] %vm2029_vm2, %v1997_v35  ;;  %v1753_v7 = vmax.f32 %v1721_v48, 0.0  ;;  %v1298_v24 = vadd.f32 %v1266_v12, %v1201_v62  ;;  %v1461_v25 = vmul.f32 %v6367_v43, %v5073_v15  ;;  %v1557_v34 = vmul.f32 %v6369_v58, %v4963_v11 }
 0x14c   : > { %v1887_v29 = vpop.f32.mrf.mxu1  ;;  %v5062_v56 = vmin.f32 %v1752_v4, 6.0  ;;  %v749_v46 = vmax.f32 %v716_v16, 0.0  ;;  %v1394_v40 = vadd.f32 %v1362_v22, %v1297_v31  ;;  %v1558_v59 = vmul.f32 %v6369_v58, %v4997_v17 }
 0x14d   : > { %v1888_v44 = vadd.f32 %v5004_v54, %v1887_v29  ;;  %v5067_v27 = vmin.f32 %v1753_v7, 6.0  ;;  %v1395_v14 = vadd.f32 %v1363_v3, %v1298_v24  ;;  %v1654_v0 = vmul.f32 %v6371_v18, %v5089_v33 }
 0x14e   : > { %v5083_v47 = vmin.f32 %v749_v46, 6.0  ;;  %v1492_v48 = vadd.f32 %v1460_v13, %v1394_v40  ;;  %v1655_v30 = vmul.f32 %v6371_v18, %v5091_v49  ;;  %v879_v29 = vmul.f32 %v4986_v52, %v4247_v60 }
 0x14f   : > { %v1966_v57 = vmax.f32 %v1888_v44, 0.0  ;;  %v1804_v45 = vpack.c.bf16 %v5067_v27, %v5062_v56  ;;  %3845 = vmatmul.msk.bf16.gmra.mxu3 %vm576_vm1, %v6380_v37  ;;  %v1493_v4 = vadd.f32 %v1461_v25, %v1395_v14  ;;  %v880_v16 = vmul.f32 %v4988_v32, %v4247_v60 }
 0x150   : > { %814 = vst [vmem:[#allocation2 + $0x189] sm:$0xff] %v5083_v47  ;;  %v1589_v39 = vadd.f32 %v1557_v34, %v1492_v48  ;;  %v976_v62 = vmul.f32 %v4249_v63, %v4846_v1  ;;  %v1073_v46 = vmul.f32 %v5010_v42, %v4256_v5  ;;  %v1074_v52 = vmul.f32 %v5012_v38, %v4256_v5 }
 0x151   : > { %v1998_v20 = vmin.f32 %v1966_v57, 6.0  ;;  %v1590_v19 = vadd.f32 %v1558_v59, %v1493_v4  ;;  %v1170_v25 = vmul.f32 %v5071_v26, %v4267_v21  ;;  %v1171_v42 = vmul.f32 %v5073_v15, %v4267_v21 }
 0x152   : > { %v1686_v44 = vadd.f32 %v1654_v0, %v1589_v39  ;;  %v1008_v3 = vadd.f32 %v976_v62, %v879_v29  ;;  %v1267_v2 = vmul.f32 %v6360_v8, %v4963_v11  ;;  %v1268_v51 = vmul.f32 %v6360_v8, %v4997_v17  ;;  %v1429_v39 = vld [vmem:[#allocation2 + $0x180] sm:$0xff] }
 0x153   : > { %2031 = vst.msk [vmem:[%s5044_s19 + $0x8] sm:$0xff] %vm2029_vm2, %v1998_v20  ;;  %v2062_v12 = vpack.c.bf16 %v1998_v20, %v1997_v35  ;;  %v977_v35 = vmul.f32 %v4249_v63, %v4920_v6  ;;  %v1687_v31 = vadd.f32 %v1655_v30, %v1590_v19  ;;  %v1364_v4 = vmul.f32 %v5089_v33, %v6364_v50 }
 0x154   : > { %v1890_v7 = vpop.f32.mrf.mxu1  ;;  %v1722_v1 = vadd.f32 %v4862_v28, %v1686_v44  ;;  %v1105_v6 = vadd.f32 %v1073_v46, %v1008_v3  ;;  %v1365_v0 = vmul.f32 %v5091_v49, %v6364_v50  ;;  %v1559_v3 = vmul.f32 %v6369_v58, %v5046_v9 }
 0x155   : > { %v1891_v22 = vadd.f32 %v5004_v54, %v1890_v7  ;;  %3822 = vmatmul.msk.bf16.vlgmr.msrb.gmra.mxu2 %vm2029_vm2, %v2062_v12  ;;  %v1009_v24 = vadd.f32 %v977_v35, %v880_v16  ;;  %v1723_v13 = vadd.f32 %v4862_v28, %v1687_v31  ;;  %v1462_v16 = vmul.f32 %v6367_v43, %v1429_v39  ;;  %v6381_v35 = vld [vmem:[#allocation8_spill] sm:$0xff] }
 0x156   : > { %v1754_v38 = vmax.f32 %v1722_v1, 0.0  ;;  %v1202_v14 = vadd.f32 %v1170_v25, %v1105_v6  ;;  %v1560_v46 = vmul.f32 %v6369_v58, %v5083_v47  ;;  %v1270_v23 = vmul.f32 %v6360_v8, %v5083_v47 }
 0x157   : > { %v1967_v32 = vmax.f32 %v1891_v22, 0.0  ;;  %1929 = vmatmul.bf16.gmra.mxu1 %v1801_v61  ;;  %v1106_v40 = vadd.f32 %v1074_v52, %v1009_v24  ;;  %v1755_v37 = vmax.f32 %v1723_v13, 0.0  ;;  %v1430_v7 = vld [vmem:[#allocation2 + $0x188] sm:$0xff] }
 0x158   : > { %v5129_v61 = vmin.f32 %v1754_v38, 6.0  ;;  %v1299_v48 = vadd.f32 %v1267_v2, %v1202_v14  ;;  %v1463_v62 = vmul.f32 %v6367_v43, %v1430_v7  ;;  %v1623_v1 = vld [vmem:[#allocation2 + $0x182] sm:$0xff]  ;;  %v1624_v24 = vld [vmem:[#allocation2 + $0x18a] sm:$0xff]  ;;  %v881_v14 = vmul.f32 %v5071_v26, %v4247_v60 }
 0x159   : > { %v1999_v57 = vmin.f32 %v1967_v32, 6.0  ;;  %v1203_v34 = vadd.f32 %v1171_v42, %v1106_v40  ;;  %v5131_v20 = vmin.f32 %v1755_v37, 6.0  ;;  %v1656_v6 = vmul.f32 %v6371_v18, %v1623_v1 }
 0x15a   : > { %v1396_v29 = vadd.f32 %v1364_v4, %v1299_v48  ;;  %v1657_v25 = vmul.f32 %v6371_v18, %v1624_v24  ;;  %v882_v2 = vmul.f32 %v5073_v15, %v4247_v60  ;;  %v1075_v26 = vmul.f32 %v5089_v33, %v4256_v5 }
 0x15b   : > { %2032 = vst.msk [vmem:[%s5044_s19 + $0x10] sm:$0xff] %vm2029_vm2, %v1999_v57  ;;  %v1300_v12 = vadd.f32 %v1268_v51, %v1203_v34  ;;  %v1805_v19 = vpack.c.bf16 %v5131_v20, %v5129_v61  ;;  %v978_v51 = vmul.f32 %v4249_v63, %v4963_v11  ;;  %v1076_v60 = vmul.f32 %v5091_v49, %v4256_v5 }
 0x15c   : > { %v1892_v59 = vpop.f32.mrf.mxu1  ;;  %v1494_v31 = vadd.f32 %v1462_v16, %v1396_v29  ;;  %v1269_v49 = vmul.f32 %v6360_v8, %v5046_v9 }
 0x15d   : > { %v1893_v30 = vadd.f32 %v5004_v54, %v1892_v59  ;;  %v1397_v44 = vadd.f32 %v1365_v0, %v1300_v12  ;;  %v1010_v4 = vadd.f32 %v978_v51, %v881_v14  ;;  %v1173_v12 = vmul.f32 %v1430_v7, %v4267_v21 }
 0x15e   : > { %v1591_v13 = vadd.f32 %v1559_v3, %v1494_v31  ;;  %v1367_v7 = vmul.f32 %v1624_v24, %v6364_v50  ;;  %v5188_v3 = vld [vmem:[#allocation2] sm:$0xff] }
 0x15f   : > { %v1968_v22 = vmax.f32 %v1893_v30, 0.0  ;;  %3846 = vmatmul.msk.bf16.gmra.mxu3 %vm576_vm1, %v6381_v35  ;;  %v1495_v32 = vadd.f32 %v1463_v62, %v1397_v44  ;;  %v1464_v8 = vmul.f32 %v5188_v3, %v6367_v43 }
 0x160   : > { %v1688_v37 = vadd.f32 %v1656_v6, %v1591_v13 }
 0x161   : > { %v2000_v52 = vmin.f32 %v1968_v22, 6.0  ;;  %v1592_v38 = vadd.f32 %v1560_v46, %v1495_v32  ;;  %v1529_v32 = vld [vmem:[#allocation2 + $0x1a1] sm:$0xff] }
 0x162   : > { %v1724_v48 = vadd.f32 %v4862_v28, %v1688_v37  ;;  %v1562_v13 = vmul.f32 %v6369_v58, %v1529_v32 }
 0x163   : > { %2033 = vst.msk [vmem:[%s5044_s19 + $0x18] sm:$0xff] %vm2029_vm2, %v2000_v52  ;;  %v2063_v42 = vpack.c.bf16 %v2000_v52, %v1999_v57  ;;  %v1689_v59 = vadd.f32 %v1657_v25, %v1592_v38  ;;  %v979_v57 = vmul.f32 %v4249_v63, %v4997_v17  ;;  %v1107_v63 = vadd.f32 %v1075_v26, %v1010_v4  ;;  %v1528_v52 = vld [vmem:[#allocation2 + $0x199] sm:$0xff]  ;;  %v1626_v38 = vld [vmem:[#allocation2 + $0x1a2] sm:$0xff] }
 0x164   : > { %v1895_v40 = vpop.f32.mrf.mxu1  ;;  %v1756_v30 = vmax.f32 %v1724_v48, 0.0  ;;  %v1172_v17 = vmul.f32 %v1429_v39, %v4267_v21  ;;  %v1366_v21 = vmul.f32 %v1623_v1, %v6364_v50  ;;  %v6382_v1 = vld [vmem:[#allocation10_spill] sm:$0xff]  ;;  %v1561_v24 = vmul.f32 %v6369_v58, %v1528_v52 }
 0x165   : > { %v1896_v34 = vadd.f32 %v5004_v54, %v1895_v40  ;;  %3823 = vmatmul.msk.bf16.gmra.mxu2 %vm2029_vm2, %v2063_v42  ;;  %v1725_v11 = vadd.f32 %v4862_v28, %v1689_v59  ;;  %v1011_v0 = vadd.f32 %v979_v57, %v882_v2  ;;  %v1625_v42 = vld [vmem:[#allocation2 + $0x19a] sm:$0xff]  ;;  %v1659_v37 = vmul.f32 %v6371_v18, %v1626_v38 }
 0x166   : > { %v5173_v62 = vmin.f32 %v1756_v30, 6.0  ;;  %v1204_v5 = vadd.f32 %v1172_v17, %v1107_v63  ;;  %v1658_v43 = vmul.f32 %v6371_v18, %v1625_v42 }
 0x167   : > { %v1969_v15 = vmax.f32 %v1896_v34, 0.0  ;;  %1934 = vmatmul.bf16.gmra.mxu1 %v1802_v41  ;;  %v1757_v33 = vmax.f32 %v1725_v11, 0.0  ;;  %v1108_v16 = vadd.f32 %v1076_v60, %v1011_v0 }
 0x168   : > { %v1301_v22 = vadd.f32 %v1269_v49, %v1204_v5 }
 0x169   : > { %v2001_v29 = vmin.f32 %v1969_v15, 6.0  ;;  %v5181_v10 = vmin.f32 %v1757_v33, 6.0  ;;  %v1205_v41 = vadd.f32 %v1173_v12, %v1108_v16  ;;  %v6383_v12 = vld [vmem:[#allocation11_spill] sm:$0xff] }
 0x16a   : > { %v1398_v31 = vadd.f32 %v1366_v21, %v1301_v22 }
 0x16b   : > { %2034 = vst.msk [vmem:[%s5044_s19 + $0x20] sm:$0xff] %vm2029_vm2, %v2001_v29  ;;  %v1806_v35 = vpack.c.bf16 %v5181_v10, %v5173_v62  ;;  %v1302_v9 = vadd.f32 %v1270_v23, %v1205_v41  ;;  %v6384_v23 = vld [vmem:[#allocation12_spill] sm:$0xff]  ;;  %v3938_v62 = vld [vmem:[%s6280_s12 + $0x30] sm:$0xff] }
 0x16c   : > { %v1897_v39 = vpop.f32.mrf.mxu1  ;;  %v1496_v50 = vadd.f32 %v1464_v8, %v1398_v31 }
 0x16d   : > { %v1898_v44 = vadd.f32 %v5004_v54, %v1897_v39  ;;  %v1399_v46 = vadd.f32 %v1367_v7, %v1302_v9 }
 0x16e   : > { %v1593_v40 = vadd.f32 %v1561_v24, %v1496_v50 }
 0x16f   : > { %v1970_v47 = vmax.f32 %v1898_v44, 0.0  ;;  %3847 = vmatmul.msk.bf16.gmra.mxu3 %vm576_vm1, %v6382_v1  ;;  %v1497_v25 = vadd.f32 %v1464_v8, %v1399_v46 }
 0x170   : > { %v1690_v34 = vadd.f32 %v1658_v43, %v1593_v40 }
 0x171   : > { %v2002_v6 = vmin.f32 %v1970_v47, 6.0  ;;  %v1594_v2 = vadd.f32 %v1562_v13, %v1497_v25  ;;  %v2244_v13 = vpop.f32.mrf.mxu3 }
 0x172   : > { %v1726_v57 = vadd.f32 %v4862_v28, %v1690_v34 }
 0x173   : > { %2035 = vst.msk [vmem:[%s5044_s19 + $0x28] sm:$0xff] %vm2029_vm2, %v2002_v6  ;;  %v2064_v14 = vpack.c.bf16 %v2002_v6, %v2001_v29  ;;  %v1691_v58 = vadd.f32 %v1659_v37, %v1594_v2  ;;  %v3937_v37 = vld [vmem:[%s6280_s12 + $0x28] sm:$0xff] }
 0x174   : > { %v1900_v51 = vpop.f32.mrf.mxu1  ;;  %v1758_v4 = vmax.f32 %v1726_v57, 0.0 }
 0x175   : > { %v1901_v59 = vadd.f32 %v5004_v54, %v1900_v51  ;;  %3824 = vmatmul.msk.bf16.gmra.mxu2 %vm2029_vm2, %v2064_v14  ;;  %v1727_v18 = vadd.f32 %v4862_v28, %v1691_v58  ;;  %v6385_v14 = vld [vmem:[#allocation13_spill] sm:$0xff] }
 0x176   : > { %v1790_v15 = vmin.f32 %v1758_v4, 6.0 }
 0x177   : > { %v1971_v48 = vmax.f32 %v1901_v59, 0.0  ;;  %1939 = vmatmul.bf16.gmra.mxu1 %v1803_v53  ;;  %v1759_v60 = vmax.f32 %v1727_v18, 0.0 }
 0x179   : > { %v2003_v26 = vmin.f32 %v1971_v48, 6.0  ;;  %v1791_v11 = vmin.f32 %v1759_v60, 6.0  ;;  %v2246_v43 = vpop.f32.mrf.mxu3  ;;  %v3936_v48 = vld [vmem:[%s6280_s12 + $0x20] sm:$0xff] }
 0x17b   : > { %2036 = vst.msk [vmem:[%s5044_s19 + $0x30] sm:$0xff] %vm2029_vm2, %v2003_v26  ;;  %v1807_v63 = vpack.c.bf16 %v1791_v11, %v1790_v15  ;;  %v6386_v11 = vld [vmem:[#allocation14_spill] sm:$0xff] }
 0x17c   : > { %v1902_v0 = vpop.f32.mrf.mxu1 }
 0x17d   : > { %v1903_v30 = vadd.f32 %v5004_v54, %v1902_v0 }
 0x17f   : > { %v1972_v17 = vmax.f32 %v1903_v30, 0.0  ;;  %3848 = vmatmul.msk.bf16.gmra.mxu3 %vm576_vm1, %v6383_v12  ;;  %v3935_v30 = vld [vmem:[%s6280_s12 + $0x18] sm:$0xff] }
 0x181   : > { %v2004_v55 = vmin.f32 %v1972_v17, 6.0  ;;  %v2249_v57 = vpop.f32.mrf.mxu3 }
 0x183   : > { %2037 = vst.msk [vmem:[%s5044_s19 + $0x38] sm:$0xff] %vm2029_vm2, %v2004_v55  ;;  %v2065_v28 = vpack.c.bf16 %v2004_v55, %v2003_v26  ;;  %v5286_v55 = vld [vmem:[%s6277_s9] ss:$0 sm:$0xff] }
 0x184   : > { %v1905_v36 = vpop.f32.mrf.mxu1 }
 0x185   : > { %v1906_v53 = vadd.f32 %v5004_v54, %v1905_v36  ;;  %3825 = vmatmul.msk.bf16.gmra.mxu2 %vm2029_vm2, %v2065_v28 }
 0x187   : > { %v1973_v29 = vmax.f32 %v1906_v53, 0.0  ;;  %1944 = vmatmul.bf16.gmra.mxu1 %v1804_v45 }
 0x189   : > { %v2005_v33 = vmin.f32 %v1973_v29, 6.0  ;;  %v5272_v15 = vpop.f32.mrf.mxu3 }
 0x18b   : > { %2038 = vst.msk [vmem:[%s5044_s19 + $0x40] sm:$0xff] %vm2029_vm2, %v2005_v33 }
 0x18c   : > { %v1907_v16 = vpop.f32.mrf.mxu1 }
 0x18d   : > { %v1908_v5 = vadd.f32 %v5004_v54, %v1907_v16 }
 0x18f   : > { %v1974_v49 = vmax.f32 %v1908_v5, 0.0  ;;  %3849 = vmatmul.msk.bf16.gmra.mxu3 %vm576_vm1, %v6384_v23 }
 0x191   : > { %v2006_v41 = vmin.f32 %v1974_v49, 6.0  ;;  %v5288_v29 = vpop.f32.mrf.mxu3 }
 0x193   : > { %2039 = vst.msk [vmem:[%s5044_s19 + $0x48] sm:$0xff] %vm2029_vm2, %v2006_v41  ;;  %v2066_v39 = vpack.c.bf16 %v2006_v41, %v2005_v33 }
 0x194   : > { %v1910_v22 = vpop.f32.mrf.mxu1 }
 0x195   : > { %v1911_v56 = vadd.f32 %v5004_v54, %v1910_v22  ;;  %3826 = vmatmul.msk.bf16.gmra.mxu2 %vm2029_vm2, %v2066_v39 }
 0x197   : > { %v1975_v27 = vmax.f32 %v1911_v56, 0.0  ;;  %1949 = vmatmul.bf16.gmra.mxu1 %v1805_v19  ;;  %v3939_v19 = vld [vmem:[%s6280_s12 + $0x38] sm:$0xff] }
 0x198   : > { %3516 = vmatpush.bf16.msrb.mxu0 %v3939_v19  ;;  %3943 = vmatpush.bf16.msra.mxu1 %v3939_v19 }
 0x199   : > { %v2007_v45 = vmin.f32 %v1975_v27, 6.0  ;;  %v5297_v27 = vpop.f32.mrf.mxu3 }
 0x19b   : > { %2040 = vst.msk [vmem:[%s5044_s19 + $0x50] sm:$0xff] %vm2029_vm2, %v2007_v45 }
 0x19c   : > { %v1912_v21 = vpop.f32.mrf.mxu1  ;;  %3517 = vmatpush.bf16.msrb.mxu0 %v3938_v62  ;;  %3944 = vmatpush.bf16.msra.mxu1 %v3938_v62 }
 0x19d   : > { %v1913_v7 = vadd.f32 %v5004_v54, %v1912_v21  ;;  %v6387_v21 = vld [vmem:[#allocation15_spill] sm:$0xff] }
 0x19f   : > { %v1976_v44 = vmax.f32 %v1913_v7, 0.0  ;;  %3850 = vmatmul.msk.bf16.gmra.mxu3 %vm576_vm1, %v6385_v14 }
 0x1a0   : > { %3518 = vmatpush.bf16.msrb.mxu0 %v3937_v37  ;;  %3945 = vmatpush.bf16.msra.mxu1 %v3937_v37 }
 0x1a1   : > { %v2008_v9 = vmin.f32 %v1976_v44, 6.0 }
 0x1a3   : > { %2041 = vst.msk [vmem:[%s5044_s19 + $0x58] sm:$0xff] %vm2029_vm2, %v2008_v9  ;;  %v2067_v31 = vpack.c.bf16 %v2008_v9, %v2007_v45  ;;  %v3934_v45 = vld [vmem:[%s6280_s12 + $0x10] sm:$0xff]  ;;  %v2456_v9 = vld [vmem:[%s6278_s10] sm:$0x7] }
 0x1a4   : > { %v1915_v8 = vpop.f32.mrf.mxu1  ;;  %3519 = vmatpush.bf16.msrb.mxu0 %v3936_v48  ;;  %3946 = vmatpush.bf16.msra.mxu1 %v3936_v48  ;;  %v5314_v19 = vperm.slane %v2456_v9, 1  ;;  %v5321_v62 = vperm.slane %v2456_v9, 2 }
 0x1a5   : > { %v1916_v47 = vadd.f32 %v5004_v54, %v1915_v8  ;;  %3827 = vmatmul.msk.bf16.gmra.mxu2 %vm2029_vm2, %v2067_v31  ;;  %v5310_v8 = vperm.slane %v2456_v9, 0 }
 0x1a7   : > { %v1977_v61 = vmax.f32 %v1916_v47, 0.0  ;;  %1954 = vmatmul.bf16.gmra.mxu1 %v1806_v35 }
 0x1a8   : > { %3520 = vmatpush.bf16.msrb.mxu0 %v3935_v30  ;;  %3947 = vmatpush.bf16.msra.mxu1 %v3935_v30 }
 0x1a9   : > { %v2009_v20 = vmin.f32 %v1977_v61, 6.0 }
 0x1ab   : > { %2042 = vst.msk [vmem:[%s5044_s19 + $0x60] sm:$0xff] %vm2029_vm2, %v2009_v20 }
 0x1ac   : > { %v1917_v46 = vpop.f32.mrf.mxu1  ;;  %3521 = vmatpush.bf16.msrb.mxu0 %v3934_v45  ;;  %3948 = vmatpush.bf16.msra.mxu1 %v3934_v45 }
 0x1ad   : > { %v1918_v52 = vadd.f32 %v5004_v54, %v1917_v46 }
 0x1af   : > { %v1978_v32 = vmax.f32 %v1918_v52, 0.0  ;;  %3851 = vmatmul.msk.bf16.gmra.mxu3 %vm576_vm1, %v6386_v11 }
 0x1b1   : > { %v2010_v1 = vmin.f32 %v1978_v32, 6.0 }
 0x1b3   : > { %2043 = vst.msk [vmem:[%s5044_s19 + $0x68] sm:$0xff] %vm2029_vm2, %v2010_v1  ;;  %v2068_v50 = vpack.c.bf16 %v2010_v1, %v2009_v20  ;;  %v2556_v20 = vld [vmem:[#allocation2 + $0x1] sm:$0xff]  ;;  %v2492_v1 = vmul.f32 %v5188_v3, %v5310_v8 }
 0x1b4   : > { %v1920_v10 = vpop.f32.mrf.mxu1 }
 0x1b5   : > { %v1921_v35 = vadd.f32 %v5004_v54, %v1920_v10  ;;  %3828 = vmatmul.msk.bf16.gmra.mxu2 %vm2029_vm2, %v2068_v50  ;;  %v2589_v50 = vmul.f32 %v5314_v19, %v2556_v20 }
 0x1b7   : > { %v1979_v24 = vmax.f32 %v1921_v35, 0.0  ;;  %1959 = vmatmul.bf16.gmra.mxu1 %v1807_v63 }
 0x1b9   : > { %v2011_v6 = vmin.f32 %v1979_v24, 6.0  ;;  %v5324_v24 = vpop.f32.mrf.mxu3 }
 0x1bb   : > { %2044 = vst.msk [vmem:[%s5044_s19 + $0x70] sm:$0xff] %vm2029_vm2, %v2011_v6 }
 0x1bc   : > { %v1922_v25 = vpop.f32.mrf.mxu1 }
 0x1bd   : > { %v1923_v42 = vadd.f32 %v5004_v54, %v1922_v25  ;;  %v2653_v25 = vld [vmem:[#allocation2 + $0x2] sm:$0xff] }
 0x1be   : > { %v2686_v37 = vmul.f32 %v5321_v62, %v2653_v25 }
 0x1bf   : > { %v1980_v38 = vmax.f32 %v1923_v42, 0.0  ;;  %3852 = vmatmul.msk.bf16.gmra.mxu3 %vm576_vm1, %v6387_v21  ;;  %v2457_v42 = vld [vmem:[%s6278_s10 + $0x4] sm:$0x7] }
 0x1c0   : > { %v5337_v14 = vperm.slane %v2457_v42, 0 }
 0x1c1   : > { %v2012_v40 = vmin.f32 %v1980_v38, 6.0  ;;  %v5346_v30 = vpop.f32.mrf.mxu3 }
 0x1c3   : > { %2045 = vst.msk [vmem:[%s5044_s19 + $0x78] sm:$0xff] %vm2029_vm2, %v2012_v40  ;;  %v2069_v2 = vpack.c.bf16 %v2012_v40, %v2011_v6  ;;  %v2557_v6 = vld [vmem:[#allocation2 + $0x9] sm:$0xff] }
 0x1c4   : > { %v1925_v51 = vpop.f32.mrf.mxu1  ;;  %v2590_v40 = vmul.f32 %v5314_v19, %v2557_v6 }
 0x1c5   : > { %v1926_v34 = vadd.f32 %v5004_v54, %v1925_v51  ;;  %3829 = vmatmul.msk.bf16.gmra.mxu2 %vm2029_vm2, %v2069_v2 }
 0x1c7   : > { %v1981_v59 = vmax.f32 %v1926_v34, 0.0  ;;  %v2654_v34 = vld [vmem:[#allocation2 + $0xa] sm:$0xff] }
 0x1c9   : > { %v2013_v58 = vmin.f32 %v1981_v59, 6.0 }
 0x1cb   : > { %2046 = vst.msk [vmem:[%s5044_s19 + $0x80] sm:$0xff] %vm2029_vm2, %v2013_v58 }
 0x1cc   : > { %v1927_v18 = vpop.f32.mrf.mxu1 }
 0x1cd   : > { %v1928_v4 = vadd.f32 %v5004_v54, %v1927_v18  ;;  %v2622_v18 = vadd.f32 %v2590_v40, %v2492_v1 }
 0x1cf   : > { %v1982_v26 = vmax.f32 %v1928_v4, 0.0  ;;  %v2687_v4 = vmul.f32 %v5321_v62, %v2654_v34 }
 0x1d1   : > { %v2014_v60 = vmin.f32 %v1982_v26, 6.0 }
 0x1d3   : > { %2047 = vst.msk [vmem:[%s5044_s19 + $0x88] sm:$0xff] %vm2029_vm2, %v2014_v60  ;;  %v2070_v0 = vpack.c.bf16 %v2014_v60, %v2013_v58 }
 0x1d4   : > { %v1930_v63 = vpop.f32.mrf.mxu1 }
 0x1d5   : > { %v1931_v17 = vadd.f32 %v5004_v54, %v1930_v63  ;;  %3830 = vmatmul.msk.bf16.gmra.mxu2 %vm2029_vm2, %v2070_v0 }
 0x1d7   : > { %v1983_v12 = vmax.f32 %v1931_v17, 0.0  ;;  %v6388_v17 = vld [vmem:[#allocation21_spill] sm:$0xff] }
 0x1d8   : > { %v2152_v28 = vpop.f32.mrf.mxu2  ;;  %3853 = vmatmul.msk.bf16.gmra.mxu3 %vm576_vm1, %v6388_v17 }
 0x1d9   : > { %v2015_v36 = vmin.f32 %v1983_v12, 6.0  ;;  %v2245_v53 = vadd.f32 %v2244_v13, %v2152_v28  ;;  %v3933_v13 = vld [vmem:[%s6280_s12 + $0x8] sm:$0xff]  ;;  %v5350_v12 = vperm.slane %v2457_v42, 1  ;;  %v5352_v28 = vperm.slane %v2457_v42, 2 }
 0x1da   : > { %3522 = vmatpush.bf16.msrb.mxu0 %v3933_v13  ;;  %3949 = vmatpush.bf16.msra.mxu1 %v3933_v13 }
 0x1db   : > { %2048 = vst.msk [vmem:[%s5044_s19 + $0x90] sm:$0xff] %vm2029_vm2, %v2015_v36  ;;  %v2328_v33 = vadd.f32 %v5286_v55, %v2245_v53 }
 0x1dc   : > { %v1932_v16 = vpop.f32.mrf.mxu1 }
 0x1dd   : > { %v2360_v5 = vmax.f32 %v2328_v33, 0.0  ;;  %v1933_v49 = vadd.f32 %v5004_v54, %v1932_v16  ;;  %v3932_v33 = vld [vmem:[%s6280_s12] sm:$0xff] }
 0x1de   : > { %3523 = vmatpush.bf16.msrb.mxu0 %v3932_v33  ;;  %3950 = vmatpush.bf16.msra.mxu1 %v3932_v33 }
 0x1df   : > { %v5294_v23 = vmin.f32 %v2360_v5, 6.0  ;;  %v1984_v41 = vmax.f32 %v1933_v49, 0.0  ;;  %v2458_v5 = vld [vmem:[%s6278_s10 + $0x8] sm:$0x7]  ;;  %v2719_v49 = vadd.f32 %v2687_v4, %v2622_v18 }
 0x1e0   : > { %v2154_v39 = vpop.f32.mrf.mxu2  ;;  %v5366_v45 = vperm.slane %v2458_v5, 0  ;;  %v5383_v13 = vperm.slane %v2458_v5, 1 }
 0x1e1   : > { %2424 = vst [vmem:[#allocation2 + $0x19] sm:$0xff] %v5294_v23  ;;  %v2016_v22 = vmin.f32 %v1984_v41, 6.0  ;;  %v2247_v56 = vadd.f32 %v2246_v43, %v2154_v39  ;;  %v2621_v43 = vadd.f32 %v2589_v50, %v2492_v1  ;;  %v2880_v21 = vmul.f32 %v5350_v12, %v5294_v23  ;;  %v5377_v1 = vpop.f32.mrf.mxu3 }
 0x1e3   : > { %2049 = vst.msk [vmem:[%s5044_s19 + $0x98] sm:$0xff] %vm2029_vm2, %v2016_v22  ;;  %v2071_v7 = vpack.c.bf16 %v2016_v22, %v2015_v36  ;;  %v2329_v44 = vadd.f32 %v5286_v55, %v2247_v56  ;;  %v2718_v26 = vadd.f32 %v2686_v37, %v2621_v43  ;;  %v5390_v37 = vperm.slane %v2458_v5, 2 }
 0x1e4   : > { %v1935_v31 = vpop.f32.mrf.mxu1 }
 0x1e5   : > { %v2361_v47 = vmax.f32 %v2329_v44, 0.0  ;;  %v1936_v61 = vadd.f32 %v5004_v54, %v1935_v31  ;;  %3831 = vmatmul.msk.bf16.gmra.mxu2 %vm2029_vm2, %v2071_v7 }
 0x1e7   : > { %v5316_v46 = vmin.f32 %v2361_v47, 6.0  ;;  %v1985_v52 = vmax.f32 %v1936_v61, 0.0 }
 0x1e8   : > { %v2157_v32 = vpop.f32.mrf.mxu2  ;;  %v2750_v59 = vld [vmem:[#allocation2 + $0x18] sm:$0xff] }
 0x1e9   : > { %2425 = vst [vmem:[#allocation2 + $0x21] sm:$0xff] %v5316_v46  ;;  %v2017_v10 = vmin.f32 %v1985_v52, 6.0  ;;  %v2250_v35 = vadd.f32 %v2249_v57, %v2157_v32  ;;  %v2783_v60 = vmul.f32 %v5337_v14, %v2750_v59  ;;  %v2592_v4 = vmul.f32 %v5314_v19, %v5316_v46  ;;  %v5422_v5 = vpop.f32.mrf.mxu3 }
 0x1eb   : > { %2050 = vst.msk [vmem:[%s5044_s19 + $0xa0] sm:$0xff] %vm2029_vm2, %v2017_v10  ;;  %v2330_v3 = vadd.f32 %v5286_v55, %v2250_v35  ;;  %v2815_v39 = vadd.f32 %v2783_v60, %v2718_v26 }
 0x1ec   : > { %v1937_v38 = vpop.f32.mrf.mxu1 }
 0x1ed   : > { %v2362_v2 = vmax.f32 %v2330_v3, 0.0  ;;  %v1938_v51 = vadd.f32 %v5004_v54, %v1937_v38  ;;  %v2912_v61 = vadd.f32 %v2880_v21, %v2815_v39 }
 0x1ef   : > { %v5340_v58 = vmin.f32 %v2362_v2, 6.0  ;;  %v1986_v57 = vmax.f32 %v1938_v51, 0.0  ;;  %v2591_v2 = vmul.f32 %v5314_v19, %v5294_v23 }
 0x1f0   : > { %v2159_v48 = vpop.f32.mrf.mxu2  ;;  %v2751_v63 = vld [vmem:[#allocation2 + $0x20] sm:$0xff] }
 0x1f1   : > { %2426 = vst [vmem:[#allocation2 + $0x31] sm:$0xff] %v5340_v58  ;;  %v2018_v11 = vmin.f32 %v1986_v57, 6.0  ;;  %v2252_v0 = vadd.f32 %v5272_v15, %v2159_v48  ;;  %v2944_v15 = vld [vmem:[#allocation2 + $0x1a] sm:$0xff]  ;;  %v2784_v41 = vmul.f32 %v5337_v14, %v2751_v63  ;;  %v2945_v25 = vld [vmem:[#allocation2 + $0x22] sm:$0xff]  ;;  %v3171_v34 = vmul.f32 %v5383_v13, %v5340_v58 }
 0x1f2   : > { %v2977_v7 = vmul.f32 %v5352_v28, %v2944_v15  ;;  %v2978_v51 = vmul.f32 %v5352_v28, %v2945_v25  ;;  %v2495_v57 = vmul.f32 %v2751_v63, %v5310_v8  ;;  %v2688_v48 = vmul.f32 %v2944_v15, %v5321_v62 }
 0x1f3   : > { %2051 = vst.msk [vmem:[%s5044_s19 + $0xa8] sm:$0xff] %vm2029_vm2, %v2018_v11  ;;  %v2072_v36 = vpack.c.bf16 %v2018_v11, %v2017_v10  ;;  %v2331_v53 = vadd.f32 %v5286_v55, %v2252_v0  ;;  %v2816_v47 = vadd.f32 %v2784_v41, %v2719_v49  ;;  %v2881_v10 = vmul.f32 %v5350_v12, %v5316_v46 }
 0x1f4   : > { %v1940_v16 = vpop.f32.mrf.mxu1  ;;  %v3009_v35 = vadd.f32 %v2977_v7, %v2912_v61  ;;  %v2624_v41 = vadd.f32 %v2592_v4, %v2495_v57 }
 0x1f5   : > { %v2363_v22 = vmax.f32 %v2331_v53, 0.0  ;;  %v1941_v56 = vadd.f32 %v5004_v54, %v1940_v16  ;;  %3832 = vmatmul.msk.bf16.gmra.mxu2 %vm2029_vm2, %v2072_v36  ;;  %v2913_v42 = vadd.f32 %v2881_v10, %v2816_v47  ;;  %v5420_v16 = vld [vmem:[%s6279_s11] ss:$0 sm:$0xff] }
 0x1f7   : > { %v5371_v44 = vmin.f32 %v2363_v22, 6.0  ;;  %v1987_v9 = vmax.f32 %v1941_v56, 0.0  ;;  %v3010_v60 = vadd.f32 %v2978_v51, %v2913_v42 }
 0x1f8   : > { %v2162_v31 = vpop.f32.mrf.mxu2  ;;  %v5373_v20 = vld [vmem:[#allocation2 + $0x30] sm:$0xff] }
 0x1f9   : > { %2427 = vst [vmem:[#allocation2 + $0x39] sm:$0xff] %v5371_v44  ;;  %v2019_v52 = vmin.f32 %v1987_v9, 6.0  ;;  %v2255_v32 = vadd.f32 %v5288_v29, %v2162_v31  ;;  %v3074_v50 = vmul.f32 %v5366_v45, %v5373_v20  ;;  %v2494_v29 = vmul.f32 %v2750_v59, %v5310_v8 }
 0x1fa   : > { %v2785_v63 = vmul.f32 %v5373_v20, %v5337_v14  ;;  %v3172_v49 = vmul.f32 %v5383_v13, %v5371_v44  ;;  %v2689_v31 = vmul.f32 %v2945_v25, %v5321_v62  ;;  %v2883_v4 = vmul.f32 %v5350_v12, %v5371_v44 }
 0x1fb   : > { %2052 = vst.msk [vmem:[%s5044_s19 + $0xb0] sm:$0xff] %vm2029_vm2, %v2019_v52  ;;  %v2332_v6 = vadd.f32 %v5286_v55, %v2255_v32  ;;  %v3106_v38 = vadd.f32 %v3074_v50, %v3009_v35  ;;  %v2623_v17 = vadd.f32 %v2591_v2, %v2494_v29 }
 0x1fc   : > { %v1942_v3 = vpop.f32.mrf.mxu1  ;;  %v2721_v35 = vadd.f32 %v2689_v31, %v2624_v41 }
 0x1fd   : > { %v2364_v40 = vmax.f32 %v2332_v6, 0.0  ;;  %v1943_v43 = vadd.f32 %v5004_v54, %v1942_v3  ;;  %v3203_v23 = vadd.f32 %v3171_v34, %v3106_v38  ;;  %v2882_v6 = vmul.f32 %v5350_v12, %v5340_v58 }
 0x1ff   : > { %v5399_v18 = vmin.f32 %v2364_v40, 6.0  ;;  %v1988_v59 = vmax.f32 %v1943_v43, 0.0 }
 0x200   : > { %v2164_v26 = vpop.f32.mrf.mxu2  ;;  %v5403_v11 = vld [vmem:[#allocation2 + $0x38] sm:$0xff] }
 0x201   : > { %v5405_v0 = vld [vmem:[#allocation2 + $0x32] sm:$0xff]  ;;  %2428 = vst [vmem:[#allocation2 + $0x49] sm:$0xff] %v5399_v18  ;;  %v2020_v36 = vmin.f32 %v1988_v59, 6.0  ;;  %v2257_v53 = vadd.f32 %v5297_v27, %v2164_v26  ;;  %v3075_v46 = vmul.f32 %v5366_v45, %v5403_v11  ;;  %v5413_v33 = vld [vmem:[#allocation2 + $0x3a] sm:$0xff]  ;;  %v2720_v27 = vadd.f32 %v2688_v48, %v2623_v17  ;;  %v5448_v59 = vpop.f32.mrf.mxu3 }
 0x202   : > { %v3268_v15 = vmul.f32 %v5390_v37, %v5405_v0  ;;  %v3269_v9 = vmul.f32 %v5390_v37, %v5413_v33  ;;  %v2786_v47 = vmul.f32 %v5403_v11, %v5337_v14  ;;  %v2979_v3 = vmul.f32 %v5405_v0, %v5352_v28 }
 0x203   : > { %2053 = vst.msk [vmem:[%s5044_s19 + $0xb8] sm:$0xff] %vm2029_vm2, %v2020_v36  ;;  %v2073_v39 = vpack.c.bf16 %v2020_v36, %v2019_v52  ;;  %v2333_v22 = vadd.f32 %v5286_v55, %v2257_v53  ;;  %v3107_v56 = vadd.f32 %v3075_v46, %v3010_v60  ;;  %v2817_v61 = vadd.f32 %v2785_v63, %v2720_v27 }
 0x204   : > { %v3300_v21 = vadd.f32 %v3268_v15, %v3203_v23  ;;  %v1945_v7 = vpop.f32.mrf.mxu1  ;;  %v2818_v40 = vadd.f32 %v2786_v47, %v2721_v35  ;;  %v2496_v53 = vmul.f32 %v5373_v20, %v5310_v8  ;;  %v2593_v46 = vmul.f32 %v5314_v19, %v5340_v58 }
 0x205   : > { %v2365_v32 = vmax.f32 %v2333_v22, 0.0  ;;  %v1946_v50 = vadd.f32 %v5004_v54, %v1945_v7  ;;  %3833 = vmatmul.msk.bf16.gmra.mxu2 %vm2029_vm2, %v2073_v39  ;;  %v3204_v52 = vadd.f32 %v3172_v49, %v3107_v56  ;;  %v2914_v43 = vadd.f32 %v2882_v6, %v2817_v61 }
 0x206   : > { %v3336_v10 = vadd.f32 %v5420_v16, %v3300_v21  ;;  %v2915_v36 = vadd.f32 %v2883_v4, %v2818_v40  ;;  %v2980_v39 = vmul.f32 %v5413_v33, %v5352_v28  ;;  %v3173_v22 = vmul.f32 %v5383_v13, %v5399_v18 }
 0x207   : > { %v5441_v25 = vmin.f32 %v2365_v32, 6.0  ;;  %v1989_v42 = vmax.f32 %v1946_v50, 0.0  ;;  %v3301_v38 = vadd.f32 %v3269_v9, %v3204_v52  ;;  %v3011_v26 = vadd.f32 %v2979_v3, %v2914_v43 }
 0x208   : > { %v2167_v29 = vpop.f32.mrf.mxu2  ;;  %v5443_v2 = vld [vmem:[#allocation2 + $0x48] sm:$0xff]  ;;  %v3368_v48 = vmax.f32 %v3336_v10, 0.0  ;;  %v2497_v56 = vmul.f32 %v5403_v11, %v5310_v8  ;;  %v2690_v20 = vmul.f32 %v5405_v0, %v5321_v62  ;;  %v3012_v31 = vadd.f32 %v2980_v39, %v2915_v36 }
 0x209   : > { %2429 = vst [vmem:[#allocation2 + $0x51] sm:$0xff] %v5441_v25  ;;  %v2021_v51 = vmin.f32 %v1989_v42, 6.0  ;;  %v2260_v34 = vadd.f32 %v5324_v24, %v2167_v29  ;;  %v3337_v57 = vadd.f32 %v5420_v16, %v3301_v38  ;;  %v3076_v60 = vmul.f32 %v5366_v45, %v5443_v2  ;;  %v5488_v6 = vpop.f32.mrf.mxu3 }
 0x20a   : > { %v3400_v41 = vmin.f32 %v3368_v48, 6.0  ;;  %v2625_v50 = vadd.f32 %v2593_v46, %v2496_v53  ;;  %v2787_v11 = vmul.f32 %v5443_v2, %v5337_v14  ;;  %v3174_v3 = vmul.f32 %v5383_v13, %v5441_v25 }
 0x20b   : > { %2054 = vst.msk [vmem:[%s5044_s19 + $0xc0] sm:$0xff] %vm2029_vm2, %v2021_v51  ;;  %v2334_v23 = vadd.f32 %v5286_v55, %v2260_v34  ;;  %v3369_v17 = vmax.f32 %v3337_v57, 0.0  ;;  %v3108_v24 = vadd.f32 %v3076_v60, %v3011_v26  ;;  %v2691_v48 = vmul.f32 %v5413_v33, %v5321_v62 }
 0x20c   : > { %v1947_v63 = vpop.f32.mrf.mxu1  ;;  %v2722_v38 = vadd.f32 %v2690_v20, %v2625_v50  ;;  %v2884_v33 = vmul.f32 %v5350_v12, %v5399_v18 }
 0x20d   : > { %v2366_v15 = vmax.f32 %v2334_v23, 0.0  ;;  %v1948_v49 = vadd.f32 %v5004_v54, %v1947_v63  ;;  %v3401_v27 = vmin.f32 %v3369_v17, 6.0  ;;  %v2594_v54 = vmul.f32 %v5314_v19, %v5371_v44 }
 0x20e   : > { %v3205_v61 = vadd.f32 %v3173_v22, %v3108_v24  ;;  %v2819_v26 = vadd.f32 %v2787_v11, %v2722_v38 }
 0x20f   : > { %v5470_v21 = vmin.f32 %v2366_v15, 6.0  ;;  %v1990_v58 = vmax.f32 %v1948_v49, 0.0  ;;  %v3432_v7 = vpack.c.bf16 %v3401_v27, %v3400_v41  ;;  %v2626_v42 = vadd.f32 %v2594_v54, %v2497_v56 }
 0x210   : > { %v2169_v9 = vpop.f32.mrf.mxu2  ;;  %v5474_v47 = vld [vmem:[#allocation2 + $0x50] sm:$0xff]  ;;  %v2916_v27 = vadd.f32 %v2884_v33, %v2819_v26  ;;  %v2885_v54 = vmul.f32 %v5350_v12, %v5441_v25 }
 0x211   : > { %v5476_v32 = vld [vmem:[#allocation2 + $0x4a] sm:$0xff]  ;;  %2430 = vst [vmem:[#allocation2 + $0x61] sm:$0xff] %v5470_v21  ;;  %v2022_v0 = vmin.f32 %v1990_v58, 6.0  ;;  %v2262_v52 = vadd.f32 %v5346_v30, %v2169_v9  ;;  %3524 = vmatmul.bf16.vlgmr.msrb.gmra.mxu0 %v3432_v7  ;;  %v3077_v44 = vmul.f32 %v5366_v45, %v5474_v47  ;;  %v5484_v10 = vld [vmem:[#allocation2 + $0x52] sm:$0xff]  ;;  %v2788_v4 = vmul.f32 %v5474_v47, %v5337_v14  ;;  %v5520_v7 = vpop.f32.mrf.mxu3 }
 0x212   : > { %v3270_v35 = vmul.f32 %v5390_v37, %v5476_v32  ;;  %v3271_v57 = vmul.f32 %v5390_v37, %v5484_v10  ;;  %v2723_v36 = vadd.f32 %v2691_v48, %v2626_v42  ;;  %v2981_v24 = vmul.f32 %v5476_v32, %v5352_v28 }
 0x213   : > { %2055 = vst.msk [vmem:[%s5044_s19 + $0xc8] sm:$0xff] %vm2029_vm2, %v2022_v0  ;;  %v2074_v29 = vpack.c.bf16 %v2022_v0, %v2021_v51  ;;  %v2335_v30 = vadd.f32 %v5286_v55, %v2262_v52  ;;  %v3109_v40 = vadd.f32 %v3077_v44, %v3012_v31  ;;  %v5504_v51 = vld [vmem:[%s6274_s6] ss:$0 sm:$0xff]  ;;  %v2498_v52 = vmul.f32 %v5443_v2, %v5310_v8 }
 0x214   : > { %v3302_v43 = vadd.f32 %v3270_v35, %v3205_v61  ;;  %v1950_v34 = vpop.f32.mrf.mxu1  ;;  %v2820_v41 = vadd.f32 %v2788_v4, %v2723_v36  ;;  %v3013_v9 = vadd.f32 %v2981_v24, %v2916_v27  ;;  %v2595_v44 = vmul.f32 %v5314_v19, %v5399_v18 }
 0x215   : > { %v2367_v60 = vmax.f32 %v2335_v30, 0.0  ;;  %v1951_v23 = vadd.f32 %v5504_v51, %v1950_v34  ;;  %3834 = vmatmul.msk.bf16.gmra.mxu2 %vm2029_vm2, %v2074_v29  ;;  %v3206_v17 = vadd.f32 %v3174_v3, %v3109_v40  ;;  %v2982_v29 = vmul.f32 %v5484_v10, %v5352_v28 }
 0x216   : > { %v3338_v63 = vadd.f32 %v5420_v16, %v3302_v43  ;;  %v2917_v0 = vadd.f32 %v2885_v54, %v2820_v41  ;;  %v3175_v30 = vmul.f32 %v5383_v13, %v5470_v21  ;;  %v2499_v40 = vmul.f32 %v5474_v47, %v5310_v8 }
 0x217   : > { %v5513_v53 = vmin.f32 %v2367_v60, 6.0  ;;  %v1991_v46 = vmax.f32 %v1951_v23, 0.0  ;;  %v3303_v15 = vadd.f32 %v3271_v57, %v3206_v17  ;;  %v2692_v2 = vmul.f32 %v5476_v32, %v5321_v62 }
 0x218   : > { %v2172_v49 = vpop.f32.mrf.mxu2  ;;  %v5515_v39 = vld [vmem:[#allocation2 + $0x60] sm:$0xff]  ;;  %v3370_v58 = vmax.f32 %v3338_v63, 0.0  ;;  %v2596_v57 = vmul.f32 %v5314_v19, %v5441_v25  ;;  %v3014_v4 = vadd.f32 %v2982_v29, %v2917_v0  ;;  %v2627_v17 = vadd.f32 %v2595_v44, %v2498_v52 }
 0x219   : > { %2431 = vst [vmem:[#allocation2 + $0x69] sm:$0xff] %v5513_v53  ;;  %v2023_v22 = vmin.f32 %v1991_v46, 6.0  ;;  %v2265_v56 = vadd.f32 %v5377_v1, %v2172_v49  ;;  %v3339_v20 = vadd.f32 %v5420_v16, %v3303_v15  ;;  %v3078_v31 = vmul.f32 %v5366_v45, %v5515_v39  ;;  %v5560_v24 = vpop.f32.mrf.mxu3 }
 0x21a   : > { %v3402_v42 = vmin.f32 %v3370_v58, 6.0  ;;  %v2789_v47 = vmul.f32 %v5515_v39, %v5337_v14  ;;  %v3176_v46 = vmul.f32 %v5383_v13, %v5513_v53  ;;  %v2628_v15 = vadd.f32 %v2596_v57, %v2499_v40 }
 0x21b   : > { %2056 = vst.msk [vmem:[%s5044_s19 + $0xd0] sm:$0xff] %vm2029_vm2, %v2023_v22  ;;  %v2336_v61 = vadd.f32 %v5286_v55, %v2265_v56  ;;  %v3371_v50 = vmax.f32 %v3339_v20, 0.0  ;;  %v3110_v1 = vadd.f32 %v3078_v31, %v3013_v9  ;;  %v2724_v49 = vadd.f32 %v2692_v2, %v2627_v17 }
 0x21c   : > { %v1952_v11 = vpop.f32.mrf.mxu1  ;;  %v2693_v54 = vmul.f32 %v5484_v10, %v5321_v62  ;;  %v2887_v57 = vmul.f32 %v5350_v12, %v5513_v53 }
 0x21d   : > { %v2368_v35 = vmax.f32 %v2336_v61, 0.0  ;;  %v1953_v3 = vadd.f32 %v5504_v51, %v1952_v11  ;;  %v3403_v38 = vmin.f32 %v3371_v50, 6.0  ;;  %v3207_v60 = vadd.f32 %v3175_v30, %v3110_v1 }
 0x21e   : > { %v2821_v31 = vadd.f32 %v2789_v47, %v2724_v49  ;;  %v2725_v0 = vadd.f32 %v2693_v54, %v2628_v15  ;;  %v2886_v1 = vmul.f32 %v5350_v12, %v5470_v21 }
 0x21f   : > { %v5542_v43 = vmin.f32 %v2368_v35, 6.0  ;;  %v1992_v18 = vmax.f32 %v1953_v3, 0.0  ;;  %v3433_v34 = vpack.c.bf16 %v3403_v38, %v3402_v42 }
 0x220   : > { %v2174_v48 = vpop.f32.mrf.mxu2  ;;  %v5546_v26 = vld [vmem:[#allocation2 + $0x68] sm:$0xff]  ;;  %v2918_v38 = vadd.f32 %v2886_v1, %v2821_v31 }
 0x221   : > { %v5548_v23 = vld [vmem:[#allocation2 + $0x62] sm:$0xff]  ;;  %2432 = vst [vmem:[#allocation2 + $0x79] sm:$0xff] %v5542_v43  ;;  %v2024_v32 = vmin.f32 %v1992_v18, 6.0  ;;  %v2267_v63 = vadd.f32 %v5422_v5, %v2174_v48  ;;  %3529 = vmatmul.bf16.gmra.mxu0 %v3433_v34  ;;  %v3079_v25 = vmul.f32 %v5366_v45, %v5546_v26  ;;  %v5556_v36 = vld [vmem:[#allocation2 + $0x6a] sm:$0xff]  ;;  %v2790_v9 = vmul.f32 %v5546_v26, %v5337_v14  ;;  %v5587_v34 = vpop.f32.mrf.mxu3 }
 0x222   : > { %v3272_v33 = vmul.f32 %v5390_v37, %v5548_v23  ;;  %v3273_v58 = vmul.f32 %v5390_v37, %v5556_v36  ;;  %v2983_v52 = vmul.f32 %v5548_v23, %v5352_v28 }
 0x223   : > { %2057 = vst.msk [vmem:[%s5044_s19 + $0xd8] sm:$0xff] %vm2029_vm2, %v2024_v32  ;;  %v2075_v41 = vpack.c.bf16 %v2024_v32, %v2023_v22  ;;  %v2337_v5 = vadd.f32 %v5286_v55, %v2267_v63  ;;  %v3111_v27 = vadd.f32 %v3079_v25, %v3014_v4  ;;  %v2822_v42 = vadd.f32 %v2790_v9, %v2725_v0 }
 0x224   : > { %v3304_v56 = vadd.f32 %v3272_v33, %v3207_v60  ;;  %v1955_v20 = vpop.f32.mrf.mxu1  ;;  %v3015_v48 = vadd.f32 %v2983_v52, %v2918_v38  ;;  %v2500_v63 = vmul.f32 %v5515_v39, %v5310_v8  ;;  %v2597_v25 = vmul.f32 %v5314_v19, %v5470_v21 }
 0x225   : > { %v2369_v61 = vmax.f32 %v2337_v5, 0.0  ;;  %v1956_v50 = vadd.f32 %v5504_v51, %v1955_v20  ;;  %3835 = vmatmul.msk.bf16.gmra.mxu2 %vm2029_vm2, %v2075_v41  ;;  %v3208_v22 = vadd.f32 %v3176_v46, %v3111_v27  ;;  %v2919_v32 = vadd.f32 %v2887_v57, %v2822_v42 }
 0x226   : > { %v3340_v11 = vadd.f32 %v5420_v16, %v3304_v56  ;;  %v2984_v41 = vmul.f32 %v5556_v36, %v5352_v28  ;;  %v3177_v5 = vmul.f32 %v5383_v13, %v5542_v43  ;;  %v2501_v27 = vmul.f32 %v5546_v26, %v5310_v8 }
 0x227   : > { %v5580_v10 = vmin.f32 %v2369_v61, 6.0  ;;  %v1993_v44 = vmax.f32 %v1956_v50, 0.0  ;;  %v3305_v35 = vadd.f32 %v3273_v58, %v3208_v22  ;;  %v2694_v39 = vmul.f32 %v5548_v23, %v5321_v62 }
 0x228   : > { %v2177_v3 = vpop.f32.mrf.mxu2  ;;  %v5582_v29 = vld [vmem:[#allocation2 + $0x78] sm:$0xff]  ;;  %v3372_v18 = vmax.f32 %v3340_v11, 0.0  ;;  %v2598_v58 = vmul.f32 %v5314_v19, %v5513_v53  ;;  %v3016_v9 = vadd.f32 %v2984_v41, %v2919_v32  ;;  %v2629_v22 = vadd.f32 %v2597_v25, %v2500_v63 }
 0x229   : > { %2433 = vst [vmem:[#allocation2 + $0x81] sm:$0xff] %v5580_v10  ;;  %v2025_v30 = vmin.f32 %v1993_v44, 6.0  ;;  %v2270_v40 = vadd.f32 %v5448_v59, %v2177_v3  ;;  %v3341_v2 = vadd.f32 %v5420_v16, %v3305_v35  ;;  %v3080_v4 = vmul.f32 %v5366_v45, %v5582_v29  ;;  %v5627_v52 = vpop.f32.mrf.mxu3 }
 0x22a   : > { %v3404_v15 = vmin.f32 %v3372_v18, 6.0  ;;  %v2791_v26 = vmul.f32 %v5582_v29, %v5337_v14  ;;  %v3178_v44 = vmul.f32 %v5383_v13, %v5580_v10  ;;  %v2630_v35 = vadd.f32 %v2598_v58, %v2501_v27 }
 0x22b   : > { %2058 = vst.msk [vmem:[%s5044_s19 + $0xe0] sm:$0xff] %vm2029_vm2, %v2025_v30  ;;  %v2338_v60 = vadd.f32 %v5286_v55, %v2270_v40  ;;  %v3373_v17 = vmax.f32 %v3341_v2, 0.0  ;;  %v3112_v59 = vadd.f32 %v3080_v4, %v3015_v48  ;;  %v2726_v3 = vadd.f32 %v2694_v39, %v2629_v22 }
 0x22c   : > { %v1957_v47 = vpop.f32.mrf.mxu1  ;;  %v2695_v57 = vmul.f32 %v5556_v36, %v5321_v62  ;;  %v2889_v58 = vmul.f32 %v5350_v12, %v5580_v10 }
 0x22d   : > { %v2370_v33 = vmax.f32 %v2338_v60, 0.0  ;;  %v1958_v46 = vadd.f32 %v5504_v51, %v1957_v47  ;;  %v3405_v49 = vmin.f32 %v3373_v17, 6.0  ;;  %v3209_v61 = vadd.f32 %v3177_v5, %v3112_v59 }
 0x22e   : > { %v2823_v4 = vadd.f32 %v2791_v26, %v2726_v3  ;;  %v2727_v32 = vadd.f32 %v2695_v57, %v2630_v35  ;;  %v2888_v59 = vmul.f32 %v5350_v12, %v5542_v43 }
 0x22f   : > { %v5609_v56 = vmin.f32 %v2370_v33, 6.0  ;;  %v1994_v21 = vmax.f32 %v1958_v46, 0.0  ;;  %v3434_v20 = vpack.c.bf16 %v3405_v49, %v3404_v15 }
 0x230   : > { %v2179_v54 = vpop.f32.mrf.mxu2  ;;  %v5613_v31 = vld [vmem:[#allocation2 + $0x80] sm:$0xff]  ;;  %v2920_v49 = vadd.f32 %v2888_v59, %v2823_v4 }
 0x231   : > { %v5615_v50 = vld [vmem:[#allocation2 + $0x7a] sm:$0xff]  ;;  %2434 = vst [vmem:[#allocation2 + $0x91] sm:$0xff] %v5609_v56  ;;  %v2026_v23 = vmin.f32 %v1994_v21, 6.0  ;;  %v2272_v11 = vadd.f32 %v5488_v6, %v2179_v54  ;;  %3534 = vmatmul.bf16.gmra.mxu0 %v3434_v20  ;;  %v3081_v53 = vmul.f32 %v5366_v45, %v5613_v31  ;;  %v5623_v0 = vld [vmem:[#allocation2 + $0x82] sm:$0xff]  ;;  %v2792_v48 = vmul.f32 %v5613_v31, %v5337_v14  ;;  %v5654_v20 = vpop.f32.mrf.mxu3 }
 0x232   : > { %v3274_v1 = vmul.f32 %v5390_v37, %v5615_v50  ;;  %v3275_v18 = vmul.f32 %v5390_v37, %v5623_v0  ;;  %v2985_v63 = vmul.f32 %v5615_v50, %v5352_v28 }
 0x233   : > { %2059 = vst.msk [vmem:[%s5044_s19 + $0xe8] sm:$0xff] %vm2029_vm2, %v2026_v23  ;;  %v2076_v42 = vpack.c.bf16 %v2026_v23, %v2025_v30  ;;  %v2339_v6 = vadd.f32 %v5286_v55, %v2272_v11  ;;  %v3113_v38 = vadd.f32 %v3081_v53, %v3016_v9  ;;  %v2824_v15 = vadd.f32 %v2792_v48, %v2727_v32 }
 0x234   : > { %v3306_v40 = vadd.f32 %v3274_v1, %v3209_v61  ;;  %v1960_v2 = vpop.f32.mrf.mxu1  ;;  %v3017_v54 = vadd.f32 %v2985_v63, %v2920_v49  ;;  %v2502_v11 = vmul.f32 %v5582_v29, %v5310_v8  ;;  %v2599_v53 = vmul.f32 %v5314_v19, %v5542_v43 }
 0x235   : > { %v2371_v60 = vmax.f32 %v2339_v6, 0.0  ;;  %v1961_v17 = vadd.f32 %v5504_v51, %v1960_v2  ;;  %3836 = vmatmul.msk.bf16.gmra.mxu2 %vm2029_vm2, %v2076_v42  ;;  %v3210_v30 = vadd.f32 %v3178_v44, %v3113_v38  ;;  %v2921_v23 = vadd.f32 %v2889_v58, %v2824_v15 }
 0x236   : > { %v3342_v47 = vadd.f32 %v5420_v16, %v3306_v40  ;;  %v2986_v42 = vmul.f32 %v5623_v0, %v5352_v28  ;;  %v3179_v6 = vmul.f32 %v5383_v13, %v5609_v56  ;;  %v2503_v38 = vmul.f32 %v5613_v31, %v5310_v8 }
 0x237   : > { %v5647_v36 = vmin.f32 %v2371_v60, 6.0  ;;  %v1995_v25 = vmax.f32 %v1961_v17, 0.0  ;;  %v3307_v33 = vadd.f32 %v3275_v18, %v3210_v30  ;;  %v2696_v29 = vmul.f32 %v5615_v50, %v5321_v62 }
 0x238   : > { %v2182_v46 = vpop.f32.mrf.mxu2  ;;  %v5649_v41 = vld [vmem:[#allocation2 + $0x90] sm:$0xff]  ;;  %v3374_v21 = vmax.f32 %v3342_v47, 0.0  ;;  %v3018_v57 = vadd.f32 %v2986_v42, %v2921_v23  ;;  %v2631_v17 = vadd.f32 %v2599_v53, %v2502_v11 }
 0x239   : > { %2435 = vst [vmem:[#allocation2 + $0x99] sm:$0xff] %v5647_v36  ;;  %v2027_v5 = vmin.f32 %v1995_v25, 6.0  ;;  %v2275_v27 = vadd.f32 %v5520_v7, %v2182_v46  ;;  %v3343_v39 = vadd.f32 %v5420_v16, %v3307_v33  ;;  %v3082_v9 = vmul.f32 %v5366_v45, %v5649_v41 }
 0x23a   : > { %v3406_v35 = vmin.f32 %v3374_v21, 6.0  ;;  %v2793_v31 = vmul.f32 %v5649_v41, %v5337_v14  ;;  %v3180_v32 = vmul.f32 %v5383_v13, %v5647_v36  ;;  %v2728_v25 = vadd.f32 %v2696_v29, %v2631_v17 }
 0x23b   : > { %2060 = vst.msk [vmem:[%s5044_s19 + $0xf0] sm:$0xff] %vm2029_vm2, %v2027_v5  ;;  %v2340_v61 = vadd.f32 %v5286_v55, %v2275_v27  ;;  %v3375_v22 = vmax.f32 %v3343_v39, 0.0  ;;  %v3114_v7 = vadd.f32 %v3082_v9, %v3017_v54  ;;  %v2697_v27 = vmul.f32 %v5623_v0, %v5321_v62 }
 0x23c   : > { %v1962_v26 = vpop.f32.mrf.mxu1  ;;  %v2825_v21 = vadd.f32 %v2793_v31, %v2728_v25  ;;  %v2601_v17 = vmul.f32 %v5314_v19, %v5609_v56 }
 0x23d   : > { %v2372_v1 = vmax.f32 %v2340_v61, 0.0  ;;  %v1963_v44 = vadd.f32 %v5504_v51, %v1962_v26  ;;  %v3407_v3 = vmin.f32 %v3375_v22, 6.0  ;;  %v2600_v51 = vmul.f32 %v5314_v19, %v5580_v10 }
 0x23e   : > { %v3211_v4 = vadd.f32 %v3179_v6, %v3114_v7  ;;  %v2890_v22 = vmul.f32 %v5350_v12, %v5609_v56  ;;  %v2891_v6 = vmul.f32 %v5350_v12, %v5647_v36 }
 0x23f   : > { %v5676_v40 = vmin.f32 %v2372_v1, 6.0  ;;  %v1996_v43 = vmax.f32 %v1963_v44, 0.0  ;;  %v3435_v2 = vpack.c.bf16 %v3407_v3, %v3406_v35  ;;  %v2632_v63 = vadd.f32 %v2600_v51, %v2503_v38 }
 0x240   : > { %v2184_v18 = vpop.f32.mrf.mxu2  ;;  %v3050_v48 = vld [vmem:[#allocation2 + $0x98] sm:$0xff]  ;;  %v2922_v53 = vadd.f32 %v2890_v22, %v2825_v21 }
 0x241   : > { %v3243_v60 = vld [vmem:[#allocation2 + $0x92] sm:$0xff]  ;;  %2436 = vst [vmem:[#allocation2 + $0xa9] sm:$0xff] %v5676_v40  ;;  %v2028_v50 = vmin.f32 %v1996_v43, 6.0  ;;  %v2277_v30 = vadd.f32 %v5560_v24, %v2184_v18  ;;  %3539 = vmatmul.bf16.gmra.mxu0 %v3435_v2  ;;  %v3083_v47 = vmul.f32 %v5366_v45, %v3050_v48  ;;  %v5688_v59 = vld [vmem:[#allocation2 + $0x9a] sm:$0xff]  ;;  %v5693_v24 = vpop.f32.mrf.mxu3  ;;  %v2794_v39 = vmul.f32 %v3050_v48, %v5337_v14 }
 0x242   : > { %v3276_v10 = vmul.f32 %v5390_v37, %v3243_v60  ;;  %v3277_v9 = vmul.f32 %v5390_v37, %v5688_v59  ;;  %v2729_v61 = vadd.f32 %v2697_v27, %v2632_v63  ;;  %v2987_v26 = vmul.f32 %v3243_v60, %v5352_v28 }
 0x243   : > { %2061 = vst.msk [vmem:[%s5044_s19 + $0xf8] sm:$0xff] %vm2029_vm2, %v2028_v50  ;;  %v2077_v33 = vpack.c.bf16 %v2028_v50, %v2027_v5  ;;  %v2341_v46 = vadd.f32 %v5286_v55, %v2277_v30  ;;  %v3115_v15 = vadd.f32 %v3083_v47, %v3018_v57  ;;  %v2504_v18 = vmul.f32 %v5649_v41, %v5310_v8 }
 0x244   : > { %v3308_v49 = vadd.f32 %v3276_v10, %v3211_v4  ;;  %v2826_v11 = vadd.f32 %v2794_v39, %v2729_v61  ;;  %v3019_v38 = vadd.f32 %v2987_v26, %v2922_v53  ;;  %v2988_v50 = vmul.f32 %v5688_v59, %v5352_v28 }
 0x245   : > { %v2373_v58 = vmax.f32 %v2341_v46, 0.0  ;;  %3837 = vmatmul.msk.bf16.gmra.mxu2 %vm2029_vm2, %v2077_v33  ;;  %v3212_v54 = vadd.f32 %v3180_v32, %v3115_v15  ;;  %v3181_v30 = vmul.f32 %v5383_v13, %v5676_v40  ;;  %v2505_v47 = vmul.f32 %v3050_v48, %v5310_v8 }
 0x246   : > { %v3344_v5 = vadd.f32 %v5420_v16, %v3308_v49  ;;  %v2923_v2 = vadd.f32 %v2891_v6, %v2826_v11  ;;  %v2698_v10 = vmul.f32 %v3243_v60, %v5321_v62  ;;  %v2602_v63 = vmul.f32 %v5314_v19, %v5647_v36 }
 0x247   : > { %v5705_v23 = vmin.f32 %v2373_v58, 6.0  ;;  %v3309_v0 = vadd.f32 %v3277_v9, %v3212_v54  ;;  %v2633_v49 = vadd.f32 %v2601_v17, %v2504_v18  ;;  %v2699_v22 = vmul.f32 %v5688_v59, %v5321_v62  ;;  %v5769_v17 = vld [vmem:[%s6277_s9] ss:$0 sm:$0xff] }
 0x248   : > { %v2187_v7 = vpop.f32.mrf.mxu2  ;;  %v5707_v1 = vld [vmem:[#allocation2 + $0xa8] sm:$0xff]  ;;  %v3376_v3 = vmax.f32 %v3344_v5, 0.0  ;;  %v3020_v56 = vadd.f32 %v2988_v50, %v2923_v2  ;;  %v2634_v36 = vadd.f32 %v2602_v63, %v2505_v47 }
 0x249   : > { %2437 = vst [vmem:[#allocation2 + $0xb1] sm:$0xff] %v5705_v23  ;;  %v2280_v44 = vadd.f32 %v5587_v34, %v2187_v7  ;;  %v3345_v35 = vadd.f32 %v5420_v16, %v3309_v0  ;;  %v3084_v42 = vmul.f32 %v5366_v45, %v5707_v1  ;;  %v5721_v31 = vpop.f32.mrf.mxu3  ;;  %v2795_v27 = vmul.f32 %v5707_v1, %v5337_v14 }
 0x24a   : > { %v3408_v34 = vmin.f32 %v3376_v3, 6.0  ;;  %v2730_v58 = vadd.f32 %v2698_v10, %v2633_v49  ;;  %v3182_v5 = vmul.f32 %v5383_v13, %v5705_v23  ;;  %v2506_v10 = vmul.f32 %v5707_v1, %v5310_v8 }
 0x24b   : > { %v2342_v29 = vadd.f32 %v5286_v55, %v2280_v44  ;;  %v3377_v43 = vmax.f32 %v3345_v35, 0.0  ;;  %v3116_v51 = vadd.f32 %v3084_v42, %v3019_v38  ;;  %v2731_v44 = vadd.f32 %v2699_v22, %v2634_v36 }
 0x24c   : > { %v2827_v26 = vadd.f32 %v2795_v27, %v2730_v58  ;;  %v2604_v1 = vmul.f32 %v5314_v19, %v5705_v23 }
 0x24d   : > { %v2374_v57 = vmax.f32 %v2342_v29, 0.0  ;;  %v3409_v4 = vmin.f32 %v3377_v43, 6.0  ;;  %v3213_v46 = vadd.f32 %v3181_v30, %v3116_v51 }
 0x24f   : > { %v5729_v32 = vmin.f32 %v2374_v57, 6.0  ;;  %v3436_v41 = vpack.c.bf16 %v3409_v4, %v3408_v34  ;;  %v2893_v34 = vmul.f32 %v5350_v12, %v5705_v23 }
 0x250   : > { %v2189_v25 = vpop.f32.mrf.mxu2  ;;  %v3052_v33 = vld [vmem:[#allocation2 + $0xb0] sm:$0xff] }
 0x251   : > { %v3245_v15 = vld [vmem:[#allocation2 + $0xaa] sm:$0xff]  ;;  %2438 = vst [vmem:[#allocation2 + $0xc1] sm:$0xff] %v5729_v32  ;;  %v2282_v48 = vadd.f32 %v5627_v52, %v2189_v25  ;;  %3544 = vmatmul.bf16.gmra.mxu0 %v3436_v41  ;;  %v3085_v60 = vmul.f32 %v5366_v45, %v3052_v33  ;;  %v5739_v21 = vld [vmem:[#allocation2 + $0xb2] sm:$0xff]  ;;  %v2796_v52 = vmul.f32 %v3052_v33, %v5337_v14  ;;  %v5755_v6 = vpop.f32.mrf.mxu3 }
 0x252   : > { %v3278_v39 = vmul.f32 %v5390_v37, %v3245_v15  ;;  %v3279_v11 = vmul.f32 %v5390_v37, %v5739_v21  ;;  %v2989_v35 = vmul.f32 %v3245_v15, %v5352_v28  ;;  %v3183_v49 = vmul.f32 %v5383_v13, %v5729_v32 }
 0x253   : > { %v2343_v54 = vadd.f32 %v5286_v55, %v2282_v48  ;;  %v3117_v9 = vadd.f32 %v3085_v60, %v3020_v56  ;;  %v2892_v55 = vmul.f32 %v5350_v12, %v5676_v40  ;;  %v2828_v38 = vadd.f32 %v2796_v52, %v2731_v44 }
 0x254   : > { %v3310_v61 = vadd.f32 %v3278_v39, %v3213_v46  ;;  %v2603_v56 = vmul.f32 %v5314_v19, %v5676_v40  ;;  %v2990_v46 = vmul.f32 %v5739_v21, %v5352_v28  ;;  %v2507_v27 = vmul.f32 %v3052_v33, %v5310_v8 }
 0x255   : > { %v2375_v0 = vmax.f32 %v2343_v54, 0.0  ;;  %v3214_v7 = vadd.f32 %v3182_v5, %v3117_v9  ;;  %v2924_v29 = vadd.f32 %v2892_v55, %v2827_v26  ;;  %v2925_v47 = vadd.f32 %v2893_v34, %v2828_v38 }
 0x256   : > { %v3346_v53 = vadd.f32 %v5420_v16, %v3310_v61  ;;  %v2700_v48 = vmul.f32 %v3245_v15, %v5321_v62  ;;  %v2635_v5 = vadd.f32 %v2603_v56, %v2506_v10  ;;  %v2636_v26 = vadd.f32 %v2604_v1, %v2507_v27 }
 0x257   : > { %v5753_v3 = vmin.f32 %v2375_v0, 6.0  ;;  %v3311_v42 = vadd.f32 %v3279_v11, %v3214_v7  ;;  %v3021_v4 = vadd.f32 %v2989_v35, %v2924_v29  ;;  %v3022_v58 = vadd.f32 %v2990_v46, %v2925_v47 }
 0x258   : > { %v2192_v59 = vpop.f32.mrf.mxu2  ;;  %v5757_v43 = vld [vmem:[#allocation2 + $0xc0] sm:$0xff]  ;;  %v3378_v18 = vmax.f32 %v3346_v53, 0.0  ;;  %v2732_v0 = vadd.f32 %v2700_v48, %v2635_v5 }
 0x259   : > { %2439 = vst [vmem:[#allocation2 + $0xc9] sm:$0xff] %v5753_v3  ;;  %v2285_v2 = vadd.f32 %v5654_v20, %v2192_v59  ;;  %v3347_v51 = vadd.f32 %v5420_v16, %v3311_v42  ;;  %v3086_v57 = vmul.f32 %v5366_v45, %v5757_v43  ;;  %v2797_v61 = vmul.f32 %v5757_v43, %v5337_v14  ;;  %v5792_v52 = vpop.f32.mrf.mxu3 }
 0x25a   : > { %v3410_v63 = vmin.f32 %v3378_v18, 6.0  ;;  %v3184_v53 = vmul.f32 %v5383_v13, %v5753_v3 }
 0x25b   : > { %v2344_v50 = vadd.f32 %v5769_v17, %v2285_v2  ;;  %v3379_v30 = vmax.f32 %v3347_v51, 0.0  ;;  %v3118_v20 = vadd.f32 %v3086_v57, %v3021_v4  ;;  %v2829_v35 = vadd.f32 %v2797_v61, %v2732_v0 }
 0x25c   : > { %v2894_v51 = vmul.f32 %v5350_v12, %v5729_v32 }
 0x25d   : > { %v2376_v41 = vmax.f32 %v2344_v50, 0.0  ;;  %v3411_v25 = vmin.f32 %v3379_v30, 6.0  ;;  %v3215_v40 = vadd.f32 %v3183_v49, %v3118_v20 }
 0x25e   : > { %v2926_v50 = vadd.f32 %v2894_v51, %v2829_v35 }
 0x25f   : > { %v5782_v60 = vmin.f32 %v2376_v41, 6.0  ;;  %v3437_v39 = vpack.c.bf16 %v3411_v25, %v3410_v63  ;;  %v2895_v63 = vmul.f32 %v5350_v12, %v5753_v3 }
 0x260   : > { %v2194_v36 = vpop.f32.mrf.mxu2  ;;  %v3054_v54 = vld [vmem:[#allocation2 + $0xc8] sm:$0xff] }
 0x261   : > { %v3247_v9 = vld [vmem:[#allocation2 + $0xc2] sm:$0xff]  ;;  %2440 = vst [vmem:[#allocation2 + $0xd9] sm:$0xff] %v5782_v60  ;;  %v2287_v33 = vadd.f32 %v5693_v24, %v2194_v36  ;;  %3549 = vmatmul.bf16.gmra.mxu0 %v3437_v39  ;;  %v3087_v15 = vmul.f32 %v5366_v45, %v3054_v54  ;;  %v5794_v23 = vld [vmem:[#allocation2 + $0xca] sm:$0xff]  ;;  %v2701_v24 = vmul.f32 %v5739_v21, %v5321_v62  ;;  %v5820_v49 = vpop.f32.mrf.mxu3 }
 0x262   : > { %v3280_v22 = vmul.f32 %v5390_v37, %v3247_v9  ;;  %v2798_v55 = vmul.f32 %v3054_v54, %v5337_v14  ;;  %v3281_v38 = vmul.f32 %v5390_v37, %v5794_v23  ;;  %v2991_v18 = vmul.f32 %v3247_v9, %v5352_v28 }
 0x263   : > { %v2345_v7 = vadd.f32 %v5769_v17, %v2287_v33  ;;  %v3119_v11 = vadd.f32 %v3087_v15, %v3022_v58  ;;  %v2733_v2 = vadd.f32 %v2701_v24, %v2636_v26  ;;  %v2605_v58 = vmul.f32 %v5314_v19, %v5729_v32 }
 0x264   : > { %v3312_v44 = vadd.f32 %v3280_v22, %v3215_v40  ;;  %v3023_v25 = vadd.f32 %v2991_v18, %v2926_v50  ;;  %v2992_v40 = vmul.f32 %v5794_v23, %v5352_v28  ;;  %v3185_v5 = vmul.f32 %v5383_v13, %v5782_v60 }
 0x265   : > { %v2377_v42 = vmax.f32 %v2345_v7, 0.0  ;;  %v3216_v59 = vadd.f32 %v3184_v53, %v3119_v11  ;;  %v2830_v4 = vadd.f32 %v2798_v55, %v2733_v2  ;;  %v2509_v61 = vmul.f32 %v3054_v54, %v5310_v8 }
 0x266   : > { %v3348_v29 = vadd.f32 %v5420_v16, %v3312_v44  ;;  %v2702_v33 = vmul.f32 %v3247_v9, %v5321_v62  ;;  %v2703_v2 = vmul.f32 %v5794_v23, %v5321_v62 }
 0x267   : > { %v5808_v57 = vmin.f32 %v2377_v42, 6.0  ;;  %v3313_v34 = vadd.f32 %v3281_v38, %v3216_v59  ;;  %v2927_v27 = vadd.f32 %v2895_v63, %v2830_v4 }
 0x268   : > { %v2197_v21 = vpop.f32.mrf.mxu2  ;;  %v5810_v30 = vld [vmem:[#allocation2 + $0xd8] sm:$0xff]  ;;  %v3380_v10 = vmax.f32 %v3348_v29, 0.0 }
 0x269   : > { %2441 = vst [vmem:[#allocation2 + $0xe1] sm:$0xff] %v5808_v57  ;;  %v2290_v47 = vadd.f32 %v5721_v31, %v2197_v21  ;;  %v3349_v20 = vadd.f32 %v5420_v16, %v3313_v34  ;;  %v3088_v41 = vmul.f32 %v5366_v45, %v5810_v30  ;;  %v2508_v31 = vmul.f32 %v5757_v43, %v5310_v8  ;;  %v5853_v50 = vpop.f32.mrf.mxu3 }
 0x26a   : > { %v3412_v1 = vmin.f32 %v3380_v10, 6.0  ;;  %v2606_v43 = vmul.f32 %v5314_v19, %v5753_v3  ;;  %v3024_v0 = vadd.f32 %v2992_v40, %v2927_v27  ;;  %v2799_v44 = vmul.f32 %v5810_v30, %v5337_v14 }
 0x26b   : > { %v2346_v56 = vadd.f32 %v5769_v17, %v2290_v47  ;;  %v3381_v46 = vmax.f32 %v3349_v20, 0.0  ;;  %v3120_v48 = vadd.f32 %v3088_v41, %v3023_v25  ;;  %v2637_v53 = vadd.f32 %v2605_v58, %v2508_v31 }
 0x26c   : > { %v2638_v3 = vadd.f32 %v2606_v43, %v2509_v61  ;;  %v3186_v38 = vmul.f32 %v5383_v13, %v5808_v57  ;;  %v2896_v20 = vmul.f32 %v5350_v12, %v5782_v60 }
 0x26d   : > { %v2378_v39 = vmax.f32 %v2346_v56, 0.0  ;;  %v3413_v36 = vmin.f32 %v3381_v46, 6.0  ;;  %v3217_v32 = vadd.f32 %v3185_v5, %v3120_v48  ;;  %v2734_v35 = vadd.f32 %v2702_v33, %v2637_v53 }
 0x26e   : > { %v2735_v47 = vadd.f32 %v2703_v2, %v2638_v3  ;;  %v2510_v33 = vmul.f32 %v5810_v30, %v5310_v8  ;;  %v2608_v30 = vmul.f32 %v5314_v19, %v5808_v57 }
 0x26f   : > { %v5832_v15 = vmin.f32 %v2378_v39, 6.0  ;;  %v3438_v22 = vpack.c.bf16 %v3413_v36, %v3412_v1  ;;  %v2831_v51 = vadd.f32 %v2799_v44, %v2734_v35  ;;  %v2897_v1 = vmul.f32 %v5350_v12, %v5808_v57 }
 0x270   : > { %v2199_v26 = vpop.f32.mrf.mxu2  ;;  %v3056_v7 = vld [vmem:[#allocation2 + $0xe0] sm:$0xff] }
 0x271   : > { %v3249_v11 = vld [vmem:[#allocation2 + $0xda] sm:$0xff]  ;;  %2442 = vst [vmem:[#allocation2 + $0xf1] sm:$0xff] %v5832_v15  ;;  %v2292_v54 = vadd.f32 %v5755_v6, %v2199_v26  ;;  %3554 = vmatmul.bf16.gmra.mxu0 %v3438_v22  ;;  %v3089_v9 = vmul.f32 %v5366_v45, %v3056_v7  ;;  %v5842_v55 = vld [vmem:[#allocation2 + $0xe2] sm:$0xff]  ;;  %v2800_v6 = vmul.f32 %v3056_v7, %v5337_v14 }
 0x272   : > { %v3282_v24 = vmul.f32 %v5390_v37, %v3249_v11  ;;  %v3283_v21 = vmul.f32 %v5390_v37, %v5842_v55  ;;  %v2993_v10 = vmul.f32 %v3249_v11, %v5352_v28  ;;  %v2928_v56 = vadd.f32 %v2896_v20, %v2831_v51 }
 0x273   : > { %v2347_v42 = vadd.f32 %v5769_v17, %v2292_v54  ;;  %v3121_v59 = vadd.f32 %v3089_v9, %v3024_v0  ;;  %v2832_v25 = vadd.f32 %v2800_v6, %v2735_v47  ;;  %v2994_v26 = vmul.f32 %v5842_v55, %v5352_v28 }
 0x274   : > { %v3314_v29 = vadd.f32 %v3282_v24, %v3217_v32  ;;  %v3025_v36 = vadd.f32 %v2993_v10, %v2928_v56  ;;  %v3187_v0 = vmul.f32 %v5383_v13, %v5832_v15  ;;  %v2511_v32 = vmul.f32 %v3056_v7, %v5310_v8  ;;  %v5884_v24 = vpop.f32.mrf.mxu3 }
 0x275   : > { %v2379_v18 = vmax.f32 %v2347_v42, 0.0  ;;  %v3218_v34 = vadd.f32 %v3186_v38, %v3121_v59  ;;  %v2929_v5 = vadd.f32 %v2897_v1, %v2832_v25  ;;  %v2704_v53 = vmul.f32 %v3249_v11, %v5321_v62 }
 0x276   : > { %v3350_v4 = vadd.f32 %v5420_v16, %v3314_v29  ;;  %v2640_v2 = vadd.f32 %v2608_v30, %v2511_v32 }
 0x277   : > { %v5858_v41 = vmin.f32 %v2379_v18, 6.0  ;;  %v3315_v23 = vadd.f32 %v3283_v21, %v3218_v34 }
 0x278   : > { %v2202_v63 = vpop.f32.mrf.mxu2  ;;  %v5860_v46 = vld [vmem:[#allocation2 + $0xf0] sm:$0xff]  ;;  %v3382_v31 = vmax.f32 %v3350_v4, 0.0  ;;  %v2705_v4 = vmul.f32 %v5842_v55, %v5321_v62 }
 0x279   : > { %2443 = vst [vmem:[#allocation2 + $0xf9] sm:$0xff] %v5858_v41  ;;  %v2295_v27 = vadd.f32 %v5792_v52, %v2202_v63  ;;  %v3351_v48 = vadd.f32 %v5420_v16, %v3315_v23  ;;  %v3090_v39 = vmul.f32 %v5366_v45, %v5860_v46  ;;  %v2607_v16 = vmul.f32 %v5314_v19, %v5782_v60  ;;  %v5905_v63 = vld [vmem:[%s6279_s11] ss:$0 sm:$0xff] }
 0x27a   : > { %v3414_v52 = vmin.f32 %v3382_v31, 6.0  ;;  %v3026_v60 = vadd.f32 %v2994_v26, %v2929_v5  ;;  %v2801_v38 = vmul.f32 %v5860_v46, %v5337_v14  ;;  %v3188_v34 = vmul.f32 %v5383_v13, %v5858_v41  ;;  %v5928_v26 = vld [vmem:[%s6281_s13] ss:$0 sm:$0xff] }
 0x27b   : > { %v2348_v58 = vadd.f32 %v5769_v17, %v2295_v27  ;;  %v3383_v40 = vmax.f32 %v3351_v48, 0.0  ;;  %v3122_v61 = vadd.f32 %v3090_v39, %v3025_v36  ;;  %v2639_v59 = vadd.f32 %v2607_v16, %v2510_v33 }
 0x27c   : > { %v2737_v56 = vadd.f32 %v2705_v4, %v2640_v2  ;;  %v2898_v27 = vmul.f32 %v5350_v12, %v5832_v15 }
 0x27d   : > { %v2380_v22 = vmax.f32 %v2348_v58, 0.0  ;;  %v3415_v43 = vmin.f32 %v3383_v40, 6.0  ;;  %v3219_v35 = vadd.f32 %v3187_v0, %v3122_v61  ;;  %v2736_v6 = vadd.f32 %v2704_v53, %v2639_v59 }
 0x27e   : > { %v2512_v53 = vmul.f32 %v5860_v46, %v5310_v8 }
 0x27f   : > { %v5880_v44 = vmin.f32 %v2380_v22, 6.0  ;;  %v3439_v54 = vpack.c.bf16 %v3415_v43, %v3414_v52  ;;  %v2833_v47 = vadd.f32 %v2801_v38, %v2736_v6  ;;  %v5920_v22 = vpop.f32.mrf.mxu3  ;;  %v2899_v52 = vmul.f32 %v5350_v12, %v5858_v41 }
 0x280   : > { %v2204_v9 = vpop.f32.mrf.mxu2  ;;  %v3058_v3 = vld [vmem:[#allocation2 + $0xf8] sm:$0xff]  ;;  %v2610_v6 = vmul.f32 %v5314_v19, %v5858_v41 }
 0x281   : > { %v3251_v42 = vld [vmem:[#allocation2 + $0xf2] sm:$0xff]  ;;  %2444 = vst [vmem:[#allocation2 + $0x109] sm:$0xff] %v5880_v44  ;;  %v2297_v7 = vadd.f32 %v5820_v49, %v2204_v9  ;;  %3559 = vmatmul.bf16.gmra.mxu0 %v3439_v54  ;;  %v3091_v11 = vmul.f32 %v5366_v45, %v3058_v3  ;;  %v5892_v29 = vld [vmem:[#allocation2 + $0xfa] sm:$0xff]  ;;  %v2802_v49 = vmul.f32 %v3058_v3, %v5337_v14 }
 0x282   : > { %v3284_v57 = vmul.f32 %v5390_v37, %v3251_v42  ;;  %v3285_v23 = vmul.f32 %v5390_v37, %v5892_v29  ;;  %v2995_v55 = vmul.f32 %v3251_v42, %v5352_v28  ;;  %v2930_v36 = vadd.f32 %v2898_v27, %v2833_v47 }
 0x283   : > { %v2349_v51 = vadd.f32 %v5769_v17, %v2297_v7  ;;  %v3123_v18 = vadd.f32 %v3091_v11, %v3026_v60  ;;  %v2834_v1 = vadd.f32 %v2802_v49, %v2737_v56  ;;  %v2609_v60 = vmul.f32 %v5314_v19, %v5832_v15 }
 0x284   : > { %v3316_v21 = vadd.f32 %v3284_v57, %v3219_v35  ;;  %v3027_v43 = vadd.f32 %v2995_v55, %v2930_v36  ;;  %v2996_v59 = vmul.f32 %v5892_v29, %v5352_v28  ;;  %v3189_v38 = vmul.f32 %v5383_v13, %v5880_v44 }
 0x285   : > { %v2381_v20 = vmax.f32 %v2349_v51, 0.0  ;;  %v3220_v10 = vadd.f32 %v3188_v34, %v3123_v18  ;;  %v2931_v0 = vadd.f32 %v2899_v52, %v2834_v1  ;;  %v2513_v7 = vmul.f32 %v3058_v3, %v5310_v8 }
 0x286   : > { %v3352_v25 = vadd.f32 %v5905_v63, %v3316_v21  ;;  %v2706_v11 = vmul.f32 %v3251_v42, %v5321_v62  ;;  %v2641_v4 = vadd.f32 %v2609_v60, %v2512_v53 }
 0x287   : > { %v5911_v48 = vmin.f32 %v2381_v20, 6.0  ;;  %v3317_v31 = vadd.f32 %v3285_v23, %v3220_v10  ;;  %v3028_v51 = vadd.f32 %v2996_v59, %v2931_v0  ;;  %v2642_v23 = vadd.f32 %v2610_v6, %v2513_v7 }
 0x288   : > { %v2207_v39 = vpop.f32.mrf.mxu2  ;;  %v5913_v58 = vld [vmem:[#allocation2 + $0x108] sm:$0xff]  ;;  %v3384_v61 = vmax.f32 %v3352_v25, 0.0  ;;  %v2738_v25 = vadd.f32 %v2706_v11, %v2641_v4 }
 0x289   : > { %2445 = vst [vmem:[#allocation2 + $0x111] sm:$0xff] %v5911_v48  ;;  %v2300_v40 = vadd.f32 %v5853_v50, %v2207_v39  ;;  %v3353_v5 = vadd.f32 %v5905_v63, %v3317_v31  ;;  %v3092_v33 = vmul.f32 %v5366_v45, %v5913_v58  ;;  %v2803_v49 = vmul.f32 %v5913_v58, %v5337_v14  ;;  %v2306_v39 = vpop.f32.mrf.mxu3 }
 0x28a   : > { %v3416_v30 = vmin.f32 %v3384_v61, 6.0  ;;  %v3190_v20 = vmul.f32 %v5383_v13, %v5911_v48  ;;  %v2901_v7 = vmul.f32 %v5350_v12, %v5911_v48  ;;  %v2514_v4 = vmul.f32 %v5913_v58, %v5310_v8 }
 0x28b   : > { %v2350_v16 = vadd.f32 %v5769_v17, %v2300_v40  ;;  %v3385_v50 = vmax.f32 %v3353_v5, 0.0  ;;  %v3124_v32 = vadd.f32 %v3092_v33, %v3027_v43  ;;  %v2835_v36 = vadd.f32 %v2803_v49, %v2738_v25 }
 0x28d   : > { %v2382_v54 = vmax.f32 %v2350_v16, 0.0  ;;  %v3417_v9 = vmin.f32 %v3385_v50, 6.0  ;;  %v3221_v34 = vadd.f32 %v3189_v38, %v3124_v32  ;;  %v2900_v16 = vmul.f32 %v5350_v12, %v5880_v44 }
 0x28e   : > { %v3525_v35 = vpop.f32.mrf.mxu0 }
 0x28f   : > { %v5940_v57 = vmin.f32 %v2382_v54, 6.0  ;;  %v3526_v46 = vadd.f32 %v5928_v26, %v3525_v35  ;;  %v3440_v2 = vpack.c.bf16 %v3417_v9, %v3416_v30  ;;  %v2932_v30 = vadd.f32 %v2900_v16, %v2835_v36 }
 0x290   : > { %v2209_v15 = vpop.f32.mrf.mxu2  ;;  %v3060_v18 = vld [vmem:[#allocation2 + $0x110] sm:$0xff] }
 0x291   : > { %v3253_v21 = vld [vmem:[#allocation2 + $0x10a] sm:$0xff]  ;;  %2446 = vst [vmem:[#allocation2 + $0x121] sm:$0xff] %v5940_v57  ;;  %v3605_v3 = vmax.f32 %v3526_v46, 0.0  ;;  %v2302_v42 = vadd.f32 %v5884_v24, %v2209_v15  ;;  %3564 = vmatmul.bf16.gmra.mxu0 %v3440_v2  ;;  %v3093_v47 = vmul.f32 %v5366_v45, %v3060_v18  ;;  %v5953_v10 = vld [vmem:[#allocation2 + $0x112] sm:$0xff]  ;;  %v2707_v24 = vmul.f32 %v5892_v29, %v5321_v62 }
 0x292   : > { %v3286_v41 = vmul.f32 %v5390_v37, %v3253_v21  ;;  %v2804_v1 = vmul.f32 %v3060_v18, %v5337_v14  ;;  %v3287_v61 = vmul.f32 %v5390_v37, %v5953_v10  ;;  %v2997_v50 = vmul.f32 %v3253_v21, %v5352_v28 }
 0x293   : > { %v3637_v56 = vmin.f32 %v3605_v3, 6.0  ;;  %v2351_v27 = vadd.f32 %v5769_v17, %v2302_v42  ;;  %v3125_v55 = vadd.f32 %v3093_v47, %v3028_v51  ;;  %v2739_v43 = vadd.f32 %v2707_v24, %v2642_v23 }
 0x294   : > { %v3318_v31 = vadd.f32 %v3286_v41, %v3221_v34  ;;  %v3029_v11 = vadd.f32 %v2997_v50, %v2932_v30  ;;  %v2611_v42 = vmul.f32 %v5314_v19, %v5880_v44  ;;  %v2309_v41 = vpop.f32.mrf.mxu3  ;;  %v3191_v23 = vmul.f32 %v5383_v13, %v5940_v57 }
 0x295   : > { %3886 = vst.msk [vmem:[%s5044_s19 + $0x100] sm:$0xff] %vm2029_vm2, %v3637_v56  ;;  %v2383_v40 = vmax.f32 %v2351_v27, 0.0  ;;  %v3222_v5 = vadd.f32 %v3190_v20, %v3125_v55  ;;  %v2836_v54 = vadd.f32 %v2804_v1, %v2739_v43  ;;  %v2998_v20 = vmul.f32 %v5953_v10, %v5352_v28 }
 0x296   : > { %v3354_v33 = vadd.f32 %v5905_v63, %v3318_v31  ;;  %v3527_v52 = vpop.f32.mrf.mxu0  ;;  %v2515_v25 = vmul.f32 %v3060_v18, %v5310_v8  ;;  %v2708_v58 = vmul.f32 %v3253_v21, %v5321_v62  ;;  %v2612_v44 = vmul.f32 %v5314_v19, %v5911_v48 }
 0x297   : > { %v5967_v29 = vmin.f32 %v2383_v40, 6.0  ;;  %v3528_v0 = vadd.f32 %v5928_v26, %v3527_v52  ;;  %v3319_v32 = vadd.f32 %v3287_v61, %v3222_v5  ;;  %v2933_v51 = vadd.f32 %v2901_v7, %v2836_v54 }
 0x298   : > { %v2212_v53 = vpop.f32.mrf.mxu2  ;;  %v5970_v9 = vld [vmem:[#allocation2 + $0x120] sm:$0xff]  ;;  %v3386_v38 = vmax.f32 %v3354_v33, 0.0  ;;  %v2643_v5 = vadd.f32 %v2611_v42, %v2514_v4  ;;  %v2644_v16 = vadd.f32 %v2612_v44, %v2515_v25 }
 0x299   : > { %2447 = vst [vmem:[#allocation2 + $0x129] sm:$0xff] %v5967_v29  ;;  %v3606_v60 = vmax.f32 %v3528_v0, 0.0  ;;  %v2305_v35 = vadd.f32 %v5920_v22, %v2212_v53  ;;  %v3355_v59 = vadd.f32 %v5905_v63, %v3319_v32  ;;  %v3094_v46 = vmul.f32 %v5366_v45, %v5970_v9 }
 0x29a   : > { %v3418_v49 = vmin.f32 %v3386_v38, 6.0  ;;  %v3030_v24 = vadd.f32 %v2998_v20, %v2933_v51  ;;  %v2805_v61 = vmul.f32 %v5970_v9, %v5337_v14  ;;  %v3192_v48 = vmul.f32 %v5383_v13, %v5967_v29 }
 0x29b   : > { %v3638_v2 = vmin.f32 %v3606_v60, 6.0  ;;  %v2352_v6 = vadd.f32 %v5769_v17, %v2305_v35  ;;  %v3387_v15 = vmax.f32 %v3355_v59, 0.0  ;;  %v3126_v34 = vadd.f32 %v3094_v46, %v3029_v11 }
 0x29c   : > { %v2740_v50 = vadd.f32 %v2708_v58, %v2643_v5  ;;  %v2311_v4 = vpop.f32.mrf.mxu3  ;;  %v2903_v25 = vmul.f32 %v5350_v12, %v5967_v29  ;;  %v2516_v5 = vmul.f32 %v5970_v9, %v5310_v8 }
 0x29d   : > { %3887 = vst.msk [vmem:[%s5044_s19 + $0x108] sm:$0xff] %vm2029_vm2, %v3638_v2  ;;  %v2384_v22 = vmax.f32 %v2352_v6, 0.0  ;;  %v3419_v3 = vmin.f32 %v3387_v15, 6.0  ;;  %v3223_v36 = vadd.f32 %v3191_v23, %v3126_v34  ;;  %v2902_v2 = vmul.f32 %v5350_v12, %v5940_v57 }
 0x29e   : > { %v3530_v47 = vpop.f32.mrf.mxu0  ;;  %v2837_v60 = vadd.f32 %v2805_v61, %v2740_v50 }
 0x29f   : > { %v5992_v56 = vmin.f32 %v2384_v22, 6.0  ;;  %v3531_v27 = vadd.f32 %v5928_v26, %v3530_v47  ;;  %v3441_v55 = vpack.c.bf16 %v3419_v3, %v3418_v49 }
 0x2a0   : > { %v2214_v31 = vpop.f32.mrf.mxu2  ;;  %v3062_v1 = vld [vmem:[#allocation2 + $0x128] sm:$0xff]  ;;  %v2934_v49 = vadd.f32 %v2902_v2, %v2837_v60 }
 0x2a1   : > { %v3255_v40 = vld [vmem:[#allocation2 + $0x122] sm:$0xff]  ;;  %2448 = vst [vmem:[#allocation2 + $0x139] sm:$0xff] %v5992_v56  ;;  %v3607_v18 = vmax.f32 %v3531_v27, 0.0  ;;  %v2307_v21 = vadd.f32 %v2306_v39, %v2214_v31  ;;  %3569 = vmatmul.bf16.gmra.mxu0 %v3441_v55  ;;  %v3095_v33 = vmul.f32 %v5366_v45, %v3062_v1  ;;  %v6004_v43 = vld [vmem:[#allocation2 + $0x12a] sm:$0xff]  ;;  %v2709_v39 = vmul.f32 %v5953_v10, %v5321_v62 }
 0x2a2   : > { %v3288_v52 = vmul.f32 %v5390_v37, %v3255_v40  ;;  %v2806_v30 = vmul.f32 %v3062_v1, %v5337_v14  ;;  %v3289_v38 = vmul.f32 %v5390_v37, %v6004_v43  ;;  %v2999_v6 = vmul.f32 %v3255_v40, %v5352_v28 }
 0x2a3   : > { %v3639_v0 = vmin.f32 %v3607_v18, 6.0  ;;  %v2353_v32 = vadd.f32 %v5769_v17, %v2307_v21  ;;  %v3127_v53 = vadd.f32 %v3095_v33, %v3030_v24  ;;  %v2741_v46 = vadd.f32 %v2709_v39, %v2644_v16 }
 0x2a4   : > { %v3320_v54 = vadd.f32 %v3288_v52, %v3223_v36  ;;  %v3031_v58 = vadd.f32 %v2999_v6, %v2934_v49  ;;  %v2613_v21 = vmul.f32 %v5314_v19, %v5940_v57  ;;  %v3000_v52 = vmul.f32 %v6004_v43, %v5352_v28 }
 0x2a5   : > { %3888 = vst.msk [vmem:[%s5044_s19 + $0x110] sm:$0xff] %vm2029_vm2, %v3639_v0  ;;  %v2385_v35 = vmax.f32 %v2353_v32, 0.0  ;;  %v3224_v59 = vadd.f32 %v3192_v48, %v3127_v53  ;;  %v2838_v22 = vadd.f32 %v2806_v30, %v2741_v46  ;;  %v3193_v48 = vmul.f32 %v5383_v13, %v5992_v56 }
 0x2a6   : > { %v3356_v7 = vadd.f32 %v5905_v63, %v3320_v54  ;;  %v3532_v11 = vpop.f32.mrf.mxu0  ;;  %v2517_v16 = vmul.f32 %v3062_v1, %v5310_v8  ;;  %v2710_v50 = vmul.f32 %v3255_v40, %v5321_v62  ;;  %v2614_v53 = vmul.f32 %v5314_v19, %v5967_v29  ;;  %v2314_v29 = vpop.f32.mrf.mxu3 }
 0x2a7   : > { %v6018_v10 = vmin.f32 %v2385_v35, 6.0  ;;  %v3533_v15 = vadd.f32 %v5928_v26, %v3532_v11  ;;  %v3321_v51 = vadd.f32 %v3289_v38, %v3224_v59  ;;  %v2935_v24 = vadd.f32 %v2903_v25, %v2838_v22 }
 0x2a8   : > { %v2217_v34 = vpop.f32.mrf.mxu2  ;;  %v6021_v3 = vld [vmem:[#allocation2 + $0x138] sm:$0xff]  ;;  %v3388_v23 = vmax.f32 %v3356_v7, 0.0  ;;  %v2645_v35 = vadd.f32 %v2613_v21, %v2516_v5  ;;  %v2646_v2 = vadd.f32 %v2614_v53, %v2517_v16 }
 0x2a9   : > { %2449 = vst [vmem:[#allocation2 + $0x141] sm:$0xff] %v6018_v10  ;;  %v3608_v42 = vmax.f32 %v3533_v15, 0.0  ;;  %v2310_v47 = vadd.f32 %v2309_v41, %v2217_v34  ;;  %v3357_v20 = vadd.f32 %v5905_v63, %v3321_v51  ;;  %v3096_v27 = vmul.f32 %v5366_v45, %v6021_v3 }
 0x2aa   : > { %v3420_v61 = vmin.f32 %v3388_v23, 6.0  ;;  %v3032_v54 = vadd.f32 %v3000_v52, %v2935_v24  ;;  %v2807_v59 = vmul.f32 %v6021_v3, %v5337_v14  ;;  %v3194_v11 = vmul.f32 %v5383_v13, %v6018_v10 }
 0x2ab   : > { %v3640_v55 = vmin.f32 %v3608_v42, 6.0  ;;  %v2354_v44 = vadd.f32 %v5769_v17, %v2310_v47  ;;  %v3389_v31 = vmax.f32 %v3357_v20, 0.0  ;;  %v3128_v36 = vadd.f32 %v3096_v27, %v3031_v58 }
 0x2ac   : > { %v2742_v6 = vadd.f32 %v2710_v50, %v2645_v35  ;;  %v2518_v35 = vmul.f32 %v6021_v3, %v5310_v8 }
 0x2ad   : > { %3889 = vst.msk [vmem:[%s5044_s19 + $0x118] sm:$0xff] %vm2029_vm2, %v3640_v55  ;;  %v2386_v41 = vmax.f32 %v2354_v44, 0.0  ;;  %v3421_v18 = vmin.f32 %v3389_v31, 6.0  ;;  %v3225_v30 = vadd.f32 %v3193_v48, %v3128_v36  ;;  %v2904_v55 = vmul.f32 %v5350_v12, %v5992_v56 }
 0x2ae   : > { %v3535_v33 = vpop.f32.mrf.mxu0  ;;  %v2839_v42 = vadd.f32 %v2807_v59, %v2742_v6  ;;  %v2905_v48 = vmul.f32 %v5350_v12, %v6018_v10 }
 0x2af   : > { %v6042_v9 = vmin.f32 %v2386_v41, 6.0  ;;  %v3536_v0 = vadd.f32 %v5928_v26, %v3535_v33  ;;  %v3442_v32 = vpack.c.bf16 %v3421_v18, %v3420_v61 }
 0x2b0   : > { %v2219_v57 = vpop.f32.mrf.mxu2  ;;  %v3064_v39 = vld [vmem:[#allocation2 + $0x140] sm:$0xff]  ;;  %v2936_v41 = vadd.f32 %v2904_v55, %v2839_v42 }
 0x2b1   : > { %v3257_v60 = vld [vmem:[#allocation2 + $0x13a] sm:$0xff]  ;;  %2450 = vst [vmem:[#allocation2 + $0x151] sm:$0xff] %v6042_v9  ;;  %v3609_v1 = vmax.f32 %v3536_v0, 0.0  ;;  %v2312_v40 = vadd.f32 %v2311_v4, %v2219_v57  ;;  %3574 = vmatmul.bf16.gmra.mxu0 %v3442_v32  ;;  %v3097_v38 = vmul.f32 %v5366_v45, %v3064_v39  ;;  %v6054_v46 = vld [vmem:[#allocation2 + $0x142] sm:$0xff]  ;;  %v2711_v4 = vmul.f32 %v6004_v43, %v5321_v62  ;;  %v2316_v57 = vpop.f32.mrf.mxu3 }
 0x2b2   : > { %v3290_v7 = vmul.f32 %v5390_v37, %v3257_v60  ;;  %v2808_v49 = vmul.f32 %v3064_v39, %v5337_v14  ;;  %v3291_v23 = vmul.f32 %v5390_v37, %v6054_v46  ;;  %v3001_v44 = vmul.f32 %v3257_v60, %v5352_v28 }
 0x2b3   : > { %v3641_v15 = vmin.f32 %v3609_v1, 6.0  ;;  %v2355_v51 = vadd.f32 %v5769_v17, %v2312_v40  ;;  %v3129_v34 = vadd.f32 %v3097_v38, %v3032_v54  ;;  %v2743_v27 = vadd.f32 %v2711_v4, %v2646_v2 }
 0x2b4   : > { %v3322_v22 = vadd.f32 %v3290_v7, %v3225_v30  ;;  %v3033_v16 = vadd.f32 %v3001_v44, %v2936_v41  ;;  %v2615_v38 = vmul.f32 %v5314_v19, %v5992_v56  ;;  %v2519_v2 = vmul.f32 %v3064_v39, %v5310_v8 }
 0x2b5   : > { %3890 = vst.msk [vmem:[%s5044_s19 + $0x120] sm:$0xff] %vm2029_vm2, %v3641_v15  ;;  %v2387_v47 = vmax.f32 %v2355_v51, 0.0  ;;  %v3226_v20 = vadd.f32 %v3194_v11, %v3129_v34  ;;  %v2840_v5 = vadd.f32 %v2808_v49, %v2743_v27  ;;  %v3195_v11 = vmul.f32 %v5383_v13, %v6042_v9 }
 0x2b6   : > { %v3358_v25 = vadd.f32 %v5905_v63, %v3322_v22  ;;  %v3537_v58 = vpop.f32.mrf.mxu0  ;;  %v2712_v6 = vmul.f32 %v3257_v60, %v5321_v62  ;;  %v2616_v34 = vmul.f32 %v5314_v19, %v6018_v10 }
 0x2b7   : > { %v6068_v43 = vmin.f32 %v2387_v47, 6.0  ;;  %v3538_v31 = vadd.f32 %v5928_v26, %v3537_v58  ;;  %v3323_v24 = vadd.f32 %v3291_v23, %v3226_v20  ;;  %v2937_v54 = vadd.f32 %v2905_v48, %v2840_v5 }
 0x2b8   : > { %v2222_v36 = vpop.f32.mrf.mxu2  ;;  %v6071_v61 = vld [vmem:[#allocation2 + $0x150] sm:$0xff]  ;;  %v3390_v52 = vmax.f32 %v3358_v25, 0.0  ;;  %v2647_v47 = vadd.f32 %v2615_v38, %v2518_v35  ;;  %v2648_v27 = vadd.f32 %v2616_v34, %v2519_v2  ;;  %v2713_v5 = vmul.f32 %v6054_v46, %v5321_v62 }
 0x2b9   : > { %2451 = vst [vmem:[#allocation2 + $0x159] sm:$0xff] %v6068_v43  ;;  %v3610_v18 = vmax.f32 %v3538_v31, 0.0  ;;  %v2315_v21 = vadd.f32 %v2314_v29, %v2222_v36  ;;  %v3359_v33 = vadd.f32 %v5905_v63, %v3323_v24  ;;  %v3098_v50 = vmul.f32 %v5366_v45, %v6071_v61 }
 0x2ba   : > { %v3422_v1 = vmin.f32 %v3390_v52, 6.0  ;;  %v3002_v29 = vmul.f32 %v6054_v46, %v5352_v28  ;;  %v2809_v20 = vmul.f32 %v6071_v61, %v5337_v14  ;;  %v3196_v10 = vmul.f32 %v5383_v13, %v6068_v43 }
 0x2bb   : > { %v3642_v0 = vmin.f32 %v3610_v18, 6.0  ;;  %v2356_v32 = vadd.f32 %v5769_v17, %v2315_v21  ;;  %v3391_v53 = vmax.f32 %v3359_v33, 0.0  ;;  %v3130_v30 = vadd.f32 %v3098_v50, %v3033_v16  ;;  %v2319_v16 = vpop.f32.mrf.mxu3 }
 0x2bc   : > { %v3034_v22 = vadd.f32 %v3002_v29, %v2937_v54  ;;  %v2744_v55 = vadd.f32 %v2712_v6, %v2647_v47 }
 0x2bd   : > { %3891 = vst.msk [vmem:[%s5044_s19 + $0x128] sm:$0xff] %vm2029_vm2, %v3642_v0  ;;  %v2388_v59 = vmax.f32 %v2356_v32, 0.0  ;;  %v3423_v40 = vmin.f32 %v3391_v53, 6.0  ;;  %v3227_v49 = vadd.f32 %v3195_v11, %v3130_v30  ;;  %v2745_v0 = vadd.f32 %v2713_v5, %v2648_v27 }
 0x2be   : > { %v3540_v7 = vpop.f32.mrf.mxu0  ;;  %v2841_v18 = vadd.f32 %v2809_v20, %v2744_v55  ;;  %v2906_v32 = vmul.f32 %v5350_v12, %v6042_v9  ;;  %v2907_v11 = vmul.f32 %v5350_v12, %v6068_v43 }
 0x2bf   : > { %v6092_v3 = vmin.f32 %v2388_v59, 6.0  ;;  %v3541_v15 = vadd.f32 %v5928_v26, %v3540_v7  ;;  %v3443_v51 = vpack.c.bf16 %v3423_v40, %v3422_v1 }
 0x2c0   : > { %v2224_v56 = vpop.f32.mrf.mxu2  ;;  %v3066_v4 = vld [vmem:[#allocation2 + $0x158] sm:$0xff]  ;;  %v2938_v59 = vadd.f32 %v2906_v32, %v2841_v18 }
 0x2c1   : > { %v3259_v42 = vld [vmem:[#allocation2 + $0x152] sm:$0xff]  ;;  %2452 = vst [vmem:[#allocation2 + $0x169] sm:$0xff] %v6092_v3  ;;  %v3611_v39 = vmax.f32 %v3541_v15, 0.0  ;;  %v2317_v60 = vadd.f32 %v2316_v57, %v2224_v56  ;;  %3579 = vmatmul.bf16.gmra.mxu0 %v3443_v51  ;;  %v3099_v23 = vmul.f32 %v5366_v45, %v3066_v4  ;;  %v6104_v58 = vld [vmem:[#allocation2 + $0x15a] sm:$0xff]  ;;  %v2810_v41 = vmul.f32 %v3066_v4, %v5337_v14 }
 0x2c2   : > { %v3292_v25 = vmul.f32 %v5390_v37, %v3259_v42  ;;  %v3293_v52 = vmul.f32 %v5390_v37, %v6104_v58  ;;  %v3003_v46 = vmul.f32 %v3259_v42, %v5352_v28  ;;  %v2521_v27 = vmul.f32 %v3066_v4, %v5310_v8 }
 0x2c3   : > { %v3643_v44 = vmin.f32 %v3611_v39, 6.0  ;;  %v2357_v31 = vadd.f32 %v5769_v17, %v2317_v60  ;;  %v3131_v24 = vadd.f32 %v3099_v23, %v3034_v22  ;;  %v2842_v35 = vadd.f32 %v2810_v41, %v2745_v0 }
 0x2c4   : > { %v3324_v36 = vadd.f32 %v3292_v25, %v3227_v49  ;;  %v3035_v2 = vadd.f32 %v3003_v46, %v2938_v59  ;;  %v2520_v49 = vmul.f32 %v6071_v61, %v5310_v8  ;;  %v2617_v60 = vmul.f32 %v5314_v19, %v6042_v9  ;;  %v2321_v9 = vpop.f32.mrf.mxu3 }
 0x2c5   : > { %3892 = vst.msk [vmem:[%s5044_s19 + $0x130] sm:$0xff] %vm2029_vm2, %v3643_v44  ;;  %v2389_v21 = vmax.f32 %v2357_v31, 0.0  ;;  %v3228_v33 = vadd.f32 %v3196_v10, %v3131_v24  ;;  %v2939_v56 = vadd.f32 %v2907_v11, %v2842_v35  ;;  %v3004_v25 = vmul.f32 %v6104_v58, %v5352_v28 }
 0x2c6   : > { %v3360_v48 = vadd.f32 %v5905_v63, %v3324_v36  ;;  %v3542_v50 = vpop.f32.mrf.mxu0  ;;  %v3197_v10 = vmul.f32 %v5383_v13, %v6092_v3  ;;  %v2714_v55 = vmul.f32 %v3259_v42, %v5321_v62  ;;  %v2618_v24 = vmul.f32 %v5314_v19, %v6068_v43 }
 0x2c7   : > { %v6118_v53 = vmin.f32 %v2389_v21, 6.0  ;;  %v3543_v57 = vadd.f32 %v5928_v26, %v3542_v50  ;;  %v3325_v54 = vadd.f32 %v3293_v52, %v3228_v33  ;;  %v3036_v5 = vadd.f32 %v3004_v25, %v2939_v56 }
 0x2c8   : > { %v2227_v30 = vpop.f32.mrf.mxu2  ;;  %v3067_v1 = vld [vmem:[#allocation2 + $0x168] sm:$0xff]  ;;  %v3392_v29 = vmax.f32 %v3360_v48, 0.0  ;;  %v2649_v33 = vadd.f32 %v2617_v60, %v2520_v49  ;;  %v2650_v0 = vadd.f32 %v2618_v24, %v2521_v27  ;;  %v2715_v35 = vmul.f32 %v6104_v58, %v5321_v62 }
 0x2c9   : > { %2453 = vst [vmem:[#allocation2 + $0x171] sm:$0xff] %v6118_v53  ;;  %v3612_v40 = vmax.f32 %v3543_v57, 0.0  ;;  %v2320_v38 = vadd.f32 %v2319_v16, %v2227_v30  ;;  %v3361_v7 = vadd.f32 %v5905_v63, %v3325_v54  ;;  %v3100_v6 = vmul.f32 %v5366_v45, %v3067_v1 }
 0x2ca   : > { %v3424_v20 = vmin.f32 %v3392_v29, 6.0  ;;  %v2811_v52 = vmul.f32 %v3067_v1, %v5337_v14  ;;  %v3198_v43 = vmul.f32 %v5383_v13, %v6118_v53  ;;  %v2746_v32 = vadd.f32 %v2714_v55, %v2649_v33 }
 0x2cb   : > { %v3644_v15 = vmin.f32 %v3612_v40, 6.0  ;;  %v2358_v51 = vadd.f32 %v5769_v17, %v2320_v38  ;;  %v3393_v34 = vmax.f32 %v3361_v7, 0.0  ;;  %v3132_v22 = vadd.f32 %v3100_v6, %v3035_v2 }
 0x2cc   : > { %v2843_v40 = vadd.f32 %v2811_v52, %v2746_v32  ;;  %v2747_v6 = vadd.f32 %v2715_v35, %v2650_v0 }
 0x2cd   : > { %3893 = vst.msk [vmem:[%s5044_s19 + $0x138] sm:$0xff] %vm2029_vm2, %v3644_v15  ;;  %v2390_v47 = vmax.f32 %v2358_v51, 0.0  ;;  %v3425_v39 = vmin.f32 %v3393_v34, 6.0  ;;  %v3229_v18 = vadd.f32 %v3197_v10, %v3132_v22  ;;  %v2522_v15 = vmul.f32 %v3067_v1, %v5310_v8 }
 0x2ce   : > { %v3545_v23 = vpop.f32.mrf.mxu0  ;;  %v2909_v10 = vmul.f32 %v5350_v12, %v6118_v53 }
 0x2cf   : > { %v6139_v61 = vmin.f32 %v2390_v47, 6.0  ;;  %v3546_v44 = vadd.f32 %v5928_v26, %v3545_v23  ;;  %v3444_v31 = vpack.c.bf16 %v3425_v39, %v3424_v20  ;;  %v2619_v20 = vmul.f32 %v5314_v19, %v6092_v3 }
 0x2d0   : > { %v2229_v36 = vpop.f32.mrf.mxu2  ;;  %v3068_v41 = vld [vmem:[#allocation2 + $0x170] sm:$0xff] }
 0x2d1   : > { %v3261_v21 = vld [vmem:[#allocation2 + $0x16a] sm:$0xff]  ;;  %2454 = vst [vmem:[#allocation2 + $0x181] sm:$0xff] %v6139_v61  ;;  %v3613_v4 = vmax.f32 %v3546_v44, 0.0  ;;  %v2322_v42 = vadd.f32 %v2321_v9, %v2229_v36  ;;  %3584 = vmatmul.bf16.gmra.mxu0 %v3444_v31  ;;  %v3101_v48 = vmul.f32 %v5366_v45, %v3068_v41  ;;  %v3262_v50 = vld [vmem:[#allocation2 + $0x172] sm:$0xff]  ;;  %v2812_v59 = vmul.f32 %v3068_v41, %v5337_v14 }
 0x2d2   : > { %v3294_v16 = vmul.f32 %v5390_v37, %v3261_v21  ;;  %v3295_v29 = vmul.f32 %v5390_v37, %v3262_v50  ;;  %v3005_v56 = vmul.f32 %v3261_v21, %v5352_v28  ;;  %v2716_v39 = vmul.f32 %v3261_v21, %v5321_v62 }
 0x2d3   : > { %v3645_v46 = vmin.f32 %v3613_v4, 6.0  ;;  %v2359_v57 = vadd.f32 %v5769_v17, %v2322_v42  ;;  %v3133_v54 = vadd.f32 %v3101_v48, %v3036_v5  ;;  %v2908_v17 = vmul.f32 %v5350_v12, %v6092_v3 }
 0x2d4   : > { %v3326_v30 = vadd.f32 %v3294_v16, %v3229_v18  ;;  %v2844_v22 = vadd.f32 %v2812_v59, %v2747_v6  ;;  %v2523_v27 = vmul.f32 %v3068_v41, %v5310_v8  ;;  %v2651_v55 = vadd.f32 %v2619_v20, %v2522_v15 }
 0x2d5   : > { %3894 = vst.msk [vmem:[%s5044_s19 + $0x140] sm:$0xff] %vm2029_vm2, %v3645_v46  ;;  %v2391_v38 = vmax.f32 %v2359_v57, 0.0  ;;  %v3230_v7 = vadd.f32 %v3198_v43, %v3133_v54  ;;  %v2940_v49 = vadd.f32 %v2908_v17, %v2843_v40  ;;  %v2620_v36 = vmul.f32 %v5314_v19, %v6118_v53  ;;  %v3972_v46 = vld [vmem:[#allocation2] sm:$0xff] }
 0x2d6   : > { %v3362_v11 = vadd.f32 %v5905_v63, %v3326_v30  ;;  %v3547_v2 = vpop.f32.mrf.mxu0  ;;  %v2941_v9 = vadd.f32 %v2909_v10, %v2844_v22  ;;  %v2748_v5 = vadd.f32 %v2716_v39, %v2651_v55  ;;  %v3006_v4 = vmul.f32 %v3262_v50, %v5352_v28  ;;  %v3168_v40 = vld [vmem:[#allocation2 + $0x199] sm:$0xff] }
 0x2d7   : > { %v2423_v51 = vmin.f32 %v2391_v38, 6.0  ;;  %v3548_v58 = vadd.f32 %v5928_v26, %v3547_v2  ;;  %v3327_v34 = vadd.f32 %v3295_v29, %v3230_v7  ;;  %v3037_v24 = vadd.f32 %v3005_v56, %v2940_v49  ;;  %v3265_v17 = vld [vmem:[#allocation2 + $0x19a] sm:$0xff] }
 0x2d8   : > { %v3069_v47 = vld [vmem:[#allocation2 + $0x180] sm:$0xff]  ;;  %v3394_v1 = vmax.f32 %v3362_v11, 0.0  ;;  %v2652_v8 = vadd.f32 %v2620_v36, %v2523_v27  ;;  %v3199_v16 = vmul.f32 %v5383_v13, %v6139_v61  ;;  %v3038_v43 = vadd.f32 %v3006_v4, %v2941_v9 }
 0x2d9   : > { %2455 = vst [vmem:[#allocation2 + $0x189] sm:$0xff] %v2423_v51  ;;  %v3614_v60 = vmax.f32 %v3548_v58, 0.0  ;;  %v3363_v23 = vadd.f32 %v5905_v63, %v3327_v34  ;;  %v3102_v25 = vmul.f32 %v5366_v45, %v3069_v47  ;;  %v2813_v44 = vmul.f32 %v3069_v47, %v5337_v14  ;;  %v3169_v49 = vld [vmem:[#allocation2 + $0x1a1] sm:$0xff] }
 0x2da   : > { %v3426_v18 = vmin.f32 %v3394_v1, 6.0  ;;  %v2717_v53 = vmul.f32 %v3262_v50, %v5321_v62  ;;  %v2910_v32 = vmul.f32 %v5350_v12, %v6139_v61  ;;  %v3104_v57 = vmul.f32 %v3972_v46, %v5366_v45  ;;  %v3266_v1 = vld [vmem:[#allocation2 + $0x1a2] sm:$0xff] }
 0x2db   : > { %v3646_v31 = vmin.f32 %v3614_v60, 6.0  ;;  %v3395_v3 = vmax.f32 %v3363_v23, 0.0  ;;  %v3134_v33 = vadd.f32 %v3102_v25, %v3037_v24  ;;  %v2845_v41 = vadd.f32 %v2813_v44, %v2748_v5 }
 0x2dc   : > { %v2749_v7 = vadd.f32 %v2717_v53, %v2652_v8  ;;  %v3200_v2 = vmul.f32 %v5383_v13, %v2423_v51  ;;  %v3201_v34 = vmul.f32 %v5383_v13, %v3168_v40  ;;  %v3298_v23 = vmul.f32 %v5390_v37, %v3265_v17 }
 0x2dd   : > { %3895 = vst.msk [vmem:[%s5044_s19 + $0x148] sm:$0xff] %vm2029_vm2, %v3646_v31  ;;  %v3427_v21 = vmin.f32 %v3395_v3, 6.0  ;;  %v3231_v35 = vadd.f32 %v3199_v16, %v3134_v33  ;;  %v2942_v62 = vadd.f32 %v2910_v32, %v2845_v41  ;;  %v3202_v10 = vmul.f32 %v5383_v13, %v3169_v49 }
 0x2de   : > { %v3550_v52 = vpop.f32.mrf.mxu0  ;;  %v3299_v24 = vmul.f32 %v5390_v37, %v3266_v1 }
 0x2df   : > { %v3551_v42 = vadd.f32 %v5928_v26, %v3550_v52  ;;  %v3445_v48 = vpack.c.bf16 %v3427_v21, %v3426_v18 }
 0x2e0   : > { %v3070_v0 = vld [vmem:[#allocation2 + $0x188] sm:$0xff] }
 0x2e1   : > { %v3263_v19 = vld [vmem:[#allocation2 + $0x182] sm:$0xff]  ;;  %v3615_v54 = vmax.f32 %v3551_v42, 0.0  ;;  %3589 = vmatmul.bf16.gmra.mxu0 %v3445_v48  ;;  %v3103_v30 = vmul.f32 %v5366_v45, %v3070_v0  ;;  %v3264_v38 = vld [vmem:[#allocation2 + $0x18a] sm:$0xff]  ;;  %v2814_v29 = vmul.f32 %v3070_v0, %v5337_v14  ;;  %v2911_v45 = vmul.f32 %v5350_v12, %v2423_v51 }
 0x2e2   : > { %v3296_v59 = vmul.f32 %v5390_v37, %v3263_v19  ;;  %v3007_v50 = vmul.f32 %v3263_v19, %v5352_v28  ;;  %v3297_v14 = vmul.f32 %v5390_v37, %v3264_v38  ;;  %v3008_v39 = vmul.f32 %v3264_v38, %v5352_v28 }
 0x2e3   : > { %v3647_v61 = vmin.f32 %v3615_v54, 6.0  ;;  %v3135_v11 = vadd.f32 %v3103_v30, %v3038_v43  ;;  %v2846_v15 = vadd.f32 %v2814_v29, %v2749_v7 }
 0x2e4   : > { %v3328_v6 = vadd.f32 %v3296_v59, %v3231_v35  ;;  %v3039_v58 = vadd.f32 %v3007_v50, %v2942_v62 }
 0x2e5   : > { %3896 = vst.msk [vmem:[%s5044_s19 + $0x150] sm:$0xff] %vm2029_vm2, %v3647_v61  ;;  %v3232_v56 = vadd.f32 %v3200_v2, %v3135_v11  ;;  %v2943_v20 = vadd.f32 %v2911_v45, %v2846_v15 }
 0x2e6   : > { %v3364_v22 = vadd.f32 %v5905_v63, %v3328_v6  ;;  %v3552_v47 = vpop.f32.mrf.mxu0  ;;  %v3136_v60 = vadd.f32 %v3104_v57, %v3039_v58 }
 0x2e7   : > { %v3553_v12 = vadd.f32 %v5928_v26, %v3552_v47  ;;  %v3329_v51 = vadd.f32 %v3297_v14, %v3232_v56  ;;  %v3040_v25 = vadd.f32 %v3008_v39, %v2943_v20 }
 0x2e8   : > { %v3233_v27 = vadd.f32 %v3201_v34, %v3136_v60  ;;  %v3396_v31 = vmax.f32 %v3364_v22, 0.0 }
 0x2e9   : > { %v3616_v55 = vmax.f32 %v3553_v12, 0.0  ;;  %v3365_v44 = vadd.f32 %v5905_v63, %v3329_v51  ;;  %v3137_v3 = vadd.f32 %v3104_v57, %v3040_v25 }
 0x2ea   : > { %v3330_v28 = vadd.f32 %v3298_v23, %v3233_v27  ;;  %v3428_v21 = vmin.f32 %v3396_v31, 6.0 }
 0x2eb   : > { %v3648_v9 = vmin.f32 %v3616_v55, 6.0  ;;  %v3397_v36 = vmax.f32 %v3365_v44, 0.0  ;;  %v3234_v5 = vadd.f32 %v3202_v10, %v3137_v3 }
 0x2ec   : > { %v3366_v18 = vadd.f32 %v5905_v63, %v3330_v28 }
 0x2ed   : > { %3897 = vst.msk [vmem:[%s5044_s19 + $0x158] sm:$0xff] %vm2029_vm2, %v3648_v9  ;;  %v3429_v33 = vmin.f32 %v3397_v36, 6.0  ;;  %v3331_v52 = vadd.f32 %v3299_v24, %v3234_v5 }
 0x2ee   : > { %v3555_v13 = vpop.f32.mrf.mxu0  ;;  %v3398_v37 = vmax.f32 %v3366_v18, 0.0 }
 0x2ef   : > { %v3556_v4 = vadd.f32 %v5928_v26, %v3555_v13  ;;  %v3446_v8 = vpack.c.bf16 %v3429_v33, %v3428_v21  ;;  %v3367_v41 = vadd.f32 %v5905_v63, %v3331_v52 }
 0x2f0   : > { %v3430_v43 = vmin.f32 %v3398_v37, 6.0 }
 0x2f1   : > { %v3617_v42 = vmax.f32 %v3556_v4, 0.0  ;;  %3594 = vmatmul.bf16.gmra.mxu0 %v3446_v8  ;;  %v3399_v48 = vmax.f32 %v3367_v41, 0.0 }
 0x2f3   : > { %v3649_v16 = vmin.f32 %v3617_v42, 6.0  ;;  %v3431_v0 = vmin.f32 %v3399_v48, 6.0 }
 0x2f5   : > { %3898 = vst.msk [vmem:[%s5044_s19 + $0x160] sm:$0xff] %vm2029_vm2, %v3649_v16  ;;  %v3447_v53 = vpack.c.bf16 %v3431_v0, %v3430_v43 }
 0x2f6   : > { %v3557_v19 = vpop.f32.mrf.mxu0 }
 0x2f7   : > { %v3558_v32 = vadd.f32 %v5928_v26, %v3557_v19  ;;  %3599 = vmatmul.bf16.vlgmr.msra.gmra.mxu1 %v3447_v53 }
 0x2f9   : > { %v3618_v46 = vmax.f32 %v3558_v32, 0.0 }
 0x2fb   : > { %v3650_v57 = vmin.f32 %v3618_v46, 6.0  ;;  %v3973_v46 = vld [vmem:[%s6281_s13] ss:$0 sm:$0xff] }
 0x2fd   : > { %3899 = vst.msk [vmem:[%s5044_s19 + $0x168] sm:$0xff] %vm2029_vm2, %v3650_v57 }
 0x2fe   : > { %v3560_v63 = vpop.f32.mrf.mxu0 }
 0x2ff   : > { %v3561_v54 = vadd.f32 %v5928_v26, %v3560_v63 }
 0x301   : > { %v3619_v30 = vmax.f32 %v3561_v54, 0.0 }
 0x303   : > { %v3651_v35 = vmin.f32 %v3619_v30, 6.0 }
 0x305   : > { %3900 = vst.msk [vmem:[%s5044_s19 + $0x170] sm:$0xff] %vm2029_vm2, %v3651_v35 }
 0x306   : > { %v3562_v59 = vpop.f32.mrf.mxu0 }
 0x307   : > { %v3563_v40 = vadd.f32 %v5928_v26, %v3562_v59 }
 0x309   : > { %v3620_v38 = vmax.f32 %v3563_v40, 0.0 }
 0x30b   : > { %v3652_v7 = vmin.f32 %v3620_v38, 6.0 }
 0x30d   : > { %3901 = vst.msk [vmem:[%s5044_s19 + $0x178] sm:$0xff] %vm2029_vm2, %v3652_v7 }
 0x30e   : > { %v3565_v29 = vpop.f32.mrf.mxu0 }
 0x30f   : > { %v3566_v62 = vadd.f32 %v5928_v26, %v3565_v29 }
 0x311   : > { %v3621_v50 = vmax.f32 %v3566_v62, 0.0 }
 0x313   : > { %v3653_v61 = vmin.f32 %v3621_v50, 6.0 }
 0x315   : > { %3902 = vst.msk [vmem:[%s5044_s19 + $0x180] sm:$0xff] %vm2029_vm2, %v3653_v61 }
 0x316   : > { %v3567_v11 = vpop.f32.mrf.mxu0 }
 0x317   : > { %v3568_v2 = vadd.f32 %v5928_v26, %v3567_v11 }
 0x319   : > { %v3622_v6 = vmax.f32 %v3568_v2, 0.0 }
 0x31b   : > { %v3654_v17 = vmin.f32 %v3622_v6, 6.0 }
 0x31d   : > { %3903 = vst.msk [vmem:[%s5044_s19 + $0x188] sm:$0xff] %vm2029_vm2, %v3654_v17 }
 0x31e   : > { %v3570_v15 = vpop.f32.mrf.mxu0 }
 0x31f   : > { %v3571_v45 = vadd.f32 %v5928_v26, %v3570_v15 }
 0x321   : > { %v3623_v58 = vmax.f32 %v3571_v45, 0.0 }
 0x323   : > { %v3655_v34 = vmin.f32 %v3623_v58, 6.0 }
 0x325   : > { %3904 = vst.msk [vmem:[%s5044_s19 + $0x190] sm:$0xff] %vm2029_vm2, %v3655_v34 }
 0x326   : > { %v3572_v56 = vpop.f32.mrf.mxu0 }
 0x327   : > { %v3573_v14 = vadd.f32 %v5928_v26, %v3572_v56 }
 0x329   : > { %v3624_v22 = vmax.f32 %v3573_v14, 0.0 }
 0x32b   : > { %v3656_v49 = vmin.f32 %v3624_v22, 6.0 }
 0x32d   : > { %3905 = vst.msk [vmem:[%s5044_s19 + $0x198] sm:$0xff] %vm2029_vm2, %v3656_v49 }
 0x32e   : > { %v3575_v47 = vpop.f32.mrf.mxu0 }
 0x32f   : > { %v3576_v20 = vadd.f32 %v5928_v26, %v3575_v47 }
 0x331   : > { %v3625_v39 = vmax.f32 %v3576_v20, 0.0 }
 0x333   : > { %v3657_v60 = vmin.f32 %v3625_v39, 6.0 }
 0x335   : > { %3906 = vst.msk [vmem:[%s5044_s19 + $0x1a0] sm:$0xff] %vm2029_vm2, %v3657_v60 }
 0x336   : > { %v3577_v23 = vpop.f32.mrf.mxu0 }
 0x337   : > { %v3578_v12 = vadd.f32 %v5928_v26, %v3577_v23 }
 0x339   : > { %v3626_v51 = vmax.f32 %v3578_v12, 0.0 }
 0x33b   : > { %v3658_v1 = vmin.f32 %v3626_v51, 6.0 }
 0x33d   : > { %3907 = vst.msk [vmem:[%s5044_s19 + $0x1a8] sm:$0xff] %vm2029_vm2, %v3658_v1 }
 0x33e   : > { %v3580_v25 = vpop.f32.mrf.mxu0 }
 0x33f   : > { %v3581_v10 = vadd.f32 %v5928_v26, %v3580_v25 }
 0x341   : > { %v3627_v27 = vmax.f32 %v3581_v10, 0.0 }
 0x343   : > { %v3659_v55 = vmin.f32 %v3627_v27, 6.0 }
 0x345   : > { %3908 = vst.msk [vmem:[%s5044_s19 + $0x1b0] sm:$0xff] %vm2029_vm2, %v3659_v55 }
 0x346   : > { %v3582_v44 = vpop.f32.mrf.mxu0 }
 0x347   : > { %v3583_v31 = vadd.f32 %v5928_v26, %v3582_v44 }
 0x349   : > { %v3628_v3 = vmax.f32 %v3583_v31, 0.0 }
 0x34b   : > { %v3660_v24 = vmin.f32 %v3628_v3, 6.0 }
 0x34d   : > { %3909 = vst.msk [vmem:[%s5044_s19 + $0x1b8] sm:$0xff] %vm2029_vm2, %v3660_v24 }
 0x34e   : > { %v3585_v28 = vpop.f32.mrf.mxu0 }
 0x34f   : > { %v3586_v9 = vadd.f32 %v5928_v26, %v3585_v28 }
 0x351   : > { %v3629_v36 = vmax.f32 %v3586_v9, 0.0 }
 0x353   : > { %v3661_v5 = vmin.f32 %v3629_v36, 6.0 }
 0x355   : > { %3910 = vst.msk [vmem:[%s5044_s19 + $0x1c0] sm:$0xff] %vm2029_vm2, %v3661_v5 }
 0x356   : > { %v3587_v18 = vpop.f32.mrf.mxu0 }
 0x357   : > { %v3588_v21 = vadd.f32 %v5928_v26, %v3587_v18 }
 0x359   : > { %v3630_v33 = vmax.f32 %v3588_v21, 0.0 }
 0x35b   : > { %v3662_v13 = vmin.f32 %v3630_v33, 6.0 }
 0x35d   : > { %3911 = vst.msk [vmem:[%s5044_s19 + $0x1c8] sm:$0xff] %vm2029_vm2, %v3662_v13 }
 0x35e   : > { %v3590_v52 = vpop.f32.mrf.mxu0 }
 0x35f   : > { %v3591_v4 = vadd.f32 %v5928_v26, %v3590_v52 }
 0x361   : > { %v3631_v8 = vmax.f32 %v3591_v4, 0.0 }
 0x363   : > { %v3663_v41 = vmin.f32 %v3631_v8, 6.0 }
 0x365   : > { %3912 = vst.msk [vmem:[%s5044_s19 + $0x1d0] sm:$0xff] %vm2029_vm2, %v3663_v41 }
 0x366   : > { %v3592_v37 = vpop.f32.mrf.mxu0 }
 0x367   : > { %v3593_v42 = vadd.f32 %v5928_v26, %v3592_v37 }
 0x369   : > { %v3632_v48 = vmax.f32 %v3593_v42, 0.0 }
 0x36b   : > { %v3664_v16 = vmin.f32 %v3632_v48, 6.0 }
 0x36d   : > { %3913 = vst.msk [vmem:[%s5044_s19 + $0x1d8] sm:$0xff] %vm2029_vm2, %v3664_v16 }
 0x36e   : > { %v3595_v43 = vpop.f32.mrf.mxu0 }
 0x36f   : > { %v3596_v0 = vadd.f32 %v5928_v26, %v3595_v43 }
 0x371   : > { %v3633_v19 = vmax.f32 %v3596_v0, 0.0 }
 0x373   : > { %v3665_v53 = vmin.f32 %v3633_v19, 6.0 }
 0x374   : > { %v3600_v32 = vpop.f32.mrf.mxu1 }
 0x375   : > { %3914 = vst.msk [vmem:[%s5044_s19 + $0x1e0] sm:$0xff] %vm2029_vm2, %v3665_v53  ;;  %v3601_v57 = vadd.f32 %v3973_v46, %v3600_v32 }
 0x376   : > { %v3597_v63 = vpop.f32.mrf.mxu0 }
 0x377   : > { %v3598_v54 = vadd.f32 %v3973_v46, %v3597_v63  ;;  %v3635_v30 = vmax.f32 %v3601_v57, 0.0 }
 0x379   : > { %v3634_v35 = vmax.f32 %v3598_v54, 0.0  ;;  %v3667_v59 = vmin.f32 %v3635_v30, 6.0 }
 0x37b   : > { %v3666_v40 = vmin.f32 %v3634_v35, 6.0  ;;  %3916 = vst.msk [vmem:[%s5044_s19 + $0x1f0] sm:$0xff] %vm2029_vm2, %v3667_v59 }
 0x37c   : > { %v3602_v26 = vpop.f32.mrf.mxu1 }
 0x37d   : > { %3915 = vst.msk [vmem:[%s5044_s19 + $0x1e8] sm:$0xff] %vm2029_vm2, %v3666_v40  ;;  %v3603_v38 = vadd.f32 %v3973_v46, %v3602_v26 }
 0x37f   : > { %v3636_v7 = vmax.f32 %v3603_v38, 0.0 }
 0x381   : > { %v3668_v29 = vmin.f32 %v3636_v7, 6.0 }
 0x383   : > { %3917 = vst.msk [vmem:[%s5044_s19 + $0x1f8] sm:$0xff] %vm2029_vm2, %v3668_v29 }
 0x384 PF: > { %s24_s29 = sadd.s32 1, %s3980_s29  }
 0x385   : > { %p21_p4 = scmp.ge.s32.totalorder %s24_s29, 4  }
 0x387   :  { %23 = sbr.rel (!%p21_p4) target bundleno = 1 (0x1), region = 109 }

</bundles_post_ra>
